<compile_context>
chip_gen: v7x
topology: tpu7x:2x2x1
jax: 0.10.0
libtpu: 0.0.40
codegen_flags: <defaults>
</compile_context>

<pallas_src>
import functools

import jax
import jax.numpy as jnp
from jax import lax
from jax.experimental import pallas as pl
from jax.experimental.pallas import tpu as pltpu

IN_CH, OUT_CH, KH, KW = 3, 6, 3, 3


def _read_params(w_ref, b_ref, oc_n, c_n, kh_n, kw_n):
    """Hoist every SMEM scalar read above the compute loops (read once)."""
    wv = [[[[w_ref[((oc * c_n + c) * kh_n + kh) * kw_n + kw]
             for kw in range(kw_n)]
            for kh in range(kh_n)]
           for c in range(c_n)]
          for oc in range(oc_n)]
    bv = [b_ref[oc] for oc in range(oc_n)]
    return wv, bv


def _conv_kernel_batch_lanes(x_ref, w_ref, b_ref, o_ref, *, kh_n, kw_n, oh_blk):
    """Batch-on-lanes direct conv; one output row per fori_loop iteration.

    x_ref: (C, H, W, BT)         VMEM   (BT = batch tile on the lane axis)
    w_ref: (OC*C*KH*KW,)         SMEM   (flat OIHW)
    b_ref: (OC,)                 SMEM
    o_ref: (OC, OH_BLK, OW, BT)  VMEM   (OH_BLK output rows of this grid step)
    """
    c_n, _, _, bt = x_ref.shape
    oc_n, _, ow_n, _ = o_ref.shape
    oh0 = pl.program_id(1) * oh_blk          # first output row of this block

    wv, bv = _read_params(w_ref, b_ref, oc_n, c_n, kh_n, kw_n)

    def row_body(r, carry):
        row = oh0 + r
        # Per-row accumulators: 6 x (OW, BT) f32 — fits the vreg file easily.
        accs = [jnp.zeros((ow_n, bt), jnp.float32) for _ in range(oc_n)]
        for c in range(c_n):
            for kh in range(kh_n):
                # One aligned full-width strip per (c, kh); kw taps are
                # derived in-register (deduplicated loads).
                strip = x_ref[c, row + kh, :, :].astype(jnp.float32)  # (W, BT)
                for kw in range(kw_n):
                    patch = strip[kw:kw + ow_n, :]
                    for oc in range(oc_n):
                        accs[oc] = accs[oc] + wv[oc][c][kh][kw] * patch
        for oc in range(oc_n):
            o_ref[oc, r] = (accs[oc] + bv[oc]).astype(o_ref.dtype)
        return carry

    lax.fori_loop(0, oh_blk, row_body, 0)


def _conv_kernel_lane_fold(x_ref, w_ref, b_ref, o_ref, *, kh_n, kw_n, n_lane):
    """Small-batch direct conv with W folded onto the lane axis (lane = w*N+n).

    x_ref: (C, H, W*N)      VMEM
    w_ref: (OC*C*KH*KW,)    SMEM
    b_ref: (OC,)            SMEM
    o_ref: (OC, OH, OW*N)   VMEM
    """
    c_n = x_ref.shape[0]
    oc_n, oh_n, ow_lanes = o_ref.shape

    wv, bv = _read_params(w_ref, b_ref, oc_n, c_n, kh_n, kw_n)

    accs = [jnp.zeros((oh_n, ow_lanes), jnp.float32) for _ in range(oc_n)]
    for c in range(c_n):
        for kh in range(kh_n):
            # One aligned load per (c, kh); kw taps are lane sub-slices.
            block = x_ref[c, kh:kh + oh_n, :].astype(jnp.float32)   # (OH, W*N)
            for kw in range(kw_n):
                patch = block[:, kw * n_lane: kw * n_lane + ow_lanes]
                for oc in range(oc_n):
                    accs[oc] = accs[oc] + wv[oc][c][kh][kw] * patch
    for oc in range(oc_n):
        o_ref[oc] = (accs[oc] + bv[oc]).astype(o_ref.dtype)


def conv2d_pallas(x, w, b):
    """Forward pass of MyConvolution2Dimension.

    x: (N, C, H, W) f32;  w: (OC, C, KH, KW);  b: (OC,).
    Returns (N, OC, OH, OW), identical to nn.Conv2d(stride=1, padding=0).
    """
    N, C, H, W = x.shape
    OC, Cw, kh_n, kw_n = w.shape
    assert Cw == C
    OH, OW = H - kh_n + 1, W - kw_n + 1

    w_flat = w.reshape(-1).astype(jnp.float32)
    b_vec = b.astype(jnp.float32)

    # ---------- small-batch path: fold W onto lanes (lane = w*N + n) --------
    # Keeps vregs dense for tiny N; gated so the resident accumulators stay
    # well inside the 64-vreg file.
    if N * W <= 256 and OH <= 16 and N < 128:
        x_fold = jnp.transpose(x, (1, 2, 3, 0)).reshape(C, H, W * N)
        kernel = functools.partial(_conv_kernel_lane_fold,
                                   kh_n=kh_n, kw_n=kw_n, n_lane=N)
        cost = pl.CostEstimate(
            flops=2 * N * OC * OH * OW * C * kh_n * kw_n,
            transcendentals=0,
            bytes_accessed=4 * (x.size + w.size + b.size + N * OC * OH * OW))
        out = pl.pallas_call(
            kernel,
            out_shape=jax.ShapeDtypeStruct((OC, OH, OW * N), x.dtype),
            grid_spec=pltpu.PrefetchScalarGridSpec(
                num_scalar_prefetch=0,
                grid=(1,),
                in_specs=[
                    pl.BlockSpec((C, H, W * N), lambda i: (0, 0, 0)),
                    pl.BlockSpec(memory_space=pltpu.MemorySpace.SMEM),
                    pl.BlockSpec(memory_space=pltpu.MemorySpace.SMEM),
                ],
                out_specs=pl.BlockSpec((OC, OH, OW * N), lambda i: (0, 0, 0)),
            ),
            compiler_params=pltpu.CompilerParams(
                dimension_semantics=("arbitrary",)),
            cost_estimate=cost,
        )(x_fold, w_flat, b_vec)
        # (OC, OH, OW*N) -> (OC, OH, OW, N) -> (N, OC, OH, OW)
        return jnp.transpose(out.reshape(OC, OH, OW, N), (3, 0, 1, 2))

    # ---------- main path: batch on the lane axis ---------------------------
    n128 = -(-N // 128)                       # number of 128-lane groups
    if n128 <= 1:
        bt = 128
    else:
        bt = 128 * min(4, max(1, n128 // 2))  # 128..512 lanes, >=2 grid steps

    # Keep the double-buffered in+out tiles inside the scoped-VMEM budget on
    # every generation (v7x: 64 MiB physical, 32 MiB scoped default).
    per_lane_bytes = 4 * (C * H * W + OC * OH * OW)
    vmem_budget = 24 << 20
    max_bt = max(128, (vmem_budget // (2 * per_lane_bytes)) // 128 * 128)
    bt = min(bt, max_bt)

    n_pad = -(-N // bt) * bt
    n_steps = n_pad // bt

    # v7x megacore: with a single batch tile, expose a second parallel grid
    # axis by splitting OH into two row blocks.
    n_oh = 2 if (n_steps == 1 and OH >= 2 and OH % 2 == 0) else 1
    oh_blk = OH // n_oh

    # Lane-dense layout: batch on the last (lane) axis; pad only what's needed.
    x_t = jnp.transpose(x, (1, 2, 3, 0))                    # (C, H, W, N)
    if n_pad != N:
        x_t = jnp.pad(x_t, ((0, 0), (0, 0), (0, 0), (0, n_pad - N)))

    kernel = functools.partial(_conv_kernel_batch_lanes,
                               kh_n=kh_n, kw_n=kw_n, oh_blk=oh_blk)
    cost = pl.CostEstimate(
        flops=2 * n_pad * OC * OH * OW * C * kh_n * kw_n,
        transcendentals=0,
        bytes_accessed=4 * (n_pad * C * H * W + w.size + b.size
                            + n_pad * OC * OH * OW))

    out_t = pl.pallas_call(
        kernel,
        out_shape=jax.ShapeDtypeStruct((OC, OH, OW, n_pad), x.dtype),
        grid_spec=pltpu.PrefetchScalarGridSpec(
            num_scalar_prefetch=0,
            grid=(n_steps, n_oh),
            in_specs=[
                pl.BlockSpec((C, H, W, bt), lambda n, h: (0, 0, 0, n)),
                pl.BlockSpec(memory_space=pltpu.MemorySpace.SMEM),
                pl.BlockSpec(memory_space=pltpu.MemorySpace.SMEM),
            ],
            out_specs=pl.BlockSpec((OC, oh_blk, OW, bt),
                                   lambda n, h: (0, h, 0, n)),
        ),
        compiler_params=pltpu.CompilerParams(
            dimension_semantics=("parallel", "parallel"),
            vmem_limit_bytes=32 * 1024 * 1024),
        cost_estimate=cost,
    )(x_t, w_flat, b_vec)

    # Slice off the batch padding first, then transpose back to NCHW.
    return jnp.transpose(out_t[..., :N], (3, 0, 1, 2))


def _reference_conv(x, w, b):
    return lax.conv_general_dilated(
        x, w, window_strides=(1, 1), padding="VALID",
        dimension_numbers=("NCHW", "OIHW", "NCHW")) + b[None, :, None, None]


if __name__ == "__main__":
    key = jax.random.PRNGKey(0)
    kx, kwk, kbk = jax.random.split(key, 3)

    # Deterministic parameters (PyTorch-style uniform(-k, k), k=1/sqrt(fan_in)).
    fan_in = IN_CH * KH * KW
    kb = 1.0 / (fan_in ** 0.5)
    w = jax.random.uniform(kwk, (OUT_CH, IN_CH, KH, KW), jnp.float32, -kb, kb)
    b = jax.random.uniform(kbk, (OUT_CH,), jnp.float32, -kb, kb)

    # Primary small case consistent with the module: N=2, C=3, 16x16 images.
    N, H, Wd = 2, 16, 16
    x = jax.random.normal(kx, (N, IN_CH, H, Wd), dtype=jnp.float32)
    out = jax.block_until_ready(conv2d_pallas(x, w, b))
    ref = _reference_conv(x, w, b)
    assert out.shape == (N, OUT_CH, H - KH + 1, Wd - KW + 1)
    assert out.dtype == jnp.float32
    assert jnp.allclose(out, ref, atol=1e-5, rtol=1e-5)

    # Also exercise the batch-on-lanes path: single-tile (OH split in two
    # parallel blocks) and multi-tile (two batch grid steps).
    for n_big in (64, 256):
        xb = jax.random.normal(jax.random.PRNGKey(n_big),
                               (n_big, IN_CH, H, Wd), dtype=jnp.float32)
        ob = jax.block_until_ready(conv2d_pallas(xb, w, b))
        assert jnp.allclose(ob, _reference_conv(xb, w, b), atol=1e-5, rtol=1e-5)

    print("KERNEL_OK")
</pallas_src>

<mosaic_0001>
module attributes {stable_mosaic.version = 11 : i64} {
  func.func @_conv_kernel_lane_fold(%arg0: i32, %arg1: memref<3x16x32xf32, #tpu.memory_space<vmem>>, %arg2: memref<162xf32, #tpu.memory_space<smem>>, %arg3: memref<6xf32, #tpu.memory_space<smem>>, %arg4: memref<6x14x28xf32, #tpu.memory_space<vmem>>) attributes {dimension_semantics = [#tpu.dimension_semantics<arbitrary>], iteration_bounds = array<i64: 1>, scalar_prefetch = 0 : i64, scratch_operands = 0 : i64, tpu.core_type = #tpu.core_type<tc>, window_params = [{pipeline_mode = #tpu.pipeline_mode<synchronous>, transform_indices = @transform_0, window_bounds = array<i64: 3, 16, 32>}, {transform_indices = @transform_1, window_bounds = array<i64: 162>}, {transform_indices = @transform_2, window_bounds = array<i64: 6>}, {pipeline_mode = #tpu.pipeline_mode<synchronous>, transform_indices = @transform_3, window_bounds = array<i64: 6, 14, 28>}]} {
    %c0 = arith.constant 0 : index
    %0 = memref.load %arg2[%c0] : memref<162xf32, #tpu.memory_space<smem>>
    %c1 = arith.constant 1 : index
    %1 = memref.load %arg2[%c1] : memref<162xf32, #tpu.memory_space<smem>>
    %c2 = arith.constant 2 : index
    %2 = memref.load %arg2[%c2] : memref<162xf32, #tpu.memory_space<smem>>
    %c3 = arith.constant 3 : index
    %3 = memref.load %arg2[%c3] : memref<162xf32, #tpu.memory_space<smem>>
    %c4 = arith.constant 4 : index
    %4 = memref.load %arg2[%c4] : memref<162xf32, #tpu.memory_space<smem>>
    %c5 = arith.constant 5 : index
    %5 = memref.load %arg2[%c5] : memref<162xf32, #tpu.memory_space<smem>>
    %c6 = arith.constant 6 : index
    %6 = memref.load %arg2[%c6] : memref<162xf32, #tpu.memory_space<smem>>
    %c7 = arith.constant 7 : index
    %7 = memref.load %arg2[%c7] : memref<162xf32, #tpu.memory_space<smem>>
    %c8 = arith.constant 8 : index
    %8 = memref.load %arg2[%c8] : memref<162xf32, #tpu.memory_space<smem>>
    %c9 = arith.constant 9 : index
    %9 = memref.load %arg2[%c9] : memref<162xf32, #tpu.memory_space<smem>>
    %c10 = arith.constant 10 : index
    %10 = memref.load %arg2[%c10] : memref<162xf32, #tpu.memory_space<smem>>
    %c11 = arith.constant 11 : index
    %11 = memref.load %arg2[%c11] : memref<162xf32, #tpu.memory_space<smem>>
    %c12 = arith.constant 12 : index
    %12 = memref.load %arg2[%c12] : memref<162xf32, #tpu.memory_space<smem>>
    %c13 = arith.constant 13 : index
    %13 = memref.load %arg2[%c13] : memref<162xf32, #tpu.memory_space<smem>>
    %c14 = arith.constant 14 : index
    %14 = memref.load %arg2[%c14] : memref<162xf32, #tpu.memory_space<smem>>
    %c15 = arith.constant 15 : index
    %15 = memref.load %arg2[%c15] : memref<162xf32, #tpu.memory_space<smem>>
    %c16 = arith.constant 16 : index
    %16 = memref.load %arg2[%c16] : memref<162xf32, #tpu.memory_space<smem>>
    %c17 = arith.constant 17 : index
    %17 = memref.load %arg2[%c17] : memref<162xf32, #tpu.memory_space<smem>>
    %c18 = arith.constant 18 : index
    %18 = memref.load %arg2[%c18] : memref<162xf32, #tpu.memory_space<smem>>
    %c19 = arith.constant 19 : index
    %19 = memref.load %arg2[%c19] : memref<162xf32, #tpu.memory_space<smem>>
    %c20 = arith.constant 20 : index
    %20 = memref.load %arg2[%c20] : memref<162xf32, #tpu.memory_space<smem>>
    %c21 = arith.constant 21 : index
    %21 = memref.load %arg2[%c21] : memref<162xf32, #tpu.memory_space<smem>>
    %c22 = arith.constant 22 : index
    %22 = memref.load %arg2[%c22] : memref<162xf32, #tpu.memory_space<smem>>
    %c23 = arith.constant 23 : index
    %23 = memref.load %arg2[%c23] : memref<162xf32, #tpu.memory_space<smem>>
    %c24 = arith.constant 24 : index
    %24 = memref.load %arg2[%c24] : memref<162xf32, #tpu.memory_space<smem>>
    %c25 = arith.constant 25 : index
    %25 = memref.load %arg2[%c25] : memref<162xf32, #tpu.memory_space<smem>>
    %c26 = arith.constant 26 : index
    %26 = memref.load %arg2[%c26] : memref<162xf32, #tpu.memory_space<smem>>
    %c27 = arith.constant 27 : index
    %27 = memref.load %arg2[%c27] : memref<162xf32, #tpu.memory_space<smem>>
    %c28 = arith.constant 28 : index
    %28 = memref.load %arg2[%c28] : memref<162xf32, #tpu.memory_space<smem>>
    %c29 = arith.constant 29 : index
    %29 = memref.load %arg2[%c29] : memref<162xf32, #tpu.memory_space<smem>>
    %c30 = arith.constant 30 : index
    %30 = memref.load %arg2[%c30] : memref<162xf32, #tpu.memory_space<smem>>
    %c31 = arith.constant 31 : index
    %31 = memref.load %arg2[%c31] : memref<162xf32, #tpu.memory_space<smem>>
    %c32 = arith.constant 32 : index
    %32 = memref.load %arg2[%c32] : memref<162xf32, #tpu.memory_space<smem>>
    %c33 = arith.constant 33 : index
    %33 = memref.load %arg2[%c33] : memref<162xf32, #tpu.memory_space<smem>>
    %c34 = arith.constant 34 : index
    %34 = memref.load %arg2[%c34] : memref<162xf32, #tpu.memory_space<smem>>
    %c35 = arith.constant 35 : index
    %35 = memref.load %arg2[%c35] : memref<162xf32, #tpu.memory_space<smem>>
    %c36 = arith.constant 36 : index
    %36 = memref.load %arg2[%c36] : memref<162xf32, #tpu.memory_space<smem>>
    %c37 = arith.constant 37 : index
    %37 = memref.load %arg2[%c37] : memref<162xf32, #tpu.memory_space<smem>>
    %c38 = arith.constant 38 : index
    %38 = memref.load %arg2[%c38] : memref<162xf32, #tpu.memory_space<smem>>
    %c39 = arith.constant 39 : index
    %39 = memref.load %arg2[%c39] : memref<162xf32, #tpu.memory_space<smem>>
    %c40 = arith.constant 40 : index
    %40 = memref.load %arg2[%c40] : memref<162xf32, #tpu.memory_space<smem>>
    %c41 = arith.constant 41 : index
    %41 = memref.load %arg2[%c41] : memref<162xf32, #tpu.memory_space<smem>>
    %c42 = arith.constant 42 : index
    %42 = memref.load %arg2[%c42] : memref<162xf32, #tpu.memory_space<smem>>
    %c43 = arith.constant 43 : index
    %43 = memref.load %arg2[%c43] : memref<162xf32, #tpu.memory_space<smem>>
    %c44 = arith.constant 44 : index
    %44 = memref.load %arg2[%c44] : memref<162xf32, #tpu.memory_space<smem>>
    %c45 = arith.constant 45 : index
    %45 = memref.load %arg2[%c45] : memref<162xf32, #tpu.memory_space<smem>>
    %c46 = arith.constant 46 : index
    %46 = memref.load %arg2[%c46] : memref<162xf32, #tpu.memory_space<smem>>
    %c47 = arith.constant 47 : index
    %47 = memref.load %arg2[%c47] : memref<162xf32, #tpu.memory_space<smem>>
    %c48 = arith.constant 48 : index
    %48 = memref.load %arg2[%c48] : memref<162xf32, #tpu.memory_space<smem>>
    %c49 = arith.constant 49 : index
    %49 = memref.load %arg2[%c49] : memref<162xf32, #tpu.memory_space<smem>>
    %c50 = arith.constant 50 : index
    %50 = memref.load %arg2[%c50] : memref<162xf32, #tpu.memory_space<smem>>
    %c51 = arith.constant 51 : index
    %51 = memref.load %arg2[%c51] : memref<162xf32, #tpu.memory_space<smem>>
    %c52 = arith.constant 52 : index
    %52 = memref.load %arg2[%c52] : memref<162xf32, #tpu.memory_space<smem>>
    %c53 = arith.constant 53 : index
    %53 = memref.load %arg2[%c53] : memref<162xf32, #tpu.memory_space<smem>>
    %c54 = arith.constant 54 : index
    %54 = memref.load %arg2[%c54] : memref<162xf32, #tpu.memory_space<smem>>
    %c55 = arith.constant 55 : index
    %55 = memref.load %arg2[%c55] : memref<162xf32, #tpu.memory_space<smem>>
    %c56 = arith.constant 56 : index
    %56 = memref.load %arg2[%c56] : memref<162xf32, #tpu.memory_space<smem>>
    %c57 = arith.constant 57 : index
    %57 = memref.load %arg2[%c57] : memref<162xf32, #tpu.memory_space<smem>>
    %c58 = arith.constant 58 : index
    %58 = memref.load %arg2[%c58] : memref<162xf32, #tpu.memory_space<smem>>
    %c59 = arith.constant 59 : index
    %59 = memref.load %arg2[%c59] : memref<162xf32, #tpu.memory_space<smem>>
    %c60 = arith.constant 60 : index
    %60 = memref.load %arg2[%c60] : memref<162xf32, #tpu.memory_space<smem>>
    %c61 = arith.constant 61 : index
    %61 = memref.load %arg2[%c61] : memref<162xf32, #tpu.memory_space<smem>>
    %c62 = arith.constant 62 : index
    %62 = memref.load %arg2[%c62] : memref<162xf32, #tpu.memory_space<smem>>
    %c63 = arith.constant 63 : index
    %63 = memref.load %arg2[%c63] : memref<162xf32, #tpu.memory_space<smem>>
    %c64 = arith.constant 64 : index
    %64 = memref.load %arg2[%c64] : memref<162xf32, #tpu.memory_space<smem>>
    %c65 = arith.constant 65 : index
    %65 = memref.load %arg2[%c65] : memref<162xf32, #tpu.memory_space<smem>>
    %c66 = arith.constant 66 : index
    %66 = memref.load %arg2[%c66] : memref<162xf32, #tpu.memory_space<smem>>
    %c67 = arith.constant 67 : index
    %67 = memref.load %arg2[%c67] : memref<162xf32, #tpu.memory_space<smem>>
    %c68 = arith.constant 68 : index
    %68 = memref.load %arg2[%c68] : memref<162xf32, #tpu.memory_space<smem>>
    %c69 = arith.constant 69 : index
    %69 = memref.load %arg2[%c69] : memref<162xf32, #tpu.memory_space<smem>>
    %c70 = arith.constant 70 : index
    %70 = memref.load %arg2[%c70] : memref<162xf32, #tpu.memory_space<smem>>
    %c71 = arith.constant 71 : index
    %71 = memref.load %arg2[%c71] : memref<162xf32, #tpu.memory_space<smem>>
    %c72 = arith.constant 72 : index
    %72 = memref.load %arg2[%c72] : memref<162xf32, #tpu.memory_space<smem>>
    %c73 = arith.constant 73 : index
    %73 = memref.load %arg2[%c73] : memref<162xf32, #tpu.memory_space<smem>>
    %c74 = arith.constant 74 : index
    %74 = memref.load %arg2[%c74] : memref<162xf32, #tpu.memory_space<smem>>
    %c75 = arith.constant 75 : index
    %75 = memref.load %arg2[%c75] : memref<162xf32, #tpu.memory_space<smem>>
    %c76 = arith.constant 76 : index
    %76 = memref.load %arg2[%c76] : memref<162xf32, #tpu.memory_space<smem>>
    %c77 = arith.constant 77 : index
    %77 = memref.load %arg2[%c77] : memref<162xf32, #tpu.memory_space<smem>>
    %c78 = arith.constant 78 : index
    %78 = memref.load %arg2[%c78] : memref<162xf32, #tpu.memory_space<smem>>
    %c79 = arith.constant 79 : index
    %79 = memref.load %arg2[%c79] : memref<162xf32, #tpu.memory_space<smem>>
    %c80 = arith.constant 80 : index
    %80 = memref.load %arg2[%c80] : memref<162xf32, #tpu.memory_space<smem>>
    %c81 = arith.constant 81 : index
    %81 = memref.load %arg2[%c81] : memref<162xf32, #tpu.memory_space<smem>>
    %c82 = arith.constant 82 : index
    %82 = memref.load %arg2[%c82] : memref<162xf32, #tpu.memory_space<smem>>
    %c83 = arith.constant 83 : index
    %83 = memref.load %arg2[%c83] : memref<162xf32, #tpu.memory_space<smem>>
    %c84 = arith.constant 84 : index
    %84 = memref.load %arg2[%c84] : memref<162xf32, #tpu.memory_space<smem>>
    %c85 = arith.constant 85 : index
    %85 = memref.load %arg2[%c85] : memref<162xf32, #tpu.memory_space<smem>>
    %c86 = arith.constant 86 : index
    %86 = memref.load %arg2[%c86] : memref<162xf32, #tpu.memory_space<smem>>
    %c87 = arith.constant 87 : index
    %87 = memref.load %arg2[%c87] : memref<162xf32, #tpu.memory_space<smem>>
    %c88 = arith.constant 88 : index
    %88 = memref.load %arg2[%c88] : memref<162xf32, #tpu.memory_space<smem>>
    %c89 = arith.constant 89 : index
    %89 = memref.load %arg2[%c89] : memref<162xf32, #tpu.memory_space<smem>>
    %c90 = arith.constant 90 : index
    %90 = memref.load %arg2[%c90] : memref<162xf32, #tpu.memory_space<smem>>
    %c91 = arith.constant 91 : index
    %91 = memref.load %arg2[%c91] : memref<162xf32, #tpu.memory_space<smem>>
    %c92 = arith.constant 92 : index
    %92 = memref.load %arg2[%c92] : memref<162xf32, #tpu.memory_space<smem>>
    %c93 = arith.constant 93 : index
    %93 = memref.load %arg2[%c93] : memref<162xf32, #tpu.memory_space<smem>>
    %c94 = arith.constant 94 : index
    %94 = memref.load %arg2[%c94] : memref<162xf32, #tpu.memory_space<smem>>
    %c95 = arith.constant 95 : index
    %95 = memref.load %arg2[%c95] : memref<162xf32, #tpu.memory_space<smem>>
    %c96 = arith.constant 96 : index
    %96 = memref.load %arg2[%c96] : memref<162xf32, #tpu.memory_space<smem>>
    %c97 = arith.constant 97 : index
    %97 = memref.load %arg2[%c97] : memref<162xf32, #tpu.memory_space<smem>>
    %c98 = arith.constant 98 : index
    %98 = memref.load %arg2[%c98] : memref<162xf32, #tpu.memory_space<smem>>
    %c99 = arith.constant 99 : index
    %99 = memref.load %arg2[%c99] : memref<162xf32, #tpu.memory_space<smem>>
    %c100 = arith.constant 100 : index
    %100 = memref.load %arg2[%c100] : memref<162xf32, #tpu.memory_space<smem>>
    %c101 = arith.constant 101 : index
    %101 = memref.load %arg2[%c101] : memref<162xf32, #tpu.memory_space<smem>>
    %c102 = arith.constant 102 : index
    %102 = memref.load %arg2[%c102] : memref<162xf32, #tpu.memory_space<smem>>
    %c103 = arith.constant 103 : index
    %103 = memref.load %arg2[%c103] : memref<162xf32, #tpu.memory_space<smem>>
    %c104 = arith.constant 104 : index
    %104 = memref.load %arg2[%c104] : memref<162xf32, #tpu.memory_space<smem>>
    %c105 = arith.constant 105 : index
    %105 = memref.load %arg2[%c105] : memref<162xf32, #tpu.memory_space<smem>>
    %c106 = arith.constant 106 : index
    %106 = memref.load %arg2[%c106] : memref<162xf32, #tpu.memory_space<smem>>
    %c107 = arith.constant 107 : index
    %107 = memref.load %arg2[%c107] : memref<162xf32, #tpu.memory_space<smem>>
    %c108 = arith.constant 108 : index
    %108 = memref.load %arg2[%c108] : memref<162xf32, #tpu.memory_space<smem>>
    %c109 = arith.constant 109 : index
    %109 = memref.load %arg2[%c109] : memref<162xf32, #tpu.memory_space<smem>>
    %c110 = arith.constant 110 : index
    %110 = memref.load %arg2[%c110] : memref<162xf32, #tpu.memory_space<smem>>
    %c111 = arith.constant 111 : index
    %111 = memref.load %arg2[%c111] : memref<162xf32, #tpu.memory_space<smem>>
    %c112 = arith.constant 112 : index
    %112 = memref.load %arg2[%c112] : memref<162xf32, #tpu.memory_space<smem>>
    %c113 = arith.constant 113 : index
    %113 = memref.load %arg2[%c113] : memref<162xf32, #tpu.memory_space<smem>>
    %c114 = arith.constant 114 : index
    %114 = memref.load %arg2[%c114] : memref<162xf32, #tpu.memory_space<smem>>
    %c115 = arith.constant 115 : index
    %115 = memref.load %arg2[%c115] : memref<162xf32, #tpu.memory_space<smem>>
    %c116 = arith.constant 116 : index
    %116 = memref.load %arg2[%c116] : memref<162xf32, #tpu.memory_space<smem>>
    %c117 = arith.constant 117 : index
    %117 = memref.load %arg2[%c117] : memref<162xf32, #tpu.memory_space<smem>>
    %c118 = arith.constant 118 : index
    %118 = memref.load %arg2[%c118] : memref<162xf32, #tpu.memory_space<smem>>
    %c119 = arith.constant 119 : index
    %119 = memref.load %arg2[%c119] : memref<162xf32, #tpu.memory_space<smem>>
    %c120 = arith.constant 120 : index
    %120 = memref.load %arg2[%c120] : memref<162xf32, #tpu.memory_space<smem>>
    %c121 = arith.constant 121 : index
    %121 = memref.load %arg2[%c121] : memref<162xf32, #tpu.memory_space<smem>>
    %c122 = arith.constant 122 : index
    %122 = memref.load %arg2[%c122] : memref<162xf32, #tpu.memory_space<smem>>
    %c123 = arith.constant 123 : index
    %123 = memref.load %arg2[%c123] : memref<162xf32, #tpu.memory_space<smem>>
    %c124 = arith.constant 124 : index
    %124 = memref.load %arg2[%c124] : memref<162xf32, #tpu.memory_space<smem>>
    %c125 = arith.constant 125 : index
    %125 = memref.load %arg2[%c125] : memref<162xf32, #tpu.memory_space<smem>>
    %c126 = arith.constant 126 : index
    %126 = memref.load %arg2[%c126] : memref<162xf32, #tpu.memory_space<smem>>
    %c127 = arith.constant 127 : index
    %127 = memref.load %arg2[%c127] : memref<162xf32, #tpu.memory_space<smem>>
    %c128 = arith.constant 128 : index
    %128 = memref.load %arg2[%c128] : memref<162xf32, #tpu.memory_space<smem>>
    %c129 = arith.constant 129 : index
    %129 = memref.load %arg2[%c129] : memref<162xf32, #tpu.memory_space<smem>>
    %c130 = arith.constant 130 : index
    %130 = memref.load %arg2[%c130] : memref<162xf32, #tpu.memory_space<smem>>
    %c131 = arith.constant 131 : index
    %131 = memref.load %arg2[%c131] : memref<162xf32, #tpu.memory_space<smem>>
    %c132 = arith.constant 132 : index
    %132 = memref.load %arg2[%c132] : memref<162xf32, #tpu.memory_space<smem>>
    %c133 = arith.constant 133 : index
    %133 = memref.load %arg2[%c133] : memref<162xf32, #tpu.memory_space<smem>>
    %c134 = arith.constant 134 : index
    %134 = memref.load %arg2[%c134] : memref<162xf32, #tpu.memory_space<smem>>
    %c135 = arith.constant 135 : index
    %135 = memref.load %arg2[%c135] : memref<162xf32, #tpu.memory_space<smem>>
    %c136 = arith.constant 136 : index
    %136 = memref.load %arg2[%c136] : memref<162xf32, #tpu.memory_space<smem>>
    %c137 = arith.constant 137 : index
    %137 = memref.load %arg2[%c137] : memref<162xf32, #tpu.memory_space<smem>>
    %c138 = arith.constant 138 : index
    %138 = memref.load %arg2[%c138] : memref<162xf32, #tpu.memory_space<smem>>
    %c139 = arith.constant 139 : index
    %139 = memref.load %arg2[%c139] : memref<162xf32, #tpu.memory_space<smem>>
    %c140 = arith.constant 140 : index
    %140 = memref.load %arg2[%c140] : memref<162xf32, #tpu.memory_space<smem>>
    %c141 = arith.constant 141 : index
    %141 = memref.load %arg2[%c141] : memref<162xf32, #tpu.memory_space<smem>>
    %c142 = arith.constant 142 : index
    %142 = memref.load %arg2[%c142] : memref<162xf32, #tpu.memory_space<smem>>
    %c143 = arith.constant 143 : index
    %143 = memref.load %arg2[%c143] : memref<162xf32, #tpu.memory_space<smem>>
    %c144 = arith.constant 144 : index
    %144 = memref.load %arg2[%c144] : memref<162xf32, #tpu.memory_space<smem>>
    %c145 = arith.constant 145 : index
    %145 = memref.load %arg2[%c145] : memref<162xf32, #tpu.memory_space<smem>>
    %c146 = arith.constant 146 : index
    %146 = memref.load %arg2[%c146] : memref<162xf32, #tpu.memory_space<smem>>
    %c147 = arith.constant 147 : index
    %147 = memref.load %arg2[%c147] : memref<162xf32, #tpu.memory_space<smem>>
    %c148 = arith.constant 148 : index
    %148 = memref.load %arg2[%c148] : memref<162xf32, #tpu.memory_space<smem>>
    %c149 = arith.constant 149 : index
    %149 = memref.load %arg2[%c149] : memref<162xf32, #tpu.memory_space<smem>>
    %c150 = arith.constant 150 : index
    %150 = memref.load %arg2[%c150] : memref<162xf32, #tpu.memory_space<smem>>
    %c151 = arith.constant 151 : index
    %151 = memref.load %arg2[%c151] : memref<162xf32, #tpu.memory_space<smem>>
    %c152 = arith.constant 152 : index
    %152 = memref.load %arg2[%c152] : memref<162xf32, #tpu.memory_space<smem>>
    %c153 = arith.constant 153 : index
    %153 = memref.load %arg2[%c153] : memref<162xf32, #tpu.memory_space<smem>>
    %c154 = arith.constant 154 : index
    %154 = memref.load %arg2[%c154] : memref<162xf32, #tpu.memory_space<smem>>
    %c155 = arith.constant 155 : index
    %155 = memref.load %arg2[%c155] : memref<162xf32, #tpu.memory_space<smem>>
    %c156 = arith.constant 156 : index
    %156 = memref.load %arg2[%c156] : memref<162xf32, #tpu.memory_space<smem>>
    %c157 = arith.constant 157 : index
    %157 = memref.load %arg2[%c157] : memref<162xf32, #tpu.memory_space<smem>>
    %c158 = arith.constant 158 : index
    %158 = memref.load %arg2[%c158] : memref<162xf32, #tpu.memory_space<smem>>
    %c159 = arith.constant 159 : index
    %159 = memref.load %arg2[%c159] : memref<162xf32, #tpu.memory_space<smem>>
    %c160 = arith.constant 160 : index
    %160 = memref.load %arg2[%c160] : memref<162xf32, #tpu.memory_space<smem>>
    %c161 = arith.constant 161 : index
    %161 = memref.load %arg2[%c161] : memref<162xf32, #tpu.memory_space<smem>>
    %c0_0 = arith.constant 0 : index
    %162 = memref.load %arg3[%c0_0] : memref<6xf32, #tpu.memory_space<smem>>
    %c1_1 = arith.constant 1 : index
    %163 = memref.load %arg3[%c1_1] : memref<6xf32, #tpu.memory_space<smem>>
    %c2_2 = arith.constant 2 : index
    %164 = memref.load %arg3[%c2_2] : memref<6xf32, #tpu.memory_space<smem>>
    %c3_3 = arith.constant 3 : index
    %165 = memref.load %arg3[%c3_3] : memref<6xf32, #tpu.memory_space<smem>>
    %c4_4 = arith.constant 4 : index
    %166 = memref.load %arg3[%c4_4] : memref<6xf32, #tpu.memory_space<smem>>
    %c5_5 = arith.constant 5 : index
    %167 = memref.load %arg3[%c5_5] : memref<6xf32, #tpu.memory_space<smem>>
    %cst = arith.constant 0.000000e+00 : f32
    %168 = vector.broadcast %cst : f32 to vector<14x28xf32>
    %cst_6 = arith.constant 0.000000e+00 : f32
    %169 = vector.broadcast %cst_6 : f32 to vector<14x28xf32>
    %cst_7 = arith.constant 0.000000e+00 : f32
    %170 = vector.broadcast %cst_7 : f32 to vector<14x28xf32>
    %cst_8 = arith.constant 0.000000e+00 : f32
    %171 = vector.broadcast %cst_8 : f32 to vector<14x28xf32>
    %cst_9 = arith.constant 0.000000e+00 : f32
    %172 = vector.broadcast %cst_9 : f32 to vector<14x28xf32>
    %cst_10 = arith.constant 0.000000e+00 : f32
    %173 = vector.broadcast %cst_10 : f32 to vector<14x28xf32>
    %c0_11 = arith.constant 0 : index
    %c0_12 = arith.constant 0 : index
    %c0_13 = arith.constant 0 : index
    %174 = vector.load %arg1[%c0_11, %c0_12, %c0_13] : memref<3x16x32xf32, #tpu.memory_space<vmem>>, vector<1x14x32xf32>
    %175 = vector.shape_cast %174 : vector<1x14x32xf32> to vector<14x32xf32>
    %176 = vector.extract_strided_slice %175 {offsets = [0, 0], sizes = [14, 28], strides = [1, 1]} : vector<14x32xf32> to vector<14x28xf32>
    %177 = vector.broadcast %0 : f32 to vector<14x28xf32>
    %178 = arith.mulf %177, %176 : vector<14x28xf32>
    %179 = arith.addf %168, %178 : vector<14x28xf32>
    %180 = vector.broadcast %27 : f32 to vector<14x28xf32>
    %181 = arith.mulf %180, %176 : vector<14x28xf32>
    %182 = arith.addf %169, %181 : vector<14x28xf32>
    %183 = vector.broadcast %54 : f32 to vector<14x28xf32>
    %184 = arith.mulf %183, %176 : vector<14x28xf32>
    %185 = arith.addf %170, %184 : vector<14x28xf32>
    %186 = vector.broadcast %81 : f32 to vector<14x28xf32>
    %187 = arith.mulf %186, %176 : vector<14x28xf32>
    %188 = arith.addf %171, %187 : vector<14x28xf32>
    %189 = vector.broadcast %108 : f32 to vector<14x28xf32>
    %190 = arith.mulf %189, %176 : vector<14x28xf32>
    %191 = arith.addf %172, %190 : vector<14x28xf32>
    %192 = vector.broadcast %135 : f32 to vector<14x28xf32>
    %193 = arith.mulf %192, %176 : vector<14x28xf32>
    %194 = arith.addf %173, %193 : vector<14x28xf32>
    %195 = vector.extract_strided_slice %175 {offsets = [0, 2], sizes = [14, 28], strides = [1, 1]} : vector<14x32xf32> to vector<14x28xf32>
    %196 = vector.broadcast %1 : f32 to vector<14x28xf32>
    %197 = arith.mulf %196, %195 : vector<14x28xf32>
    %198 = arith.addf %179, %197 : vector<14x28xf32>
    %199 = vector.broadcast %28 : f32 to vector<14x28xf32>
    %200 = arith.mulf %199, %195 : vector<14x28xf32>
    %201 = arith.addf %182, %200 : vector<14x28xf32>
    %202 = vector.broadcast %55 : f32 to vector<14x28xf32>
    %203 = arith.mulf %202, %195 : vector<14x28xf32>
    %204 = arith.addf %185, %203 : vector<14x28xf32>
    %205 = vector.broadcast %82 : f32 to vector<14x28xf32>
    %206 = arith.mulf %205, %195 : vector<14x28xf32>
    %207 = arith.addf %188, %206 : vector<14x28xf32>
    %208 = vector.broadcast %109 : f32 to vector<14x28xf32>
    %209 = arith.mulf %208, %195 : vector<14x28xf32>
    %210 = arith.addf %191, %209 : vector<14x28xf32>
    %211 = vector.broadcast %136 : f32 to vector<14x28xf32>
    %212 = arith.mulf %211, %195 : vector<14x28xf32>
    %213 = arith.addf %194, %212 : vector<14x28xf32>
    %214 = vector.extract_strided_slice %175 {offsets = [0, 4], sizes = [14, 28], strides = [1, 1]} : vector<14x32xf32> to vector<14x28xf32>
    %215 = vector.broadcast %2 : f32 to vector<14x28xf32>
    %216 = arith.mulf %215, %214 : vector<14x28xf32>
    %217 = arith.addf %198, %216 : vector<14x28xf32>
    %218 = vector.broadcast %29 : f32 to vector<14x28xf32>
    %219 = arith.mulf %218, %214 : vector<14x28xf32>
    %220 = arith.addf %201, %219 : vector<14x28xf32>
    %221 = vector.broadcast %56 : f32 to vector<14x28xf32>
    %222 = arith.mulf %221, %214 : vector<14x28xf32>
    %223 = arith.addf %204, %222 : vector<14x28xf32>
    %224 = vector.broadcast %83 : f32 to vector<14x28xf32>
    %225 = arith.mulf %224, %214 : vector<14x28xf32>
    %226 = arith.addf %207, %225 : vector<14x28xf32>
    %227 = vector.broadcast %110 : f32 to vector<14x28xf32>
    %228 = arith.mulf %227, %214 : vector<14x28xf32>
    %229 = arith.addf %210, %228 : vector<14x28xf32>
    %230 = vector.broadcast %137 : f32 to vector<14x28xf32>
    %231 = arith.mulf %230, %214 : vector<14x28xf32>
    %232 = arith.addf %213, %231 : vector<14x28xf32>
    %c0_14 = arith.constant 0 : index
    %c1_15 = arith.constant 1 : index
    %c0_16 = arith.constant 0 : index
    %233 = vector.load %arg1[%c0_14, %c1_15, %c0_16] : memref<3x16x32xf32, #tpu.memory_space<vmem>>, vector<1x14x32xf32>
    %234 = vector.shape_cast %233 : vector<1x14x32xf32> to vector<14x32xf32>
    %235 = vector.extract_strided_slice %234 {offsets = [0, 0], sizes = [14, 28], strides = [1, 1]} : vector<14x32xf32> to vector<14x28xf32>
    %236 = vector.broadcast %3 : f32 to vector<14x28xf32>
    %237 = arith.mulf %236, %235 : vector<14x28xf32>
    %238 = arith.addf %217, %237 : vector<14x28xf32>
    %239 = vector.broadcast %30 : f32 to vector<14x28xf32>
    %240 = arith.mulf %239, %235 : vector<14x28xf32>
    %241 = arith.addf %220, %240 : vector<14x28xf32>
    %242 = vector.broadcast %57 : f32 to vector<14x28xf32>
    %243 = arith.mulf %242, %235 : vector<14x28xf32>
    %244 = arith.addf %223, %243 : vector<14x28xf32>
    %245 = vector.broadcast %84 : f32 to vector<14x28xf32>
    %246 = arith.mulf %245, %235 : vector<14x28xf32>
    %247 = arith.addf %226, %246 : vector<14x28xf32>
    %248 = vector.broadcast %111 : f32 to vector<14x28xf32>
    %249 = arith.mulf %248, %235 : vector<14x28xf32>
    %250 = arith.addf %229, %249 : vector<14x28xf32>
    %251 = vector.broadcast %138 : f32 to vector<14x28xf32>
    %252 = arith.mulf %251, %235 : vector<14x28xf32>
    %253 = arith.addf %232, %252 : vector<14x28xf32>
    %254 = vector.extract_strided_slice %234 {offsets = [0, 2], sizes = [14, 28], strides = [1, 1]} : vector<14x32xf32> to vector<14x28xf32>
    %255 = vector.broadcast %4 : f32 to vector<14x28xf32>
    %256 = arith.mulf %255, %254 : vector<14x28xf32>
    %257 = arith.addf %238, %256 : vector<14x28xf32>
    %258 = vector.broadcast %31 : f32 to vector<14x28xf32>
    %259 = arith.mulf %258, %254 : vector<14x28xf32>
    %260 = arith.addf %241, %259 : vector<14x28xf32>
    %261 = vector.broadcast %58 : f32 to vector<14x28xf32>
    %262 = arith.mulf %261, %254 : vector<14x28xf32>
    %263 = arith.addf %244, %262 : vector<14x28xf32>
    %264 = vector.broadcast %85 : f32 to vector<14x28xf32>
    %265 = arith.mulf %264, %254 : vector<14x28xf32>
    %266 = arith.addf %247, %265 : vector<14x28xf32>
    %267 = vector.broadcast %112 : f32 to vector<14x28xf32>
    %268 = arith.mulf %267, %254 : vector<14x28xf32>
    %269 = arith.addf %250, %268 : vector<14x28xf32>
    %270 = vector.broadcast %139 : f32 to vector<14x28xf32>
    %271 = arith.mulf %270, %254 : vector<14x28xf32>
    %272 = arith.addf %253, %271 : vector<14x28xf32>
    %273 = vector.extract_strided_slice %234 {offsets = [0, 4], sizes = [14, 28], strides = [1, 1]} : vector<14x32xf32> to vector<14x28xf32>
    %274 = vector.broadcast %5 : f32 to vector<14x28xf32>
    %275 = arith.mulf %274, %273 : vector<14x28xf32>
    %276 = arith.addf %257, %275 : vector<14x28xf32>
    %277 = vector.broadcast %32 : f32 to vector<14x28xf32>
    %278 = arith.mulf %277, %273 : vector<14x28xf32>
    %279 = arith.addf %260, %278 : vector<14x28xf32>
    %280 = vector.broadcast %59 : f32 to vector<14x28xf32>
    %281 = arith.mulf %280, %273 : vector<14x28xf32>
    %282 = arith.addf %263, %281 : vector<14x28xf32>
    %283 = vector.broadcast %86 : f32 to vector<14x28xf32>
    %284 = arith.mulf %283, %273 : vector<14x28xf32>
    %285 = arith.addf %266, %284 : vector<14x28xf32>
    %286 = vector.broadcast %113 : f32 to vector<14x28xf32>
    %287 = arith.mulf %286, %273 : vector<14x28xf32>
    %288 = arith.addf %269, %287 : vector<14x28xf32>
    %289 = vector.broadcast %140 : f32 to vector<14x28xf32>
    %290 = arith.mulf %289, %273 : vector<14x28xf32>
    %291 = arith.addf %272, %290 : vector<14x28xf32>
    %c0_17 = arith.constant 0 : index
    %c2_18 = arith.constant 2 : index
    %c0_19 = arith.constant 0 : index
    %292 = vector.load %arg1[%c0_17, %c2_18, %c0_19] : memref<3x16x32xf32, #tpu.memory_space<vmem>>, vector<1x14x32xf32>
    %293 = vector.shape_cast %292 : vector<1x14x32xf32> to vector<14x32xf32>
    %294 = vector.extract_strided_slice %293 {offsets = [0, 0], sizes = [14, 28], strides = [1, 1]} : vector<14x32xf32> to vector<14x28xf32>
    %295 = vector.broadcast %6 : f32 to vector<14x28xf32>
    %296 = arith.mulf %295, %294 : vector<14x28xf32>
    %297 = arith.addf %276, %296 : vector<14x28xf32>
    %298 = vector.broadcast %33 : f32 to vector<14x28xf32>
    %299 = arith.mulf %298, %294 : vector<14x28xf32>
    %300 = arith.addf %279, %299 : vector<14x28xf32>
    %301 = vector.broadcast %60 : f32 to vector<14x28xf32>
    %302 = arith.mulf %301, %294 : vector<14x28xf32>
    %303 = arith.addf %282, %302 : vector<14x28xf32>
    %304 = vector.broadcast %87 : f32 to vector<14x28xf32>
    %305 = arith.mulf %304, %294 : vector<14x28xf32>
    %306 = arith.addf %285, %305 : vector<14x28xf32>
    %307 = vector.broadcast %114 : f32 to vector<14x28xf32>
    %308 = arith.mulf %307, %294 : vector<14x28xf32>
    %309 = arith.addf %288, %308 : vector<14x28xf32>
    %310 = vector.broadcast %141 : f32 to vector<14x28xf32>
    %311 = arith.mulf %310, %294 : vector<14x28xf32>
    %312 = arith.addf %291, %311 : vector<14x28xf32>
    %313 = vector.extract_strided_slice %293 {offsets = [0, 2], sizes = [14, 28], strides = [1, 1]} : vector<14x32xf32> to vector<14x28xf32>
    %314 = vector.broadcast %7 : f32 to vector<14x28xf32>
    %315 = arith.mulf %314, %313 : vector<14x28xf32>
    %316 = arith.addf %297, %315 : vector<14x28xf32>
    %317 = vector.broadcast %34 : f32 to vector<14x28xf32>
    %318 = arith.mulf %317, %313 : vector<14x28xf32>
    %319 = arith.addf %300, %318 : vector<14x28xf32>
    %320 = vector.broadcast %61 : f32 to vector<14x28xf32>
    %321 = arith.mulf %320, %313 : vector<14x28xf32>
    %322 = arith.addf %303, %321 : vector<14x28xf32>
    %323 = vector.broadcast %88 : f32 to vector<14x28xf32>
    %324 = arith.mulf %323, %313 : vector<14x28xf32>
    %325 = arith.addf %306, %324 : vector<14x28xf32>
    %326 = vector.broadcast %115 : f32 to vector<14x28xf32>
    %327 = arith.mulf %326, %313 : vector<14x28xf32>
    %328 = arith.addf %309, %327 : vector<14x28xf32>
    %329 = vector.broadcast %142 : f32 to vector<14x28xf32>
    %330 = arith.mulf %329, %313 : vector<14x28xf32>
    %331 = arith.addf %312, %330 : vector<14x28xf32>
    %332 = vector.extract_strided_slice %293 {offsets = [0, 4], sizes = [14, 28], strides = [1, 1]} : vector<14x32xf32> to vector<14x28xf32>
    %333 = vector.broadcast %8 : f32 to vector<14x28xf32>
    %334 = arith.mulf %333, %332 : vector<14x28xf32>
    %335 = arith.addf %316, %334 : vector<14x28xf32>
    %336 = vector.broadcast %35 : f32 to vector<14x28xf32>
    %337 = arith.mulf %336, %332 : vector<14x28xf32>
    %338 = arith.addf %319, %337 : vector<14x28xf32>
    %339 = vector.broadcast %62 : f32 to vector<14x28xf32>
    %340 = arith.mulf %339, %332 : vector<14x28xf32>
    %341 = arith.addf %322, %340 : vector<14x28xf32>
    %342 = vector.broadcast %89 : f32 to vector<14x28xf32>
    %343 = arith.mulf %342, %332 : vector<14x28xf32>
    %344 = arith.addf %325, %343 : vector<14x28xf32>
    %345 = vector.broadcast %116 : f32 to vector<14x28xf32>
    %346 = arith.mulf %345, %332 : vector<14x28xf32>
    %347 = arith.addf %328, %346 : vector<14x28xf32>
    %348 = vector.broadcast %143 : f32 to vector<14x28xf32>
    %349 = arith.mulf %348, %332 : vector<14x28xf32>
    %350 = arith.addf %331, %349 : vector<14x28xf32>
    %c1_20 = arith.constant 1 : index
    %c0_21 = arith.constant 0 : index
    %c0_22 = arith.constant 0 : index
    %351 = vector.load %arg1[%c1_20, %c0_21, %c0_22] : memref<3x16x32xf32, #tpu.memory_space<vmem>>, vector<1x14x32xf32>
    %352 = vector.shape_cast %351 : vector<1x14x32xf32> to vector<14x32xf32>
    %353 = vector.extract_strided_slice %352 {offsets = [0, 0], sizes = [14, 28], strides = [1, 1]} : vector<14x32xf32> to vector<14x28xf32>
    %354 = vector.broadcast %9 : f32 to vector<14x28xf32>
    %355 = arith.mulf %354, %353 : vector<14x28xf32>
    %356 = arith.addf %335, %355 : vector<14x28xf32>
    %357 = vector.broadcast %36 : f32 to vector<14x28xf32>
    %358 = arith.mulf %357, %353 : vector<14x28xf32>
    %359 = arith.addf %338, %358 : vector<14x28xf32>
    %360 = vector.broadcast %63 : f32 to vector<14x28xf32>
    %361 = arith.mulf %360, %353 : vector<14x28xf32>
    %362 = arith.addf %341, %361 : vector<14x28xf32>
    %363 = vector.broadcast %90 : f32 to vector<14x28xf32>
    %364 = arith.mulf %363, %353 : vector<14x28xf32>
    %365 = arith.addf %344, %364 : vector<14x28xf32>
    %366 = vector.broadcast %117 : f32 to vector<14x28xf32>
    %367 = arith.mulf %366, %353 : vector<14x28xf32>
    %368 = arith.addf %347, %367 : vector<14x28xf32>
    %369 = vector.broadcast %144 : f32 to vector<14x28xf32>
    %370 = arith.mulf %369, %353 : vector<14x28xf32>
    %371 = arith.addf %350, %370 : vector<14x28xf32>
    %372 = vector.extract_strided_slice %352 {offsets = [0, 2], sizes = [14, 28], strides = [1, 1]} : vector<14x32xf32> to vector<14x28xf32>
    %373 = vector.broadcast %10 : f32 to vector<14x28xf32>
    %374 = arith.mulf %373, %372 : vector<14x28xf32>
    %375 = arith.addf %356, %374 : vector<14x28xf32>
    %376 = vector.broadcast %37 : f32 to vector<14x28xf32>
    %377 = arith.mulf %376, %372 : vector<14x28xf32>
    %378 = arith.addf %359, %377 : vector<14x28xf32>
    %379 = vector.broadcast %64 : f32 to vector<14x28xf32>
    %380 = arith.mulf %379, %372 : vector<14x28xf32>
    %381 = arith.addf %362, %380 : vector<14x28xf32>
    %382 = vector.broadcast %91 : f32 to vector<14x28xf32>
    %383 = arith.mulf %382, %372 : vector<14x28xf32>
    %384 = arith.addf %365, %383 : vector<14x28xf32>
    %385 = vector.broadcast %118 : f32 to vector<14x28xf32>
    %386 = arith.mulf %385, %372 : vector<14x28xf32>
    %387 = arith.addf %368, %386 : vector<14x28xf32>
    %388 = vector.broadcast %145 : f32 to vector<14x28xf32>
    %389 = arith.mulf %388, %372 : vector<14x28xf32>
    %390 = arith.addf %371, %389 : vector<14x28xf32>
    %391 = vector.extract_strided_slice %352 {offsets = [0, 4], sizes = [14, 28], strides = [1, 1]} : vector<14x32xf32> to vector<14x28xf32>
    %392 = vector.broadcast %11 : f32 to vector<14x28xf32>
    %393 = arith.mulf %392, %391 : vector<14x28xf32>
    %394 = arith.addf %375, %393 : vector<14x28xf32>
    %395 = vector.broadcast %38 : f32 to vector<14x28xf32>
    %396 = arith.mulf %395, %391 : vector<14x28xf32>
    %397 = arith.addf %378, %396 : vector<14x28xf32>
    %398 = vector.broadcast %65 : f32 to vector<14x28xf32>
    %399 = arith.mulf %398, %391 : vector<14x28xf32>
    %400 = arith.addf %381, %399 : vector<14x28xf32>
    %401 = vector.broadcast %92 : f32 to vector<14x28xf32>
    %402 = arith.mulf %401, %391 : vector<14x28xf32>
    %403 = arith.addf %384, %402 : vector<14x28xf32>
    %404 = vector.broadcast %119 : f32 to vector<14x28xf32>
    %405 = arith.mulf %404, %391 : vector<14x28xf32>
    %406 = arith.addf %387, %405 : vector<14x28xf32>
    %407 = vector.broadcast %146 : f32 to vector<14x28xf32>
    %408 = arith.mulf %407, %391 : vector<14x28xf32>
    %409 = arith.addf %390, %408 : vector<14x28xf32>
    %c1_23 = arith.constant 1 : index
    %c1_24 = arith.constant 1 : index
    %c0_25 = arith.constant 0 : index
    %410 = vector.load %arg1[%c1_23, %c1_24, %c0_25] : memref<3x16x32xf32, #tpu.memory_space<vmem>>, vector<1x14x32xf32>
    %411 = vector.shape_cast %410 : vector<1x14x32xf32> to vector<14x32xf32>
    %412 = vector.extract_strided_slice %411 {offsets = [0, 0], sizes = [14, 28], strides = [1, 1]} : vector<14x32xf32> to vector<14x28xf32>
    %413 = vector.broadcast %12 : f32 to vector<14x28xf32>
    %414 = arith.mulf %413, %412 : vector<14x28xf32>
    %415 = arith.addf %394, %414 : vector<14x28xf32>
    %416 = vector.broadcast %39 : f32 to vector<14x28xf32>
    %417 = arith.mulf %416, %412 : vector<14x28xf32>
    %418 = arith.addf %397, %417 : vector<14x28xf32>
    %419 = vector.broadcast %66 : f32 to vector<14x28xf32>
    %420 = arith.mulf %419, %412 : vector<14x28xf32>
    %421 = arith.addf %400, %420 : vector<14x28xf32>
    %422 = vector.broadcast %93 : f32 to vector<14x28xf32>
    %423 = arith.mulf %422, %412 : vector<14x28xf32>
    %424 = arith.addf %403, %423 : vector<14x28xf32>
    %425 = vector.broadcast %120 : f32 to vector<14x28xf32>
    %426 = arith.mulf %425, %412 : vector<14x28xf32>
    %427 = arith.addf %406, %426 : vector<14x28xf32>
    %428 = vector.broadcast %147 : f32 to vector<14x28xf32>
    %429 = arith.mulf %428, %412 : vector<14x28xf32>
    %430 = arith.addf %409, %429 : vector<14x28xf32>
    %431 = vector.extract_strided_slice %411 {offsets = [0, 2], sizes = [14, 28], strides = [1, 1]} : vector<14x32xf32> to vector<14x28xf32>
    %432 = vector.broadcast %13 : f32 to vector<14x28xf32>
    %433 = arith.mulf %432, %431 : vector<14x28xf32>
    %434 = arith.addf %415, %433 : vector<14x28xf32>
    %435 = vector.broadcast %40 : f32 to vector<14x28xf32>
    %436 = arith.mulf %435, %431 : vector<14x28xf32>
    %437 = arith.addf %418, %436 : vector<14x28xf32>
    %438 = vector.broadcast %67 : f32 to vector<14x28xf32>
    %439 = arith.mulf %438, %431 : vector<14x28xf32>
    %440 = arith.addf %421, %439 : vector<14x28xf32>
    %441 = vector.broadcast %94 : f32 to vector<14x28xf32>
    %442 = arith.mulf %441, %431 : vector<14x28xf32>
    %443 = arith.addf %424, %442 : vector<14x28xf32>
    %444 = vector.broadcast %121 : f32 to vector<14x28xf32>
    %445 = arith.mulf %444, %431 : vector<14x28xf32>
    %446 = arith.addf %427, %445 : vector<14x28xf32>
    %447 = vector.broadcast %148 : f32 to vector<14x28xf32>
    %448 = arith.mulf %447, %431 : vector<14x28xf32>
    %449 = arith.addf %430, %448 : vector<14x28xf32>
    %450 = vector.extract_strided_slice %411 {offsets = [0, 4], sizes = [14, 28], strides = [1, 1]} : vector<14x32xf32> to vector<14x28xf32>
    %451 = vector.broadcast %14 : f32 to vector<14x28xf32>
    %452 = arith.mulf %451, %450 : vector<14x28xf32>
    %453 = arith.addf %434, %452 : vector<14x28xf32>
    %454 = vector.broadcast %41 : f32 to vector<14x28xf32>
    %455 = arith.mulf %454, %450 : vector<14x28xf32>
    %456 = arith.addf %437, %455 : vector<14x28xf32>
    %457 = vector.broadcast %68 : f32 to vector<14x28xf32>
    %458 = arith.mulf %457, %450 : vector<14x28xf32>
    %459 = arith.addf %440, %458 : vector<14x28xf32>
    %460 = vector.broadcast %95 : f32 to vector<14x28xf32>
    %461 = arith.mulf %460, %450 : vector<14x28xf32>
    %462 = arith.addf %443, %461 : vector<14x28xf32>
    %463 = vector.broadcast %122 : f32 to vector<14x28xf32>
    %464 = arith.mulf %463, %450 : vector<14x28xf32>
    %465 = arith.addf %446, %464 : vector<14x28xf32>
    %466 = vector.broadcast %149 : f32 to vector<14x28xf32>
    %467 = arith.mulf %466, %450 : vector<14x28xf32>
    %468 = arith.addf %449, %467 : vector<14x28xf32>
    %c1_26 = arith.constant 1 : index
    %c2_27 = arith.constant 2 : index
    %c0_28 = arith.constant 0 : index
    %469 = vector.load %arg1[%c1_26, %c2_27, %c0_28] : memref<3x16x32xf32, #tpu.memory_space<vmem>>, vector<1x14x32xf32>
    %470 = vector.shape_cast %469 : vector<1x14x32xf32> to vector<14x32xf32>
    %471 = vector.extract_strided_slice %470 {offsets = [0, 0], sizes = [14, 28], strides = [1, 1]} : vector<14x32xf32> to vector<14x28xf32>
    %472 = vector.broadcast %15 : f32 to vector<14x28xf32>
    %473 = arith.mulf %472, %471 : vector<14x28xf32>
    %474 = arith.addf %453, %473 : vector<14x28xf32>
    %475 = vector.broadcast %42 : f32 to vector<14x28xf32>
    %476 = arith.mulf %475, %471 : vector<14x28xf32>
    %477 = arith.addf %456, %476 : vector<14x28xf32>
    %478 = vector.broadcast %69 : f32 to vector<14x28xf32>
    %479 = arith.mulf %478, %471 : vector<14x28xf32>
    %480 = arith.addf %459, %479 : vector<14x28xf32>
    %481 = vector.broadcast %96 : f32 to vector<14x28xf32>
    %482 = arith.mulf %481, %471 : vector<14x28xf32>
    %483 = arith.addf %462, %482 : vector<14x28xf32>
    %484 = vector.broadcast %123 : f32 to vector<14x28xf32>
    %485 = arith.mulf %484, %471 : vector<14x28xf32>
    %486 = arith.addf %465, %485 : vector<14x28xf32>
    %487 = vector.broadcast %150 : f32 to vector<14x28xf32>
    %488 = arith.mulf %487, %471 : vector<14x28xf32>
    %489 = arith.addf %468, %488 : vector<14x28xf32>
    %490 = vector.extract_strided_slice %470 {offsets = [0, 2], sizes = [14, 28], strides = [1, 1]} : vector<14x32xf32> to vector<14x28xf32>
    %491 = vector.broadcast %16 : f32 to vector<14x28xf32>
    %492 = arith.mulf %491, %490 : vector<14x28xf32>
    %493 = arith.addf %474, %492 : vector<14x28xf32>
    %494 = vector.broadcast %43 : f32 to vector<14x28xf32>
    %495 = arith.mulf %494, %490 : vector<14x28xf32>
    %496 = arith.addf %477, %495 : vector<14x28xf32>
    %497 = vector.broadcast %70 : f32 to vector<14x28xf32>
    %498 = arith.mulf %497, %490 : vector<14x28xf32>
    %499 = arith.addf %480, %498 : vector<14x28xf32>
    %500 = vector.broadcast %97 : f32 to vector<14x28xf32>
    %501 = arith.mulf %500, %490 : vector<14x28xf32>
    %502 = arith.addf %483, %501 : vector<14x28xf32>
    %503 = vector.broadcast %124 : f32 to vector<14x28xf32>
    %504 = arith.mulf %503, %490 : vector<14x28xf32>
    %505 = arith.addf %486, %504 : vector<14x28xf32>
    %506 = vector.broadcast %151 : f32 to vector<14x28xf32>
    %507 = arith.mulf %506, %490 : vector<14x28xf32>
    %508 = arith.addf %489, %507 : vector<14x28xf32>
    %509 = vector.extract_strided_slice %470 {offsets = [0, 4], sizes = [14, 28], strides = [1, 1]} : vector<14x32xf32> to vector<14x28xf32>
    %510 = vector.broadcast %17 : f32 to vector<14x28xf32>
    %511 = arith.mulf %510, %509 : vector<14x28xf32>
    %512 = arith.addf %493, %511 : vector<14x28xf32>
    %513 = vector.broadcast %44 : f32 to vector<14x28xf32>
    %514 = arith.mulf %513, %509 : vector<14x28xf32>
    %515 = arith.addf %496, %514 : vector<14x28xf32>
    %516 = vector.broadcast %71 : f32 to vector<14x28xf32>
    %517 = arith.mulf %516, %509 : vector<14x28xf32>
    %518 = arith.addf %499, %517 : vector<14x28xf32>
    %519 = vector.broadcast %98 : f32 to vector<14x28xf32>
    %520 = arith.mulf %519, %509 : vector<14x28xf32>
    %521 = arith.addf %502, %520 : vector<14x28xf32>
    %522 = vector.broadcast %125 : f32 to vector<14x28xf32>
    %523 = arith.mulf %522, %509 : vector<14x28xf32>
    %524 = arith.addf %505, %523 : vector<14x28xf32>
    %525 = vector.broadcast %152 : f32 to vector<14x28xf32>
    %526 = arith.mulf %525, %509 : vector<14x28xf32>
    %527 = arith.addf %508, %526 : vector<14x28xf32>
    %c2_29 = arith.constant 2 : index
    %c0_30 = arith.constant 0 : index
    %c0_31 = arith.constant 0 : index
    %528 = vector.load %arg1[%c2_29, %c0_30, %c0_31] : memref<3x16x32xf32, #tpu.memory_space<vmem>>, vector<1x14x32xf32>
    %529 = vector.shape_cast %528 : vector<1x14x32xf32> to vector<14x32xf32>
    %530 = vector.extract_strided_slice %529 {offsets = [0, 0], sizes = [14, 28], strides = [1, 1]} : vector<14x32xf32> to vector<14x28xf32>
    %531 = vector.broadcast %18 : f32 to vector<14x28xf32>
    %532 = arith.mulf %531, %530 : vector<14x28xf32>
    %533 = arith.addf %512, %532 : vector<14x28xf32>
    %534 = vector.broadcast %45 : f32 to vector<14x28xf32>
    %535 = arith.mulf %534, %530 : vector<14x28xf32>
    %536 = arith.addf %515, %535 : vector<14x28xf32>
    %537 = vector.broadcast %72 : f32 to vector<14x28xf32>
    %538 = arith.mulf %537, %530 : vector<14x28xf32>
    %539 = arith.addf %518, %538 : vector<14x28xf32>
    %540 = vector.broadcast %99 : f32 to vector<14x28xf32>
    %541 = arith.mulf %540, %530 : vector<14x28xf32>
    %542 = arith.addf %521, %541 : vector<14x28xf32>
    %543 = vector.broadcast %126 : f32 to vector<14x28xf32>
    %544 = arith.mulf %543, %530 : vector<14x28xf32>
    %545 = arith.addf %524, %544 : vector<14x28xf32>
    %546 = vector.broadcast %153 : f32 to vector<14x28xf32>
    %547 = arith.mulf %546, %530 : vector<14x28xf32>
    %548 = arith.addf %527, %547 : vector<14x28xf32>
    %549 = vector.extract_strided_slice %529 {offsets = [0, 2], sizes = [14, 28], strides = [1, 1]} : vector<14x32xf32> to vector<14x28xf32>
    %550 = vector.broadcast %19 : f32 to vector<14x28xf32>
    %551 = arith.mulf %550, %549 : vector<14x28xf32>
    %552 = arith.addf %533, %551 : vector<14x28xf32>
    %553 = vector.broadcast %46 : f32 to vector<14x28xf32>
    %554 = arith.mulf %553, %549 : vector<14x28xf32>
    %555 = arith.addf %536, %554 : vector<14x28xf32>
    %556 = vector.broadcast %73 : f32 to vector<14x28xf32>
    %557 = arith.mulf %556, %549 : vector<14x28xf32>
    %558 = arith.addf %539, %557 : vector<14x28xf32>
    %559 = vector.broadcast %100 : f32 to vector<14x28xf32>
    %560 = arith.mulf %559, %549 : vector<14x28xf32>
    %561 = arith.addf %542, %560 : vector<14x28xf32>
    %562 = vector.broadcast %127 : f32 to vector<14x28xf32>
    %563 = arith.mulf %562, %549 : vector<14x28xf32>
    %564 = arith.addf %545, %563 : vector<14x28xf32>
    %565 = vector.broadcast %154 : f32 to vector<14x28xf32>
    %566 = arith.mulf %565, %549 : vector<14x28xf32>
    %567 = arith.addf %548, %566 : vector<14x28xf32>
    %568 = vector.extract_strided_slice %529 {offsets = [0, 4], sizes = [14, 28], strides = [1, 1]} : vector<14x32xf32> to vector<14x28xf32>
    %569 = vector.broadcast %20 : f32 to vector<14x28xf32>
    %570 = arith.mulf %569, %568 : vector<14x28xf32>
    %571 = arith.addf %552, %570 : vector<14x28xf32>
    %572 = vector.broadcast %47 : f32 to vector<14x28xf32>
    %573 = arith.mulf %572, %568 : vector<14x28xf32>
    %574 = arith.addf %555, %573 : vector<14x28xf32>
    %575 = vector.broadcast %74 : f32 to vector<14x28xf32>
    %576 = arith.mulf %575, %568 : vector<14x28xf32>
    %577 = arith.addf %558, %576 : vector<14x28xf32>
    %578 = vector.broadcast %101 : f32 to vector<14x28xf32>
    %579 = arith.mulf %578, %568 : vector<14x28xf32>
    %580 = arith.addf %561, %579 : vector<14x28xf32>
    %581 = vector.broadcast %128 : f32 to vector<14x28xf32>
    %582 = arith.mulf %581, %568 : vector<14x28xf32>
    %583 = arith.addf %564, %582 : vector<14x28xf32>
    %584 = vector.broadcast %155 : f32 to vector<14x28xf32>
    %585 = arith.mulf %584, %568 : vector<14x28xf32>
    %586 = arith.addf %567, %585 : vector<14x28xf32>
    %c2_32 = arith.constant 2 : index
    %c1_33 = arith.constant 1 : index
    %c0_34 = arith.constant 0 : index
    %587 = vector.load %arg1[%c2_32, %c1_33, %c0_34] : memref<3x16x32xf32, #tpu.memory_space<vmem>>, vector<1x14x32xf32>
    %588 = vector.shape_cast %587 : vector<1x14x32xf32> to vector<14x32xf32>
    %589 = vector.extract_strided_slice %588 {offsets = [0, 0], sizes = [14, 28], strides = [1, 1]} : vector<14x32xf32> to vector<14x28xf32>
    %590 = vector.broadcast %21 : f32 to vector<14x28xf32>
    %591 = arith.mulf %590, %589 : vector<14x28xf32>
    %592 = arith.addf %571, %591 : vector<14x28xf32>
    %593 = vector.broadcast %48 : f32 to vector<14x28xf32>
    %594 = arith.mulf %593, %589 : vector<14x28xf32>
    %595 = arith.addf %574, %594 : vector<14x28xf32>
    %596 = vector.broadcast %75 : f32 to vector<14x28xf32>
    %597 = arith.mulf %596, %589 : vector<14x28xf32>
    %598 = arith.addf %577, %597 : vector<14x28xf32>
    %599 = vector.broadcast %102 : f32 to vector<14x28xf32>
    %600 = arith.mulf %599, %589 : vector<14x28xf32>
    %601 = arith.addf %580, %600 : vector<14x28xf32>
    %602 = vector.broadcast %129 : f32 to vector<14x28xf32>
    %603 = arith.mulf %602, %589 : vector<14x28xf32>
    %604 = arith.addf %583, %603 : vector<14x28xf32>
    %605 = vector.broadcast %156 : f32 to vector<14x28xf32>
    %606 = arith.mulf %605, %589 : vector<14x28xf32>
    %607 = arith.addf %586, %606 : vector<14x28xf32>
    %608 = vector.extract_strided_slice %588 {offsets = [0, 2], sizes = [14, 28], strides = [1, 1]} : vector<14x32xf32> to vector<14x28xf32>
    %609 = vector.broadcast %22 : f32 to vector<14x28xf32>
    %610 = arith.mulf %609, %608 : vector<14x28xf32>
    %611 = arith.addf %592, %610 : vector<14x28xf32>
    %612 = vector.broadcast %49 : f32 to vector<14x28xf32>
    %613 = arith.mulf %612, %608 : vector<14x28xf32>
    %614 = arith.addf %595, %613 : vector<14x28xf32>
    %615 = vector.broadcast %76 : f32 to vector<14x28xf32>
    %616 = arith.mulf %615, %608 : vector<14x28xf32>
    %617 = arith.addf %598, %616 : vector<14x28xf32>
    %618 = vector.broadcast %103 : f32 to vector<14x28xf32>
    %619 = arith.mulf %618, %608 : vector<14x28xf32>
    %620 = arith.addf %601, %619 : vector<14x28xf32>
    %621 = vector.broadcast %130 : f32 to vector<14x28xf32>
    %622 = arith.mulf %621, %608 : vector<14x28xf32>
    %623 = arith.addf %604, %622 : vector<14x28xf32>
    %624 = vector.broadcast %157 : f32 to vector<14x28xf32>
    %625 = arith.mulf %624, %608 : vector<14x28xf32>
    %626 = arith.addf %607, %625 : vector<14x28xf32>
    %627 = vector.extract_strided_slice %588 {offsets = [0, 4], sizes = [14, 28], strides = [1, 1]} : vector<14x32xf32> to vector<14x28xf32>
    %628 = vector.broadcast %23 : f32 to vector<14x28xf32>
    %629 = arith.mulf %628, %627 : vector<14x28xf32>
    %630 = arith.addf %611, %629 : vector<14x28xf32>
    %631 = vector.broadcast %50 : f32 to vector<14x28xf32>
    %632 = arith.mulf %631, %627 : vector<14x28xf32>
    %633 = arith.addf %614, %632 : vector<14x28xf32>
    %634 = vector.broadcast %77 : f32 to vector<14x28xf32>
    %635 = arith.mulf %634, %627 : vector<14x28xf32>
    %636 = arith.addf %617, %635 : vector<14x28xf32>
    %637 = vector.broadcast %104 : f32 to vector<14x28xf32>
    %638 = arith.mulf %637, %627 : vector<14x28xf32>
    %639 = arith.addf %620, %638 : vector<14x28xf32>
    %640 = vector.broadcast %131 : f32 to vector<14x28xf32>
    %641 = arith.mulf %640, %627 : vector<14x28xf32>
    %642 = arith.addf %623, %641 : vector<14x28xf32>
    %643 = vector.broadcast %158 : f32 to vector<14x28xf32>
    %644 = arith.mulf %643, %627 : vector<14x28xf32>
    %645 = arith.addf %626, %644 : vector<14x28xf32>
    %c2_35 = arith.constant 2 : index
    %c2_36 = arith.constant 2 : index
    %c0_37 = arith.constant 0 : index
    %646 = vector.load %arg1[%c2_35, %c2_36, %c0_37] : memref<3x16x32xf32, #tpu.memory_space<vmem>>, vector<1x14x32xf32>
    %647 = vector.shape_cast %646 : vector<1x14x32xf32> to vector<14x32xf32>
    %648 = vector.extract_strided_slice %647 {offsets = [0, 0], sizes = [14, 28], strides = [1, 1]} : vector<14x32xf32> to vector<14x28xf32>
    %649 = vector.broadcast %24 : f32 to vector<14x28xf32>
    %650 = arith.mulf %649, %648 : vector<14x28xf32>
    %651 = arith.addf %630, %650 : vector<14x28xf32>
    %652 = vector.broadcast %51 : f32 to vector<14x28xf32>
    %653 = arith.mulf %652, %648 : vector<14x28xf32>
    %654 = arith.addf %633, %653 : vector<14x28xf32>
    %655 = vector.broadcast %78 : f32 to vector<14x28xf32>
    %656 = arith.mulf %655, %648 : vector<14x28xf32>
    %657 = arith.addf %636, %656 : vector<14x28xf32>
    %658 = vector.broadcast %105 : f32 to vector<14x28xf32>
    %659 = arith.mulf %658, %648 : vector<14x28xf32>
    %660 = arith.addf %639, %659 : vector<14x28xf32>
    %661 = vector.broadcast %132 : f32 to vector<14x28xf32>
    %662 = arith.mulf %661, %648 : vector<14x28xf32>
    %663 = arith.addf %642, %662 : vector<14x28xf32>
    %664 = vector.broadcast %159 : f32 to vector<14x28xf32>
    %665 = arith.mulf %664, %648 : vector<14x28xf32>
    %666 = arith.addf %645, %665 : vector<14x28xf32>
    %667 = vector.extract_strided_slice %647 {offsets = [0, 2], sizes = [14, 28], strides = [1, 1]} : vector<14x32xf32> to vector<14x28xf32>
    %668 = vector.broadcast %25 : f32 to vector<14x28xf32>
    %669 = arith.mulf %668, %667 : vector<14x28xf32>
    %670 = arith.addf %651, %669 : vector<14x28xf32>
    %671 = vector.broadcast %52 : f32 to vector<14x28xf32>
    %672 = arith.mulf %671, %667 : vector<14x28xf32>
    %673 = arith.addf %654, %672 : vector<14x28xf32>
    %674 = vector.broadcast %79 : f32 to vector<14x28xf32>
    %675 = arith.mulf %674, %667 : vector<14x28xf32>
    %676 = arith.addf %657, %675 : vector<14x28xf32>
    %677 = vector.broadcast %106 : f32 to vector<14x28xf32>
    %678 = arith.mulf %677, %667 : vector<14x28xf32>
    %679 = arith.addf %660, %678 : vector<14x28xf32>
    %680 = vector.broadcast %133 : f32 to vector<14x28xf32>
    %681 = arith.mulf %680, %667 : vector<14x28xf32>
    %682 = arith.addf %663, %681 : vector<14x28xf32>
    %683 = vector.broadcast %160 : f32 to vector<14x28xf32>
    %684 = arith.mulf %683, %667 : vector<14x28xf32>
    %685 = arith.addf %666, %684 : vector<14x28xf32>
    %686 = vector.extract_strided_slice %647 {offsets = [0, 4], sizes = [14, 28], strides = [1, 1]} : vector<14x32xf32> to vector<14x28xf32>
    %687 = vector.broadcast %26 : f32 to vector<14x28xf32>
    %688 = arith.mulf %687, %686 : vector<14x28xf32>
    %689 = arith.addf %670, %688 : vector<14x28xf32>
    %690 = vector.broadcast %53 : f32 to vector<14x28xf32>
    %691 = arith.mulf %690, %686 : vector<14x28xf32>
    %692 = arith.addf %673, %691 : vector<14x28xf32>
    %693 = vector.broadcast %80 : f32 to vector<14x28xf32>
    %694 = arith.mulf %693, %686 : vector<14x28xf32>
    %695 = arith.addf %676, %694 : vector<14x28xf32>
    %696 = vector.broadcast %107 : f32 to vector<14x28xf32>
    %697 = arith.mulf %696, %686 : vector<14x28xf32>
    %698 = arith.addf %679, %697 : vector<14x28xf32>
    %699 = vector.broadcast %134 : f32 to vector<14x28xf32>
    %700 = arith.mulf %699, %686 : vector<14x28xf32>
    %701 = arith.addf %682, %700 : vector<14x28xf32>
    %702 = vector.broadcast %161 : f32 to vector<14x28xf32>
    %703 = arith.mulf %702, %686 : vector<14x28xf32>
    %704 = arith.addf %685, %703 : vector<14x28xf32>
    %705 = vector.broadcast %162 : f32 to vector<14x28xf32>
    %706 = arith.addf %689, %705 : vector<14x28xf32>
    %c0_38 = arith.constant 0 : index
    %c0_39 = arith.constant 0 : index
    %c0_40 = arith.constant 0 : index
    %707 = vector.load %arg4[%c0_38, %c0_39, %c0_40] : memref<6x14x28xf32, #tpu.memory_space<vmem>>, vector<1x14x28xf32>
    %708 = vector.shape_cast %707 : vector<1x14x28xf32> to vector<14x28xf32>
    %709 = vector.shape_cast %706 : vector<14x28xf32> to vector<1x14x28xf32>
    tpu.vector_store %arg4[%c0_38, %c0_39, %c0_40], %709 {strides = array<i32>} : memref<6x14x28xf32, #tpu.memory_space<vmem>>, vector<1x14x28xf32>,
    %710 = vector.broadcast %163 : f32 to vector<14x28xf32>
    %711 = arith.addf %692, %710 : vector<14x28xf32>
    %c1_41 = arith.constant 1 : index
    %c0_42 = arith.constant 0 : index
    %c0_43 = arith.constant 0 : index
    %712 = vector.load %arg4[%c1_41, %c0_42, %c0_43] : memref<6x14x28xf32, #tpu.memory_space<vmem>>, vector<1x14x28xf32>
    %713 = vector.shape_cast %712 : vector<1x14x28xf32> to vector<14x28xf32>
    %714 = vector.shape_cast %711 : vector<14x28xf32> to vector<1x14x28xf32>
    tpu.vector_store %arg4[%c1_41, %c0_42, %c0_43], %714 {strides = array<i32>} : memref<6x14x28xf32, #tpu.memory_space<vmem>>, vector<1x14x28xf32>,
    %715 = vector.broadcast %164 : f32 to vector<14x28xf32>
    %716 = arith.addf %695, %715 : vector<14x28xf32>
    %c2_44 = arith.constant 2 : index
    %c0_45 = arith.constant 0 : index
    %c0_46 = arith.constant 0 : index
    %717 = vector.load %arg4[%c2_44, %c0_45, %c0_46] : memref<6x14x28xf32, #tpu.memory_space<vmem>>, vector<1x14x28xf32>
    %718 = vector.shape_cast %717 : vector<1x14x28xf32> to vector<14x28xf32>
    %719 = vector.shape_cast %716 : vector<14x28xf32> to vector<1x14x28xf32>
    tpu.vector_store %arg4[%c2_44, %c0_45, %c0_46], %719 {strides = array<i32>} : memref<6x14x28xf32, #tpu.memory_space<vmem>>, vector<1x14x28xf32>,
    %720 = vector.broadcast %165 : f32 to vector<14x28xf32>
    %721 = arith.addf %698, %720 : vector<14x28xf32>
    %c3_47 = arith.constant 3 : index
    %c0_48 = arith.constant 0 : index
    %c0_49 = arith.constant 0 : index
    %722 = vector.load %arg4[%c3_47, %c0_48, %c0_49] : memref<6x14x28xf32, #tpu.memory_space<vmem>>, vector<1x14x28xf32>
    %723 = vector.shape_cast %722 : vector<1x14x28xf32> to vector<14x28xf32>
    %724 = vector.shape_cast %721 : vector<14x28xf32> to vector<1x14x28xf32>
    tpu.vector_store %arg4[%c3_47, %c0_48, %c0_49], %724 {strides = array<i32>} : memref<6x14x28xf32, #tpu.memory_space<vmem>>, vector<1x14x28xf32>,
    %725 = vector.broadcast %166 : f32 to vector<14x28xf32>
    %726 = arith.addf %701, %725 : vector<14x28xf32>
    %c4_50 = arith.constant 4 : index
    %c0_51 = arith.constant 0 : index
    %c0_52 = arith.constant 0 : index
    %727 = vector.load %arg4[%c4_50, %c0_51, %c0_52] : memref<6x14x28xf32, #tpu.memory_space<vmem>>, vector<1x14x28xf32>
    %728 = vector.shape_cast %727 : vector<1x14x28xf32> to vector<14x28xf32>
    %729 = vector.shape_cast %726 : vector<14x28xf32> to vector<1x14x28xf32>
    tpu.vector_store %arg4[%c4_50, %c0_51, %c0_52], %729 {strides = array<i32>} : memref<6x14x28xf32, #tpu.memory_space<vmem>>, vector<1x14x28xf32>,
    %730 = vector.broadcast %167 : f32 to vector<14x28xf32>
    %731 = arith.addf %704, %730 : vector<14x28xf32>
    %c5_53 = arith.constant 5 : index
    %c0_54 = arith.constant 0 : index
    %c0_55 = arith.constant 0 : index
    %732 = vector.load %arg4[%c5_53, %c0_54, %c0_55] : memref<6x14x28xf32, #tpu.memory_space<vmem>>, vector<1x14x28xf32>
    %733 = vector.shape_cast %732 : vector<1x14x28xf32> to vector<14x28xf32>
    %734 = vector.shape_cast %731 : vector<14x28xf32> to vector<1x14x28xf32>
    tpu.vector_store %arg4[%c5_53, %c0_54, %c0_55], %734 {strides = array<i32>} : memref<6x14x28xf32, #tpu.memory_space<vmem>>, vector<1x14x28xf32>,
    return
  }
  func.func @transform_0(%arg0: i32) -> (i32, i32, i32) {
    %c0_i32 = arith.constant 0 : i32
    %c0_i32_0 = arith.constant 0 : i32
    %c0_i32_1 = arith.constant 0 : i32
    %c0_i32_2 = arith.constant 0 : i32
    return %c0_i32, %c0_i32_0, %c0_i32_1 : i32, i32, i32
  }
  func.func @transform_1(%arg0: i32) -> i32 {
    %c0_i32 = arith.constant 0 : i32
    %c0_i32_0 = arith.constant 0 : i32
    return %c0_i32 : i32
  }
  func.func @transform_2(%arg0: i32) -> i32 {
    %c0_i32 = arith.constant 0 : i32
    %c0_i32_0 = arith.constant 0 : i32
    return %c0_i32 : i32
  }
  func.func @transform_3(%arg0: i32) -> (i32, i32, i32) {
    %c0_i32 = arith.constant 0 : i32
    %c0_i32_0 = arith.constant 0 : i32
    %c0_i32_1 = arith.constant 0 : i32
    %c0_i32_2 = arith.constant 0 : i32
    return %c0_i32, %c0_i32_0, %c0_i32_1 : i32, i32, i32
  }
}

</mosaic_0001>

<bundles_post_ra>
// kernel: tpu_custom_call.1
= control target key start
LH: loop header
LB: loop body
LE: loop exit
PB: predicated region body
PF: predicated region fallthrough
CT: control target
= control target key end

     0   :  { %8 = vsyncpa [#allocation3], 0  ;;  %s3787_s0 = inlined_call_operand.hbm [shape: f32[3,16,32], index: 0, kind: input, shape index: {}]   ;;  %s3788_s1 = inlined_call_operand.vmem [shape: f32[162], index: 1, kind: input, shape index: {}]   ;;  %s3789_s2 = inlined_call_operand.vmem [shape: f32[6], index: 2, kind: input, shape index: {}]   ;;  %s3790_s3 = inlined_call_operand.hbm [shape: f32[6,14,28], index: 3, kind: output, shape index: {}]  }
   0x1   :  { %9 = vsyncpa [#allocation5], 0 }
   0x2   :  { %10 = vsyncpa [#allocation8], 0 }
   0x3   :  { %11 = vsyncpa [#allocation4], 0  ;;  %s2226_s12 = smov [#allocation2]   ;;  %s30_s16 = sshll.u32 %s3788_s1, 4  ;;  %s31_s16 = int_to_ptr.vmem [resolvable:$true] %s30_s16 }
   0x4   :  { %s17_s13 = sshll.u32 %s2226_s12, 4  ;;  %s2150_s19 = scalar_lea.hbm %s3787_s0, 768  ;;  %s18_s13 = int_to_ptr.vmem [resolvable:$true] %s17_s13 }
   0x5   :  { %p2151_p0 = scmp.ne.s32.totalorder %s3787_s0, %s2150_s19  ;;  %p2154_p1 = scmp.lt.u32.totalorder %s2150_s19, %s3787_s0 }
   0x7   :  { %p2156_p2 = pnand %p2154_p1, %p2151_p0 }
   0x9   :  { %2159 = shalt.err (!%p2156_p2)
}
   0xa   :  { %s2160_s24 = scalar_lea.vmem %s18_s13, 768  ;;  %p2165_p4 = scmp.lt.s32.totalorder %s18_s13, %s18_s13 }
   0xb   :  { %p2161_p3 = scmp.ne.s32.totalorder %s18_s13, %s2160_s24  ;;  %p2166_p5 = scmp.lt.s32.totalorder %s2160_s24, %s2160_s24 }
   0xd   :  { %p2167_p6 = por %p2166_p5, %p2165_p4 }
   0xf   :  { %p2168_p7 = pnand %p2167_p6, %p2161_p3 }
  0x11   :  { %2171 = shalt.err (!%p2168_p7)
}
  0x12   :  { %s2227_s1 = smov 128   ;;  %s2228_s25 = smov 8  }
  0x13   :  { %23 = dma.hbm_to_vmem [thread:$0]  %s3787_s0, 768, %s18_s13, [#allocation3], %s2227_s1, %s2227_s1, %s2228_s25  }
  0x14   :  { %s2172_s28 = scalar_lea.vmem %s31_s16, 32  ;;  %p2177_p9 = scmp.lt.s32.totalorder %s31_s16, %s31_s16 }
  0x15   :  { %p2173_p8 = scmp.ne.s32.totalorder %s31_s16, %s2172_s28  ;;  %p2178_p10 = scmp.lt.s32.totalorder %s2172_s28, %s2172_s28 }
  0x17   :  { %p2179_p11 = por %p2178_p10, %p2177_p9 }
  0x19   :  { %p2180_p12 = pnand %p2179_p11, %p2173_p8 }
  0x1b   :  { %2183 = shalt.err (!%p2180_p12)
}
  0x1c   :  { %s2229_s29 = smov [#allocation6]   ;;  %s40_s5 = sshll.u32 %s3789_s2, 4  ;;  %s41_s5 = int_to_ptr.vmem [resolvable:$true] %s40_s5 }
  0x1d   :  { %33 = dma.vmem_to_smem %s31_s16, 32, %s2229_s29, [#allocation5]  }
  0x1e   :  { %s2184_s6 = scalar_lea.vmem %s41_s5, 16  ;;  %p2189_p0 = scmp.lt.s32.totalorder %s41_s5, %s41_s5 }
  0x1f   :  { %p2185_p13 = scmp.ne.s32.totalorder %s41_s5, %s2184_s6  ;;  %p2190_p1 = scmp.lt.s32.totalorder %s2184_s6, %s2184_s6 }
  0x21   :  { %p2191_p2 = por %p2190_p1, %p2189_p0 }
  0x23   :  { %p2192_p3 = pnand %p2191_p2, %p2185_p13 }
  0x25   :  { %2195 = shalt.err (!%p2192_p3)
}
  0x26   :  { %s2230_s0 = smov [#allocation7]  }
  0x27   :  { %43 = dma.vmem_to_smem %s41_s5, 16, %s2230_s0, [#allocation8]  }
  0x28   :  { %2218 = dma.done.wait [#allocation3], 768  }
  0x29   :  { %2219 = vsyncadd [#allocation3], 4294966528 }
  0x2a   :  { %2220 = dma.done.wait [#allocation5], 32  }
  0x2b   :  { %2221 = vsyncadd [#allocation5], 4294967264 }
  0x2c   :  { %2222 = dma.done.wait [#allocation8], 16  }
  0x2d   :  { %2223 = vsyncadd [#allocation8], 4294967280 }
  0x2e   :  { %53 = sfence }
  0x2f   :  { %s1999_s7 = sld [smem:[#allocation6 + $0x1c]]  ;;  %s1972_s8 = sld [smem:[#allocation6 + $0x1]]  ;;  %v2275_v0 = vld [vmem:[#allocation2] sm:$0xff]  ;;  %v2277_v1 = vld [vmem:[#allocation2 + $0x8] sm:$0x3f]  ;;  %vm1921_vm0 = vcmask 226304  }
  0x30   :  { %s2026_s2 = sld [smem:[#allocation6 + $0x37]]  ;;  %s2053_s9 = sld [smem:[#allocation6 + $0x52]]  ;;  %v2325_v38 = vld [vmem:[#allocation2 + $0x9] sm:$0x3f]  ;;  %v2327_v40 = vld [vmem:[#allocation2 + $0x1] sm:$0xff]  ;;  %vm1919_vm1 = vcmask 228352  }
  0x31   :  { %s2231_s10 = smov 126   ;;  %s2080_s11 = sld [smem:[#allocation6 + $0x6d]] }
  0x32   :  { %s2107_s12 = sld [smem:[#allocation6 + $0x88]]  ;;  %s1973_s13 = sld [smem:[#allocation6 + $0x2]] }
  0x33   :  { %s2000_s14 = sld [smem:[#allocation6 + $0x1d]]  ;;  %s2027_s15 = sld [smem:[#allocation6 + $0x38]] }
  0x34   :  { %s2054_s16 = sld [smem:[#allocation6 + $0x53]]  ;;  %s2232_s17 = smov 124  }
  0x35   :  { %v267_v2 = vstv %s1999_s7  ;;  %v254_v4 = vstv %s1972_s8  ;;  %s2081_s18 = sld [smem:[#allocation6 + $0x6e]]  ;;  %s2108_s19 = sld [smem:[#allocation6 + $0x89]] }
  0x36   :  { %v268_v3 = vmul.f32 %v267_v2, %v2275_v0  ;;  %v255_v5 = vmul.f32 %v254_v4, %v2275_v0  ;;  %v269_v6 = vmul.f32 %v267_v2, %v2277_v1  ;;  %v256_v7 = vmul.f32 %v254_v4, %v2277_v1  ;;  %s1975_s20 = sld [smem:[#allocation6 + $0x4]]  ;;  %s2002_s21 = sld [smem:[#allocation6 + $0x1f]] }
  0x37   :  { %v280_v8 = vstv %s2026_s2  ;;  %v293_v11 = vstv %s2053_s9  ;;  %v306_v14 = vstv %s2080_s11  ;;  %s2029_s22 = sld [smem:[#allocation6 + $0x3a]]  ;;  %s2056_s23 = sld [smem:[#allocation6 + $0x55]] }
  0x38   :  { %272 = vrot.lane.b32.xlu1 %v268_v3, %s2231_s10  ;;  %259 = vrot.lane.b32.xlu0 %v255_v5, %s2231_s10  ;;  %v282_v9 = vmul.f32 %v280_v8, %v2277_v1  ;;  %v281_v10 = vmul.f32 %v280_v8, %v2275_v0  ;;  %v295_v12 = vmul.f32 %v293_v11, %v2277_v1  ;;  %v319_v17 = vstv %s2107_s12  ;;  %s2083_s24 = sld [smem:[#allocation6 + $0x70]]  ;;  %s2110_s26 = sld [smem:[#allocation6 + $0x8b]] }
  0x39   :  { %v294_v13 = vmul.f32 %v293_v11, %v2275_v0  ;;  %v308_v15 = vmul.f32 %v306_v14, %v2277_v1  ;;  %v307_v16 = vmul.f32 %v306_v14, %v2275_v0  ;;  %v321_v18 = vmul.f32 %v319_v17, %v2277_v1  ;;  %s1976_s27 = sld [smem:[#allocation6 + $0x5]]  ;;  %s2003_s28 = sld [smem:[#allocation6 + $0x20]]  ;;  %v2377_v14 = vld [vmem:[#allocation2 + $0xa] sm:$0x3f] }
  0x3a   :  { %v320_v19 = vmul.f32 %v319_v17, %v2275_v0  ;;  %v332_v20 = vstv %s1973_s13  ;;  %v345_v23 = vstv %s2000_s14  ;;  %v358_v26 = vstv %s2027_s15  ;;  %s2030_s29 = sld [smem:[#allocation6 + $0x3b]]  ;;  %s2057_s30 = sld [smem:[#allocation6 + $0x56]] }
  0x3b   :  { %v334_v21 = vmul.f32 %v332_v20, %v2277_v1  ;;  %v333_v22 = vmul.f32 %v332_v20, %v2275_v0  ;;  %v347_v24 = vmul.f32 %v345_v23, %v2277_v1  ;;  %v346_v25 = vmul.f32 %v345_v23, %v2275_v0  ;;  %s2084_s4 = sld [smem:[#allocation6 + $0x71]]  ;;  %s2111_s5 = sld [smem:[#allocation6 + $0x8c]] }
  0x3c   :  { %274 = vrot.lane.b32.xlu1 %v269_v6, %s2231_s10  ;;  %261 = vrot.lane.b32.xlu0 %v256_v7, %s2231_s10  ;;  %v360_v27 = vmul.f32 %v358_v26, %v2277_v1  ;;  %v359_v28 = vmul.f32 %v358_v26, %v2275_v0  ;;  %v371_v29 = vstv %s2054_s16  ;;  %v384_v32 = vstv %s2081_s18  ;;  %s1978_s6 = sld [smem:[#allocation6 + $0x7]]  ;;  %s2005_s0 = sld [smem:[#allocation6 + $0x22]] }
  0x3d   :  { %v373_v30 = vmul.f32 %v371_v29, %v2277_v1  ;;  %v372_v31 = vmul.f32 %v371_v29, %v2275_v0  ;;  %v386_v33 = vmul.f32 %v384_v32, %v2277_v1  ;;  %v385_v34 = vmul.f32 %v384_v32, %v2275_v0  ;;  %s2032_s7 = sld [smem:[#allocation6 + $0x3d]]  ;;  %s2059_s8 = sld [smem:[#allocation6 + $0x58]] }
  0x3e   :  { %v397_v35 = vstv %s2108_s19  ;;  %v442_v39 = vstv %s1975_s20  ;;  %v455_v43 = vstv %s2002_s21  ;;  %v468_v46 = vstv %s2029_s22  ;;  %s2086_s2 = sld [smem:[#allocation6 + $0x73]]  ;;  %s2113_s9 = sld [smem:[#allocation6 + $0x8e]] }
  0x3f   :  { %v399_v36 = vmul.f32 %v397_v35, %v2277_v1  ;;  %v398_v37 = vmul.f32 %v397_v35, %v2275_v0  ;;  %v444_v41 = vmul.f32 %v442_v39, %v2325_v38  ;;  %v443_v42 = vmul.f32 %v442_v39, %v2327_v40  ;;  %s1979_s11 = sld [smem:[#allocation6 + $0x8]]  ;;  %s2006_s12 = sld [smem:[#allocation6 + $0x23]] }
  0x40   :  { %287 = vrot.lane.b32.xlu1 %v282_v9, %s2231_s10  ;;  %285 = vrot.lane.b32.xlu0 %v281_v10, %s2231_s10  ;;  %v457_v44 = vmul.f32 %v455_v43, %v2325_v38  ;;  %v456_v45 = vmul.f32 %v455_v43, %v2327_v40  ;;  %v470_v47 = vmul.f32 %v468_v46, %v2325_v38  ;;  %v481_v49 = vstv %s2056_s23  ;;  %s2033_s13 = sld [smem:[#allocation6 + $0x3e]]  ;;  %s2060_s14 = sld [smem:[#allocation6 + $0x59]] }
  0x41   :  { %v469_v48 = vmul.f32 %v468_v46, %v2327_v40  ;;  %v483_v50 = vmul.f32 %v481_v49, %v2325_v38  ;;  %v482_v51 = vmul.f32 %v481_v49, %v2327_v40  ;;  %v494_v52 = vstv %s2083_s24  ;;  %s2419_s15 = sld [smem:[#allocation6 + $0x74]]  ;;  %s2423_s16 = sld [smem:[#allocation6]] }
  0x42   :  { %v496_v53 = vmul.f32 %v494_v52, %v2325_v38  ;;  %v495_v54 = vmul.f32 %v494_v52, %v2327_v40  ;;  %v507_v55 = vstv %s2110_s26  ;;  %v520_v58 = vstv %s1976_s27  ;;  %s2431_s18 = sld [smem:[#allocation6 + $0x8f]]  ;;  %s2435_s19 = sld [smem:[#allocation6 + $0x3]] }
  0x43   :  { %v509_v56 = vmul.f32 %v507_v55, %v2325_v38  ;;  %v508_v57 = vmul.f32 %v507_v55, %v2327_v40  ;;  %v522_v59 = vmul.f32 %v520_v58, %v2325_v38  ;;  %v521_v60 = vmul.f32 %v520_v58, %v2327_v40  ;;  %s2437_s20 = sld [smem:[#allocation6 + $0x1b]]  ;;  %s2441_s21 = sld [smem:[#allocation6 + $0x36]] }
  0x44   :  { %300 = vrot.lane.b32.xlu1 %v295_v12, %s2231_s10  ;;  %298 = vrot.lane.b32.xlu0 %v294_v13, %s2231_s10  ;;  %v533_v61 = vstv %s2003_s28  ;;  %v546_v2 = vstv %s2030_s29  ;;  %s2448_s22 = sld [smem:[#allocation6 + $0xa]]  ;;  %s2452_s23 = sld [smem:[#allocation6 + $0x1e]] }
  0x45   :  { %v535_v62 = vmul.f32 %v533_v61, %v2325_v38  ;;  %v534_v63 = vmul.f32 %v533_v61, %v2327_v40  ;;  %v548_v3 = vmul.f32 %v546_v2, %v2325_v38  ;;  %v547_v4 = vmul.f32 %v546_v2, %v2327_v40  ;;  %s2455_s24 = sld [smem:[#allocation6 + $0x51]]  ;;  %s2465_s26 = sld [smem:[#allocation6 + $0x25]] }
  0x46   :  { %v559_v5 = vstv %s2057_s30  ;;  %v572_v8 = vstv %s2084_s4  ;;  %v585_v11 = vstv %s2111_s5  ;;  %v734_v46 = vstv %s2033_s13  ;;  %s2471_s27 = sld [smem:[#allocation6 + $0x39]]  ;;  %s2478_s28 = sld [smem:[#allocation6 + $0x6c]] }
  0x47   :  { %v561_v6 = vmul.f32 %v559_v5, %v2325_v38  ;;  %v560_v7 = vmul.f32 %v559_v5, %v2327_v40  ;;  %v574_v9 = vmul.f32 %v572_v8, %v2325_v38  ;;  %v573_v10 = vmul.f32 %v572_v8, %v2327_v40  ;;  %s2482_s29 = sld [smem:[#allocation6 + $0x40]]  ;;  %s2496_s30 = sld [smem:[#allocation6 + $0x54]] }
  0x48   :  { %313 = vrot.lane.b32.xlu1 %v308_v15, %s2231_s10  ;;  %311 = vrot.lane.b32.xlu0 %v307_v16, %s2231_s10  ;;  %v587_v12 = vmul.f32 %v585_v11, %v2325_v38  ;;  %v586_v13 = vmul.f32 %v585_v11, %v2327_v40  ;;  %v630_v15 = vstv %s1978_s6  ;;  %v2379_v16 = vld [vmem:[#allocation2 + $0x2] sm:$0xff]  ;;  %v736_v49 = vmul.f32 %v734_v46, %v2377_v14  ;;  %s2501_s4 = sld [smem:[#allocation6 + $0x87]]  ;;  %s2506_s5 = sld [smem:[#allocation6 + $0x5b]] }
  0x49   :  { %v632_v17 = vmul.f32 %v630_v15, %v2377_v14  ;;  %v224_v58 = vstv %s2423_s16  ;;  %v229_v5 = vstv %s2437_s20  ;;  %v234_v8 = vstv %s2441_s21  ;;  %s2519_s6 = sld [smem:[#allocation6 + $0x6f]]  ;;  %s2632_s16 = sld [smem:[#allocation6 + $0xd]] }
  0x4a   :  { %v226_v61 = vmul.f32 %v224_v58, %v2277_v1  ;;  %v225_v2 = vmul.f32 %v224_v58, %v2275_v0  ;;  %s2090_s13 = sld [smem:[#allocation6 + $0x77]]  ;;  %s2649_s20 = sld [smem:[#allocation6 + $0x3c]] }
  0x4b   :  { %s2663_s21 = sld [smem:[#allocation6 + $0x43]] }
  0x4c   :  { %326 = vrot.lane.b32.xlu1 %v321_v18, %s2231_s10  ;;  %324 = vrot.lane.b32.xlu0 %v320_v19, %s2231_s10  ;;  %v631_v18 = vmul.f32 %v630_v15, %v2379_v16  ;;  %v643_v19 = vstv %s2005_s0  ;;  %v2489_v15 = vld [vmem:[#allocation2 + $0x10] sm:$0xff]  ;;  %s2530_s0 = sld [smem:[#allocation6 + $0x76]] }
  0x4d   :  { %v645_v20 = vmul.f32 %v643_v19, %v2377_v14 }
  0x50   :  { %339 = vrot.lane.b32.xlu1 %v334_v21, %s2232_s17  ;;  %337 = vrot.lane.b32.xlu0 %v333_v22, %s2232_s17  ;;  %v644_v21 = vmul.f32 %v643_v19, %v2379_v16  ;;  %v656_v22 = vstv %s2032_s7  ;;  %s2540_s7 = sld [smem:[#allocation6 + $0x8a]] }
  0x51   :  { %v658_v23 = vmul.f32 %v656_v22, %v2377_v14 }
  0x54   :  { %352 = vrot.lane.b32.xlu1 %v347_v24, %s2232_s17  ;;  %350 = vrot.lane.b32.xlu0 %v346_v25, %s2232_s17  ;;  %v657_v24 = vmul.f32 %v656_v22, %v2379_v16  ;;  %v669_v25 = vstv %s2059_s8  ;;  %v417_v22 = vstv %s2452_s23  ;;  %s2551_s8 = sld [smem:[#allocation6 + $0x91]]  ;;  %s2677_s23 = sld [smem:[#allocation6 + $0x5e]] }
  0x55   :  { %v671_v26 = vmul.f32 %v669_v25, %v2377_v14 }
  0x58   :  { %365 = vrot.lane.b32.xlu1 %v360_v27, %s2232_s17  ;;  %363 = vrot.lane.b32.xlu0 %v359_v28, %s2232_s17  ;;  %v670_v27 = vmul.f32 %v669_v25, %v2379_v16  ;;  %v682_v28 = vstv %s2086_s2  ;;  %s2569_s2 = sld [smem:[#allocation6 + $0xb]] }
  0x59   :  { %v684_v29 = vmul.f32 %v682_v28, %v2377_v14 }
  0x5c   :  { %378 = vrot.lane.b32.xlu1 %v373_v30, %s2232_s17  ;;  %376 = vrot.lane.b32.xlu0 %v372_v31, %s2232_s17  ;;  %v683_v30 = vmul.f32 %v682_v28, %v2379_v16  ;;  %v695_v31 = vstv %s2113_s9  ;;  %s2585_s9 = sld [smem:[#allocation6 + $0x26]] }
  0x5d   :  { %v697_v32 = vmul.f32 %v695_v31, %v2377_v14 }
  0x60   :  { %391 = vrot.lane.b32.xlu1 %v386_v33, %s2232_s17  ;;  %389 = vrot.lane.b32.xlu0 %v385_v34, %s2232_s17  ;;  %v696_v33 = vmul.f32 %v695_v31, %v2379_v16  ;;  %v708_v34 = vstv %s1979_s11  ;;  %s2036_s11 = sld [smem:[#allocation6 + $0x41]] }
  0x61   :  { %v709_v39 = vmul.f32 %v708_v34, %v2379_v16 }
  0x64   :  { %404 = vrot.lane.b32.xlu1 %v399_v36, %s2232_s17  ;;  %402 = vrot.lane.b32.xlu0 %v398_v37, %s2232_s17  ;;  %v710_v37 = vmul.f32 %v708_v34, %v2377_v14  ;;  %v419_v34 = vmul.f32 %v417_v22, %v2325_v38 }
  0x68   :  { %449 = vrot.lane.b32.xlu1 %v444_v41, %s2231_s10  ;;  %447 = vrot.lane.b32.xlu0 %v443_v42, %s2231_s10  ;;  %v721_v41 = vstv %s2006_s12  ;;  %s2063_s12 = sld [smem:[#allocation6 + $0x5c]] }
  0x6c   :  { %462 = vrot.lane.b32.xlu1 %v457_v44, %s2231_s10  ;;  %460 = vrot.lane.b32.xlu0 %v456_v45, %s2231_s10  ;;  %v723_v44 = vmul.f32 %v721_v41, %v2377_v14  ;;  %v722_v45 = vmul.f32 %v721_v41, %v2379_v16  ;;  %v418_v41 = vmul.f32 %v417_v22, %v2327_v40 }
  0x70   :  { %475 = vrot.lane.b32.xlu1 %v470_v47, %s2231_s10  ;;  %473 = vrot.lane.b32.xlu0 %v469_v48, %s2231_s10 }
  0x74   :  { %488 = vrot.lane.b32.xlu1 %v483_v50, %s2231_s10  ;;  %486 = vrot.lane.b32.xlu0 %v482_v51, %s2231_s10  ;;  %v735_v50 = vmul.f32 %v734_v46, %v2379_v16  ;;  %v747_v51 = vstv %s2060_s14  ;;  %s2117_s14 = sld [smem:[#allocation6 + $0x92]] }
  0x75   :  { %v748_v55 = vmul.f32 %v747_v51, %v2379_v16 }
  0x78   :  { %501 = vrot.lane.b32.xlu1 %v496_v53, %s2231_s10  ;;  %499 = vrot.lane.b32.xlu0 %v495_v54, %s2231_s10  ;;  %v749_v54 = vmul.f32 %v747_v51, %v2377_v14  ;;  %v845_v51 = vstv %s2482_s29  ;;  %s2735_s29 = sld [smem:[#allocation6 + $0xe]] }
  0x7c   :  { %514 = vrot.lane.b32.xlu1 %v509_v56, %s2231_s10  ;;  %512 = vrot.lane.b32.xlu0 %v508_v57, %s2231_s10  ;;  %v760_v56 = vstv %s2419_s15  ;;  %s2624_s15 = sld [smem:[#allocation6 + $0x6]] }
  0x80   :  { %527 = vrot.lane.b32.xlu1 %v522_v59, %s2232_s17  ;;  %525 = vrot.lane.b32.xlu0 %v521_v60, %s2232_s17  ;;  %v762_v60 = vmul.f32 %v760_v56, %v2377_v14 }
  0x84   :  { %540 = vrot.lane.b32.xlu1 %v535_v62, %s2232_s17  ;;  %538 = vrot.lane.b32.xlu0 %v534_v63, %s2232_s17  ;;  %v761_v62 = vmul.f32 %v760_v56, %v2379_v16  ;;  %v773_v63 = vstv %s2431_s18  ;;  %s2636_s18 = sld [smem:[#allocation6 + $0x21]] }
  0x85   :  { %v774_v11 = vmul.f32 %v773_v63, %v2379_v16 }
  0x88   :  { %553 = vrot.lane.b32.xlu1 %v548_v3, %s2232_s17  ;;  %551 = vrot.lane.b32.xlu0 %v547_v4, %s2232_s17  ;;  %v412_v4 = vstv %s2435_s19  ;;  %s2644_s19 = sld [smem:[#allocation6 + $0x28]] }
  0x8c   :  { %566 = vrot.lane.b32.xlu1 %v561_v6, %s2232_s17  ;;  %564 = vrot.lane.b32.xlu0 %v560_v7, %s2232_s17  ;;  %v231_v7 = vmul.f32 %v229_v5, %v2277_v1 }
  0x90   :  { %579 = vrot.lane.b32.xlu1 %v574_v9, %s2232_s17  ;;  %577 = vrot.lane.b32.xlu0 %v573_v10, %s2232_s17  ;;  %v775_v9 = vmul.f32 %v773_v63, %v2377_v14 }
  0x94   :  { %592 = vrot.lane.b32.xlu1 %v587_v12, %s2232_s17  ;;  %590 = vrot.lane.b32.xlu0 %v586_v13, %s2232_s17  ;;  %v2486_v12 = vld [vmem:[#allocation2 + $0x18] sm:$0x3f]  ;;  %v819_v13 = vstv %s2448_s22  ;;  %s2669_s22 = sld [smem:[#allocation6 + $0x57]] }
  0x98   :  { %637 = vrot.lane.b32.xlu1 %v632_v17, %s2231_s10  ;;  %635 = vrot.lane.b32.xlu0 %v631_v18, %s2231_s10  ;;  %v414_v17 = vmul.f32 %v412_v4, %v2325_v38  ;;  %v230_v18 = vmul.f32 %v229_v5, %v2275_v0 }
  0x9c   :  { %650 = vrot.lane.b32.xlu1 %v645_v20, %s2231_s10  ;;  %648 = vrot.lane.b32.xlu0 %v644_v21, %s2231_s10  ;;  %v413_v21 = vmul.f32 %v412_v4, %v2327_v40 }
  0xa0   :  { %663 = vrot.lane.b32.xlu1 %v658_v23, %s2231_s10  ;;  %661 = vrot.lane.b32.xlu0 %v657_v24, %s2231_s10  ;;  %v236_v23 = vmul.f32 %v234_v8, %v2277_v1  ;;  %v239_v24 = vstv %s2455_s24  ;;  %s2688_s24 = sld [smem:[#allocation6 + $0x72]] }
  0xa4   :  { %676 = vrot.lane.b32.xlu1 %v671_v26, %s2231_s10  ;;  %674 = vrot.lane.b32.xlu0 %v670_v27, %s2231_s10  ;;  %v235_v27 = vmul.f32 %v234_v8, %v2275_v0  ;;  %v249_v8 = vstv %s2501_s4  ;;  %s2039_s4 = sld [smem:[#allocation6 + $0x44]] }
  0xa8   :  { %689 = vrot.lane.b32.xlu1 %v684_v29, %s2231_s10  ;;  %687 = vrot.lane.b32.xlu0 %v683_v30, %s2231_s10  ;;  %v821_v29 = vmul.f32 %v819_v13, %v2486_v12  ;;  %v820_v30 = vmul.f32 %v819_v13, %v2489_v15  ;;  %v846_v13 = vmul.f32 %v845_v51, %v2489_v15 }
  0xaa   :  { %v2405_v35 = vpop.permute.xlu1 %272  ;;  %v2407_v36 = vpop.permute.xlu0 %259 }
  0xab   :  { %v265_v19 = vadd.f32 %v2407_v36, %v225_v2  ;;  %v278_v36 = vadd.f32 %v2405_v35, %v230_v18 }
  0xac   :  { %702 = vrot.lane.b32.xlu1 %v697_v32, %s2231_s10  ;;  %700 = vrot.lane.b32.xlu0 %v696_v33, %s2231_s10  ;;  %v832_v32 = vstv %s2465_s26  ;;  %s2697_s26 = sld [smem:[#allocation6 + $0x79]] }
  0xad   :  { %v834_v35 = vmul.f32 %v832_v32, %v2486_v12 }
  0xae   :  { %v2413_v42 = vpop.permute.xlu1 %274  ;;  %v262_v43 = vpop.permute.xlu0 %261 }
  0xaf   :  { %v266_v10 = vadd.f32 %v262_v43, %v226_v61  ;;  %v279_v31 = vadd.f32 %v2413_v42, %v231_v7  ;;  %v422_v43 = vstv %s2471_s27  ;;  %v241_v42 = vmul.f32 %v239_v24, %v2277_v1  ;;  %s2708_s27 = sld [smem:[#allocation6 + $0x8d]] }
  0xb0   :  { %715 = vrot.lane.b32.xlu1 %v710_v37, %s2232_s17  ;;  %713 = vrot.lane.b32.xlu0 %v709_v39, %s2232_s17  ;;  %v424_v58 = vmul.f32 %v422_v43, %v2325_v38  ;;  %v423_v63 = vmul.f32 %v422_v43, %v2327_v40 }
  0xb2   :  { %v2421_v47 = vpop.permute.xlu1 %287  ;;  %v2425_v48 = vpop.permute.xlu0 %285 }
  0xb4   :  { %728 = vrot.lane.b32.xlu1 %v723_v44, %s2232_s17  ;;  %726 = vrot.lane.b32.xlu0 %v722_v45, %s2232_s17  ;;  %v240_v44 = vmul.f32 %v239_v24, %v2275_v0 }
  0xb6   :  { %v2433_v52 = vpop.permute.xlu1 %300  ;;  %v2439_v53 = vpop.permute.xlu0 %298 }
  0xb8   :  { %741 = vrot.lane.b32.xlu1 %v736_v49, %s2232_s17  ;;  %739 = vrot.lane.b32.xlu0 %v735_v50, %s2232_s17  ;;  %v244_v49 = vstv %s2478_s28  ;;  %s2717_s28 = sld [smem:[#allocation6 + $0x94]] }
  0xb9   :  { %v246_v2 = vmul.f32 %v244_v49, %v2277_v1  ;;  %v245_v4 = vmul.f32 %v244_v49, %v2275_v0 }
  0xba   :  { %v2450_v57 = vpop.permute.xlu1 %313  ;;  %v2457_v59 = vpop.permute.xlu0 %311 }
  0xbc   :  { %754 = vrot.lane.b32.xlu1 %v749_v54, %s2232_s17  ;;  %752 = vrot.lane.b32.xlu0 %v748_v55, %s2232_s17  ;;  %v292_v54 = vadd.f32 %v2421_v47, %v236_v23  ;;  %v833_v55 = vmul.f32 %v832_v32, %v2489_v15  ;;  %v427_v47 = vstv %s2496_s30  ;;  %v432_v23 = vstv %s2519_s6  ;;  %s2753_s30 = sld [smem:[#allocation6 + $0x29]]  ;;  %s2093_s6 = sld [smem:[#allocation6 + $0x7a]] }
  0xbd   :  { %v429_v18 = vmul.f32 %v427_v47, %v2325_v38  ;;  %v428_v22 = vmul.f32 %v427_v47, %v2327_v40 }
  0xbe   :  { %v2468_v3 = vpop.permute.xlu1 %326  ;;  %v2474_v6 = vpop.permute.xlu0 %324 }
  0xc0   :  { %767 = vrot.lane.b32.xlu1 %v762_v60, %s2232_s17  ;;  %765 = vrot.lane.b32.xlu0 %v761_v62, %s2232_s17  ;;  %v291_v60 = vadd.f32 %v2425_v48, %v235_v27  ;;  %v847_v48 = vmul.f32 %v845_v51, %v2486_v12 }
  0xc2   :  { %v340_v20 = vpop.permute.xlu1 %339  ;;  %v338_v26 = vpop.permute.xlu0 %337 }
  0xc3   :  { %v344_v25 = vadd.f32 %v340_v20, %v266_v10  ;;  %v343_v28 = vadd.f32 %v338_v26, %v265_v19  ;;  %v858_v10 = vstv %s2506_s5  ;;  %v304_v19 = vadd.f32 %v2439_v53, %v240_v44  ;;  %s2066_s5 = sld [smem:[#allocation6 + $0x5f]] }
  0xc4   :  { %780 = vrot.lane.b32.xlu1 %v775_v9, %s2232_s17  ;;  %778 = vrot.lane.b32.xlu0 %v774_v11, %s2232_s17  ;;  %v305_v11 = vadd.f32 %v2433_v52, %v241_v42  ;;  %v251_v52 = vmul.f32 %v249_v8, %v2277_v1  ;;  %v250_v26 = vmul.f32 %v249_v8, %v2275_v0 }
  0xc5   :  { %v2511_v33 = vadd.f32 %v414_v17, %v344_v25  ;;  %v2515_v39 = vadd.f32 %v413_v21, %v343_v28  ;;  %v860_v28 = vmul.f32 %v858_v10, %v2486_v12  ;;  %v859_v53 = vmul.f32 %v858_v10, %v2489_v15 }
  0xc6   :  { %v353_v37 = vpop.permute.xlu1 %352  ;;  %v351_v46 = vpop.permute.xlu0 %350  ;;  %v317_v0 = vadd.f32 %v2457_v59, %v245_v4  ;;  %v884_v59 = vstv %s2551_s8  ;;  %v923_v10 = vstv %s2036_s11  ;;  %s2014_s8 = sld [smem:[#allocation6 + $0x2b]]  ;;  %s2095_s11 = sld [smem:[#allocation6 + $0x7c]] }
  0xc7   :  { %v357_v45 = vadd.f32 %v353_v37, %v279_v31  ;;  %v356_v50 = vadd.f32 %v351_v46, %v278_v36  ;;  %v434_v31 = vmul.f32 %v432_v23, %v2325_v38  ;;  %v433_v36 = vmul.f32 %v432_v23, %v2327_v40 }
  0xc8   :  { %826 = vrot.lane.b32.xlu1 %v821_v29, %s2231_s10  ;;  %824 = vrot.lane.b32.xlu0 %v820_v30, %s2231_s10  ;;  %v318_v29 = vadd.f32 %v2450_v57, %v246_v2  ;;  %v871_v30 = vstv %s2530_s0  ;;  %v437_v37 = vstv %s2540_s7  ;;  %s2120_s0 = sld [smem:[#allocation6 + $0x95]]  ;;  %s1987_s7 = sld [smem:[#allocation6 + $0x10]] }
  0xc9   :  { %v2532_v56 = vadd.f32 %v419_v34, %v357_v45  ;;  %v2536_v62 = vadd.f32 %v418_v41, %v356_v50  ;;  %v873_v42 = vmul.f32 %v871_v30, %v2486_v12  ;;  %v872_v44 = vmul.f32 %v871_v30, %v2489_v15 }
  0xca   :  { %v366_v61 = vpop.permute.xlu1 %365  ;;  %v364_v7 = vpop.permute.xlu0 %363  ;;  %v331_v45 = vadd.f32 %v2468_v3, %v251_v52  ;;  %v439_v49 = vmul.f32 %v437_v37, %v2325_v38  ;;  %v330_v50 = vadd.f32 %v2474_v6, %v250_v26  ;;  %v897_v38 = vstv %s2569_s2  ;;  %s2041_s2 = sld [smem:[#allocation6 + $0x46]] }
  0xcb   :  { %v370_v5 = vadd.f32 %v366_v61, %v292_v54  ;;  %v369_v9 = vadd.f32 %v364_v7, %v291_v60  ;;  %v438_v54 = vmul.f32 %v437_v37, %v2327_v40  ;;  %v886_v60 = vmul.f32 %v884_v59, %v2486_v12 }
  0xcc   :  { %839 = vrot.lane.b32.xlu1 %v834_v35, %s2231_s10  ;;  %837 = vrot.lane.b32.xlu0 %v833_v55, %s2231_s10  ;;  %v885_v61 = vmul.f32 %v884_v59, %v2489_v15  ;;  %v899_v2 = vmul.f32 %v897_v38, %v2486_v12  ;;  %v898_v4 = vmul.f32 %v897_v38, %v2489_v15 }
  0xcd   :  { %v2553_v17 = vadd.f32 %v424_v58, %v370_v5  ;;  %v2557_v21 = vadd.f32 %v423_v63, %v369_v9  ;;  %v910_v5 = vstv %s2585_s9  ;;  %s2068_s9 = sld [smem:[#allocation6 + $0x61]] }
  0xce   :  { %v379_v20 = vpop.permute.xlu1 %378  ;;  %v377_v25 = vpop.permute.xlu0 %376  ;;  %v912_v9 = vmul.f32 %v910_v5, %v2486_v12 }
  0xcf   :  { %v383_v24 = vadd.f32 %v379_v20, %v305_v11  ;;  %v382_v27 = vadd.f32 %v377_v25, %v304_v19  ;;  %v924_v19 = vmul.f32 %v923_v10, %v2489_v15  ;;  %v936_v20 = vstv %s2063_s12  ;;  %s2122_s12 = sld [smem:[#allocation6 + $0x97]] }
  0xd0   :  { %852 = vrot.lane.b32.xlu1 %v847_v48, %s2231_s10  ;;  %850 = vrot.lane.b32.xlu0 %v846_v13, %s2231_s10  ;;  %v911_v48 = vmul.f32 %v910_v5, %v2489_v15  ;;  %v938_v52 = vmul.f32 %v936_v20, %v2486_v12  ;;  %v949_v25 = vstv %s2090_s13  ;;  %s1988_s13 = sld [smem:[#allocation6 + $0x11]] }
  0xd1   :  { %v2571_v1 = vadd.f32 %v429_v18, %v383_v24  ;;  %v2575_v34 = vadd.f32 %v428_v22, %v382_v27  ;;  %v925_v18 = vmul.f32 %v923_v10, %v2486_v12  ;;  %v937_v24 = vmul.f32 %v936_v20, %v2489_v15 }
  0xd2   :  { %v392_v32 = vpop.permute.xlu1 %391  ;;  %v390_v57 = vpop.permute.xlu0 %389  ;;  %v615_v20 = vstv %s2669_s22  ;;  %s2044_s22 = sld [smem:[#allocation6 + $0x49]] }
  0xd3   :  { %v396_v41 = vadd.f32 %v392_v32, %v318_v29  ;;  %v395_v43 = vadd.f32 %v390_v57, %v317_v0  ;;  %v962_v29 = vstv %s2117_s14  ;;  %v1007_v57 = vstv %s2632_s16  ;;  %s2015_s14 = sld [smem:[#allocation6 + $0x2c]]  ;;  %s2069_s16 = sld [smem:[#allocation6 + $0x62]] }
  0xd4   :  { %865 = vrot.lane.b32.xlu1 %v860_v28, %s2231_s10  ;;  %863 = vrot.lane.b32.xlu0 %v859_v53, %s2231_s10  ;;  %v951_v28 = vmul.f32 %v949_v25, %v2486_v12  ;;  %v950_v53 = vmul.f32 %v949_v25, %v2489_v15  ;;  %v964_v32 = vmul.f32 %v962_v29, %v2486_v12 }
  0xd5   :  { %v2587_v46 = vadd.f32 %v434_v31, %v396_v41  ;;  %v2591_v51 = vadd.f32 %v433_v36, %v395_v43  ;;  %v600_v31 = vstv %s2624_s15  ;;  %v963_v37 = vmul.f32 %v962_v29, %v2489_v15  ;;  %v2658_v41 = vld [vmem:[#allocation2 + $0x19] sm:$0x3f]  ;;  %v2661_v43 = vld [vmem:[#allocation2 + $0x11] sm:$0xff]  ;;  %s2042_s15 = sld [smem:[#allocation6 + $0x47]] }
  0xd6   :  { %v405_v35 = vpop.permute.xlu1 %404  ;;  %v403_v58 = vpop.permute.xlu0 %402  ;;  %v601_v12 = vmul.f32 %v600_v31, %v2379_v16 }
  0xd7   :  { %v409_v55 = vadd.f32 %v405_v35, %v331_v45  ;;  %v408_v3 = vadd.f32 %v403_v58, %v330_v50  ;;  %v1009_v50 = vmul.f32 %v1007_v57, %v2658_v41  ;;  %v1008_v35 = vmul.f32 %v1007_v57, %v2661_v43 }
  0xd8   :  { %878 = vrot.lane.b32.xlu1 %v873_v42, %s2231_s10  ;;  %876 = vrot.lane.b32.xlu0 %v872_v44, %s2231_s10  ;;  %v602_v42 = vmul.f32 %v600_v31, %v2377_v14 }
  0xd9   :  { %v2599_v6 = vadd.f32 %v439_v49, %v409_v55  ;;  %v2601_v47 = vadd.f32 %v438_v54, %v408_v3 }
  0xda   :  { %v450_v63 = vpop.permute.xlu1 %449  ;;  %v448_v40 = vpop.permute.xlu0 %447 }
  0xdb   :  { %v454_v36 = vadd.f32 %v450_v63, %v2511_v33  ;;  %v453_v44 = vadd.f32 %v448_v40, %v2515_v39  ;;  %v605_v33 = vstv %s2636_s18  ;;  %v1020_v39 = vstv %s2644_s19  ;;  %s2096_s18 = sld [smem:[#allocation6 + $0x7d]]  ;;  %s2123_s19 = sld [smem:[#allocation6 + $0x98]] }
  0xdc   :  { %891 = vrot.lane.b32.xlu1 %v886_v60, %s2231_s10  ;;  %889 = vrot.lane.b32.xlu0 %v885_v61, %s2231_s10  ;;  %v607_v58 = vmul.f32 %v605_v33, %v2377_v14  ;;  %v606_v38 = vmul.f32 %v605_v33, %v2379_v16  ;;  %v610_v63 = vstv %s2649_s20  ;;  %v1021_v5 = vmul.f32 %v1020_v39, %v2661_v43  ;;  %s1990_s20 = sld [smem:[#allocation6 + $0x13]] }
  0xde   :  { %v463_v7 = vpop.permute.xlu1 %462  ;;  %v2608_v8 = vpop.permute.xlu0 %460 }
  0xdf   :  { %v467_v54 = vadd.f32 %v463_v7, %v2532_v56  ;;  %v466_v3 = vadd.f32 %v2608_v8, %v2536_v62  ;;  %v1033_v7 = vstv %s2663_s21  ;;  %s2017_s21 = sld [smem:[#allocation6 + $0x2e]] }
  0xe0   :  { %904 = vrot.lane.b32.xlu1 %v899_v2, %s2232_s17  ;;  %902 = vrot.lane.b32.xlu0 %v898_v4, %s2232_s17  ;;  %v1022_v4 = vmul.f32 %v1020_v39, %v2658_v41  ;;  %v1034_v25 = vmul.f32 %v1033_v7, %v2661_v43 }
  0xe2   :  { %v2614_v11 = vpop.permute.xlu1 %475  ;;  %v2616_v13 = vpop.permute.xlu0 %473 }
  0xe3   :  { %v480_v62 = vadd.f32 %v2614_v11, %v2553_v17 }
  0xe4   :  { %917 = vrot.lane.b32.xlu1 %v912_v9, %s2232_s17  ;;  %915 = vrot.lane.b32.xlu0 %v911_v48, %s2232_s17  ;;  %v612_v9 = vmul.f32 %v610_v63, %v2377_v14  ;;  %v479_v48 = vadd.f32 %v2616_v13, %v2557_v21  ;;  %v1046_v13 = vstv %s2677_s23  ;;  %s2071_s23 = sld [smem:[#allocation6 + $0x64]] }
  0xe6   :  { %v2622_v22 = vpop.permute.xlu1 %488  ;;  %v2626_v23 = vpop.permute.xlu0 %486 }
  0xe7   :  { %v493_v21 = vadd.f32 %v2622_v22, %v2571_v1  ;;  %v492_v29 = vadd.f32 %v2626_v23, %v2575_v34  ;;  %v1059_v34 = vstv %s2697_s26  ;;  %s2125_s26 = sld [smem:[#allocation6 + $0x9a]] }
  0xe8   :  { %930 = vrot.lane.b32.xlu1 %v925_v18, %s2232_s17  ;;  %928 = vrot.lane.b32.xlu0 %v924_v19, %s2232_s17  ;;  %v611_v19 = vmul.f32 %v610_v63, %v2379_v16  ;;  %v1060_v39 = vmul.f32 %v1059_v34, %v2661_v43 }
  0xea   :  { %v2634_v26 = vpop.permute.xlu1 %501  ;;  %v2638_v27 = vpop.permute.xlu0 %499 }
  0xeb   :  { %v505_v33 = vadd.f32 %v2638_v27, %v2591_v51  ;;  %v1072_v51 = vstv %s2717_s28  ;;  %s2965_s28 = sld [smem:[#allocation6 + $0x2f]] }
  0xec   :  { %943 = vrot.lane.b32.xlu1 %v938_v52, %s2232_s17  ;;  %941 = vrot.lane.b32.xlu0 %v937_v24, %s2232_s17  ;;  %v1035_v24 = vmul.f32 %v1033_v7, %v2658_v41 }
  0xee   :  { %v2646_v30 = vpop.permute.xlu1 %514  ;;  %v2651_v0 = vpop.permute.xlu0 %512 }
  0xf0   :  { %956 = vrot.lane.b32.xlu1 %v951_v28, %s2232_s17  ;;  %954 = vrot.lane.b32.xlu0 %v950_v53, %s2232_s17  ;;  %v617_v53 = vmul.f32 %v615_v20, %v2377_v14 }
  0xf2   :  { %v528_v45 = vpop.permute.xlu1 %527  ;;  %v526_v15 = vpop.permute.xlu0 %525 }
  0xf3   :  { %v532_v59 = vadd.f32 %v528_v45, %v454_v36  ;;  %v531_v49 = vadd.f32 %v526_v15, %v453_v44  ;;  %v616_v36 = vmul.f32 %v615_v20, %v2379_v16  ;;  %v1047_v44 = vmul.f32 %v1046_v13, %v2661_v43 }
  0xf4   :  { %969 = vrot.lane.b32.xlu1 %v964_v32, %s2232_s17  ;;  %967 = vrot.lane.b32.xlu0 %v963_v37, %s2232_s17  ;;  %v620_v37 = vstv %s2688_s24  ;;  %v506_v45 = vadd.f32 %v2634_v26, %v2587_v46  ;;  %s2098_s24 = sld [smem:[#allocation6 + $0x7f]] }
  0xf5   :  { %v2679_v55 = vadd.f32 %v602_v42, %v532_v59  ;;  %v2684_v61 = vadd.f32 %v601_v12, %v531_v49  ;;  %v1048_v42 = vmul.f32 %v1046_v13, %v2658_v41  ;;  %v622_v12 = vmul.f32 %v620_v37, %v2377_v14 }
  0xf6   :  { %v541_v60 = vpop.permute.xlu1 %540  ;;  %v539_v40 = vpop.permute.xlu0 %538  ;;  %v621_v49 = vmul.f32 %v620_v37, %v2379_v16 }
  0xf7   :  { %v545_v56 = vadd.f32 %v541_v60, %v467_v54  ;;  %v544_v2 = vadd.f32 %v539_v40, %v466_v3  ;;  %v1061_v54 = vmul.f32 %v1059_v34, %v2658_v41  ;;  %v518_v60 = vadd.f32 %v2651_v0, %v2601_v47 }
  0xf8   :  { %1014 = vrot.lane.b32.xlu1 %v1009_v50, %s2231_s10  ;;  %1012 = vrot.lane.b32.xlu0 %v1008_v35, %s2231_s10  ;;  %v625_v50 = vstv %s2708_s27  ;;  %s1991_s27 = sld [smem:[#allocation6 + $0x14]] }
  0xf9   :  { %v2699_v8 = vadd.f32 %v607_v58, %v545_v56  ;;  %v2704_v18 = vadd.f32 %v606_v38, %v544_v2  ;;  %v519_v58 = vadd.f32 %v2646_v30, %v2599_v6  ;;  %v627_v3 = vmul.f32 %v625_v50, %v2377_v14 }
  0xfa   :  { %v554_v10 = vpop.permute.xlu1 %553  ;;  %v552_v11 = vpop.permute.xlu0 %551  ;;  %v626_v56 = vmul.f32 %v625_v50, %v2379_v16  ;;  %v1074_v2 = vmul.f32 %v1072_v51, %v2658_v41  ;;  %v1073_v14 = vmul.f32 %v1072_v51, %v2661_v43  ;;  %v2825_v50 = vld [vmem:[#allocation2 + $0x12] sm:$0xff] }
  0xfb   :  { %v558_v17 = vadd.f32 %v554_v10, %v480_v62  ;;  %v557_v52 = vadd.f32 %v552_v11, %v479_v48  ;;  %3799 = vst [vmem:[#allocation16_spill] sm:$0xff] %v2825_v50 }
  0xfc   :  { %1027 = vrot.lane.b32.xlu1 %v1022_v4, %s2231_s10  ;;  %1025 = vrot.lane.b32.xlu0 %v1021_v5, %s2231_s10  ;;  %v1085_v4 = vstv %s2735_s29  ;;  %s2975_s29 = sld [smem:[#allocation6 + $0x4a]] }
  0xfd   :  { %v2719_v28 = vadd.f32 %v612_v9, %v558_v17  ;;  %v2724_v32 = vadd.f32 %v611_v19, %v557_v52  ;;  %v1087_v62 = vmul.f32 %v1085_v4, %v2658_v41  ;;  %v1086_v7 = vmul.f32 %v1085_v4, %v2661_v43 }
  0xfe   :  { %v567_v31 = vpop.permute.xlu1 %566  ;;  %v565_v22 = vpop.permute.xlu0 %564  ;;  %v1098_v9 = vstv %s2753_s30  ;;  %v1111_v17 = vstv %s2039_s4  ;;  %s2979_s30 = sld [smem:[#allocation6 + $0x9]]  ;;  %s2981_s4 = sld [smem:[#allocation6 + $0x24]] }
  0xff   :  { %v571_v1 = vadd.f32 %v567_v31, %v493_v21  ;;  %v570_v57 = vadd.f32 %v565_v22, %v492_v29  ;;  %v1100_v19 = vmul.f32 %v1098_v9, %v2658_v41  ;;  %v1099_v20 = vmul.f32 %v1098_v9, %v2661_v43 }
 0x100   :  { %1040 = vrot.lane.b32.xlu1 %v1035_v24, %s2231_s10  ;;  %1038 = vrot.lane.b32.xlu0 %v1034_v25, %s2231_s10  ;;  %v1113_v24 = vmul.f32 %v1111_v17, %v2658_v41  ;;  %v1112_v25 = vmul.f32 %v1111_v17, %v2661_v43  ;;  %v1124_v21 = vstv %s2066_s5  ;;  %s2985_s5 = sld [smem:[#allocation6 + $0x3f]] }
 0x101   :  { %v2737_v23 = vadd.f32 %v617_v53, %v571_v1  ;;  %v2742_v15 = vadd.f32 %v616_v36, %v570_v57  ;;  %v1126_v29 = vmul.f32 %v1124_v21, %v2658_v41  ;;  %v1125_v31 = vmul.f32 %v1124_v21, %v2661_v43 }
 0x102   :  { %v580_v59 = vpop.permute.xlu1 %579  ;;  %v578_v26 = vpop.permute.xlu0 %577  ;;  %v1137_v36 = vstv %s2093_s6  ;;  %s2989_s6 = sld [smem:[#allocation6 + $0x5a]] }
 0x103   :  { %v584_v46 = vadd.f32 %v580_v59, %v506_v45  ;;  %v583_v35 = vadd.f32 %v578_v26, %v505_v33  ;;  %v1139_v22 = vmul.f32 %v1137_v36, %v2658_v41  ;;  %v1138_v57 = vmul.f32 %v1137_v36, %v2661_v43  ;;  %v2821_v33 = vld [vmem:[#allocation2 + $0x1a] sm:$0x3f] }
 0x104   :  { %1053 = vrot.lane.b32.xlu1 %v1048_v42, %s2231_s10  ;;  %1051 = vrot.lane.b32.xlu0 %v1047_v44, %s2231_s10  ;;  %v1150_v42 = vstv %s2120_s0  ;;  %v1195_v59 = vstv %s1987_s7  ;;  %s2994_s0 = sld [smem:[#allocation6 + $0x65]] }
 0x105   :  { %v2755_v27 = vadd.f32 %v622_v12, %v584_v46  ;;  %v2760_v63 = vadd.f32 %v621_v49, %v583_v35  ;;  %v1152_v34 = vmul.f32 %v1150_v42, %v2658_v41  ;;  %v1151_v12 = vmul.f32 %v1150_v42, %v2661_v43  ;;  %s2996_s7 = sld [smem:[#allocation6 + $0x75]] }
 0x106   :  { %v593_v38 = vpop.permute.xlu1 %592  ;;  %v591_v6 = vpop.permute.xlu0 %590  ;;  %v1197_v26 = vmul.f32 %v1195_v59, %v2821_v33  ;;  %v1196_v35 = vmul.f32 %v1195_v59, %v2825_v50  ;;  %v1273_v36 = vstv %s1988_s13  ;;  %s3023_s13 = sld [smem:[#allocation6 + $0x5d]] }
 0x107   :  { %3797 = vst [vmem:[#allocation14_spill] sm:$0xff] %v2760_v63  ;;  %v597_v40 = vadd.f32 %v593_v38, %v519_v58  ;;  %v596_v30 = vadd.f32 %v591_v6, %v518_v60  ;;  %v1221_v60 = vstv %s2041_s2  ;;  %v1275_v42 = vmul.f32 %v1273_v36, %v2821_v33  ;;  %s3004_s2 = sld [smem:[#allocation6 + $0xc]] }
 0x108   :  { %1066 = vrot.lane.b32.xlu1 %v1061_v54, %s2231_s10  ;;  %1064 = vrot.lane.b32.xlu0 %v1060_v39, %s2231_s10  ;;  %v1208_v54 = vstv %s2014_s8  ;;  %v1222_v6 = vmul.f32 %v1221_v60, %v2825_v50  ;;  %s3000_s8 = sld [smem:[#allocation6 + $0x90]] }
 0x109   :  { %v2768_v47 = vadd.f32 %v627_v3, %v597_v40  ;;  %v2772_v5 = vadd.f32 %v626_v56, %v596_v30  ;;  %v1210_v51 = vmul.f32 %v1208_v54, %v2821_v33  ;;  %v1209_v3 = vmul.f32 %v1208_v54, %v2825_v50 }
 0x10a   :  { %v2770_v0 = vpop.permute.xlu1 %637  ;;  %v2774_v16 = vpop.permute.xlu0 %635  ;;  %v1223_v40 = vmul.f32 %v1221_v60, %v2821_v33  ;;  %v1234_v30 = vstv %s2068_s9  ;;  %s3006_s9 = sld [smem:[#allocation6 + $0x27]] }
 0x10b   :  { %v1236_v4 = vmul.f32 %v1234_v30, %v2821_v33 }
 0x10c   :  { %1079 = vrot.lane.b32.xlu1 %v1074_v2, %s2231_s10  ;;  %1077 = vrot.lane.b32.xlu0 %v1073_v14, %s2231_s10 }
 0x10e   :  { %v2781_v48 = vpop.permute.xlu1 %650  ;;  %v2783_v10 = vpop.permute.xlu0 %648  ;;  %v814_v63 = vstv %s3000_s8  ;;  %s3418_s8 = sld [smem:[#allocation6 + $0x9e]] }
 0x110   :  { %1092 = vrot.lane.b32.xlu1 %v1087_v62, %s2232_s17  ;;  %1090 = vrot.lane.b32.xlu0 %v1086_v7, %s2232_s17  ;;  %v1235_v62 = vmul.f32 %v1234_v30, %v2825_v50  ;;  %v1247_v7 = vstv %s2095_s11  ;;  %v1312_v30 = vstv %s2069_s16  ;;  %s3013_s11 = sld [smem:[#allocation6 + $0x80]]  ;;  %s3036_s16 = sld [smem:[#allocation6 + $0x9b]] }
 0x111   :  { %v1248_v17 = vmul.f32 %v1247_v7, %v2825_v50 }
 0x112   :  { %v2789_v11 = vpop.permute.xlu1 %663  ;;  %v2791_v52 = vpop.permute.xlu0 %661 }
 0x114   :  { %1105 = vrot.lane.b32.xlu1 %v1100_v19, %s2232_s17  ;;  %1103 = vrot.lane.b32.xlu0 %v1099_v20, %s2232_s17  ;;  %v1249_v20 = vmul.f32 %v1247_v7, %v2821_v33  ;;  %v1314_v7 = vmul.f32 %v1312_v30, %v2821_v33 }
 0x116   :  { %v2797_v13 = vpop.permute.xlu1 %676  ;;  %v2799_v53 = vpop.permute.xlu0 %674 }
 0x118   :  { %1118 = vrot.lane.b32.xlu1 %v1113_v24, %s2232_s17  ;;  %1116 = vrot.lane.b32.xlu0 %v1112_v25, %s2232_s17  ;;  %v1260_v24 = vstv %s2122_s12  ;;  %s3015_s12 = sld [smem:[#allocation6 + $0x42]] }
 0x11a   :  { %v2805_v37 = vpop.permute.xlu1 %689  ;;  %v2807_v1 = vpop.permute.xlu0 %687 }
 0x11b   :  { %3798 = vst [vmem:[#allocation15_spill] sm:$0xff] %v2807_v1 }
 0x11c   :  { %1131 = vrot.lane.b32.xlu1 %v1126_v29, %s2232_s17  ;;  %1129 = vrot.lane.b32.xlu0 %v1125_v31, %s2232_s17  ;;  %v1262_v29 = vmul.f32 %v1260_v24, %v2821_v33  ;;  %v1261_v31 = vmul.f32 %v1260_v24, %v2825_v50 }
 0x11e   :  { %v2813_v44 = vpop.permute.xlu1 %702  ;;  %v2815_v45 = vpop.permute.xlu0 %700 }
 0x120   :  { %1144 = vrot.lane.b32.xlu1 %v1139_v22, %s2232_s17  ;;  %1142 = vrot.lane.b32.xlu0 %v1138_v57, %s2232_s17 }
 0x122   :  { %v2823_v49 = vpop.permute.xlu1 %715  ;;  %v2827_v46 = vpop.permute.xlu0 %713 }
 0x124   :  { %1157 = vrot.lane.b32.xlu1 %v1152_v34, %s2232_s17  ;;  %1155 = vrot.lane.b32.xlu0 %v1151_v12, %s2232_s17  ;;  %v1274_v34 = vmul.f32 %v1273_v36, %v2825_v50  ;;  %v1286_v12 = vstv %s2015_s14  ;;  %s3028_s14 = sld [smem:[#allocation6 + $0x78]] }
 0x125   :  { %v1287_v54 = vmul.f32 %v1286_v12, %v2825_v50 }
 0x126   :  { %v2833_v39 = vpop.permute.xlu1 %728  ;;  %v2835_v58 = vpop.permute.xlu0 %726 }
 0x128   :  { %1202 = vrot.lane.b32.xlu1 %v1197_v26, %s2231_s10  ;;  %1200 = vrot.lane.b32.xlu0 %v1196_v35, %s2231_s10  ;;  %v1288_v35 = vmul.f32 %v1286_v12, %v2821_v33 }
 0x12a   :  { %v2841_v38 = vpop.permute.xlu1 %741  ;;  %v2843_v56 = vpop.permute.xlu0 %739 }
 0x12c   :  { %1215 = vrot.lane.b32.xlu1 %v1210_v51, %s2231_s10  ;;  %1213 = vrot.lane.b32.xlu0 %v1209_v3, %s2231_s10  ;;  %v1299_v51 = vstv %s2042_s15  ;;  %s3030_s15 = sld [smem:[#allocation6 + $0x93]] }
 0x12e   :  { %v2849_v2 = vpop.permute.xlu1 %754  ;;  %v2851_v14 = vpop.permute.xlu0 %752 }
 0x130   :  { %1228 = vrot.lane.b32.xlu1 %v1223_v40, %s2231_s10  ;;  %1226 = vrot.lane.b32.xlu0 %v1222_v6, %s2231_s10  ;;  %v1301_v40 = vmul.f32 %v1299_v51, %v2821_v33  ;;  %v1300_v6 = vmul.f32 %v1299_v51, %v2825_v50  ;;  %v2921_v51 = vld [vmem:[#allocation2 + $0x28] sm:$0x3f] }
 0x131   :  { %3811 = vst [vmem:[#allocation28_spill] sm:$0xff] %v2921_v51 }
 0x132   :  { %v2857_v9 = vpop.permute.xlu1 %767  ;;  %v2859_v19 = vpop.permute.xlu0 %765 }
 0x133   :  { %3800 = vst [vmem:[#allocation17_spill] sm:$0xff] %v2857_v9  ;;  %3801 = vst [vmem:[#allocation18_spill] sm:$0xff] %v2859_v19  ;;  %v794_v19 = vstv %s2981_s4  ;;  %s3329_s4 = sld [smem:[#allocation6 + $0x7b]] }
 0x134   :  { %1241 = vrot.lane.b32.xlu1 %v1236_v4, %s2231_s10  ;;  %1239 = vrot.lane.b32.xlu0 %v1235_v62, %s2231_s10 }
 0x136   :  { %v2865_v25 = vpop.permute.xlu1 %780  ;;  %v2867_v21 = vpop.permute.xlu0 %778 }
 0x138   :  { %1254 = vrot.lane.b32.xlu1 %v1249_v20, %s2231_s10  ;;  %1252 = vrot.lane.b32.xlu0 %v1248_v17, %s2231_s10  ;;  %v1313_v20 = vmul.f32 %v1312_v30, %v2825_v50  ;;  %v1325_v17 = vstv %s2096_s18  ;;  %v2925_v30 = vld [vmem:[#allocation2 + $0x20] sm:$0xff]  ;;  %s3047_s18 = sld [smem:[#allocation6 + $0x16]] }
 0x139   :  { %v1326_v36 = vmul.f32 %v1325_v17, %v2825_v50  ;;  %3812 = vst [vmem:[#allocation29_spill] sm:$0xff] %v2925_v30 }
 0x13a   :  { %v2873_v22 = vpop.permute.xlu1 %826  ;;  %v2875_v57 = vpop.permute.xlu0 %824 }
 0x13c   :  { %1267 = vrot.lane.b32.xlu1 %v1262_v29, %s2231_s10  ;;  %1265 = vrot.lane.b32.xlu0 %v1261_v31, %s2231_s10  ;;  %v1327_v31 = vmul.f32 %v1325_v17, %v2821_v33 }
 0x13e   :  { %v2881_v59 = vpop.permute.xlu1 %839  ;;  %v2883_v26 = vpop.permute.xlu0 %837 }
 0x13f   :  { %3802 = vst [vmem:[#allocation19_spill] sm:$0xff] %v2881_v59  ;;  %3803 = vst [vmem:[#allocation20_spill] sm:$0xff] %v2883_v26  ;;  %v982_v59 = vstv %s3006_s9  ;;  %s3446_s9 = sld [smem:[#allocation6 + $0x34]] }
 0x140   :  { %1280 = vrot.lane.b32.xlu1 %v1275_v42, %s2232_s17  ;;  %1278 = vrot.lane.b32.xlu0 %v1274_v34, %s2232_s17  ;;  %v1338_v42 = vstv %s2123_s19  ;;  %s3049_s19 = sld [smem:[#allocation6 + $0xf]] }
 0x142   :  { %v2889_v3 = vpop.permute.xlu1 %852  ;;  %v2891_v60 = vpop.permute.xlu0 %850 }
 0x143   :  { %3804 = vst [vmem:[#allocation21_spill] sm:$0xff] %v2889_v3  ;;  %3805 = vst [vmem:[#allocation22_spill] sm:$0xff] %v2891_v60  ;;  %v1501_v3 = vstv %s2994_s0  ;;  %s3376_s0 = sld [smem:[#allocation6 + $0x96]] }
 0x144   :  { %1293 = vrot.lane.b32.xlu1 %v1288_v35, %s2232_s17  ;;  %1291 = vrot.lane.b32.xlu0 %v1287_v54, %s2232_s17  ;;  %v1340_v35 = vmul.f32 %v1338_v42, %v2821_v33  ;;  %v1339_v54 = vmul.f32 %v1338_v42, %v2825_v50 }
 0x146   :  { %v2897_v4 = vpop.permute.xlu1 %865  ;;  %v2899_v62 = vpop.permute.xlu0 %863 }
 0x147   :  { %3806 = vst [vmem:[#allocation23_spill] sm:$0xff] %v2897_v4  ;;  %3807 = vst [vmem:[#allocation24_spill] sm:$0xff] %v2899_v62  ;;  %v1423_v4 = vstv %s2071_s23  ;;  %s3088_s23 = sld [smem:[#allocation6 + $0x4c]] }
 0x148   :  { %1306 = vrot.lane.b32.xlu1 %v1301_v40, %s2232_s17  ;;  %1304 = vrot.lane.b32.xlu0 %v1300_v6, %s2232_s17  ;;  %v1384_v40 = vstv %s1990_s20  ;;  %s3060_s20 = sld [smem:[#allocation6 + $0x2a]] }
 0x149   :  { %v1385_v17 = vmul.f32 %v1384_v40, %v2925_v30 }
 0x14a   :  { %v2905_v24 = vpop.permute.xlu1 %878  ;;  %v2907_v29 = vpop.permute.xlu0 %876 }
 0x14b   :  { %3808 = vst [vmem:[#allocation25_spill] sm:$0xff] %v2905_v24  ;;  %3809 = vst [vmem:[#allocation26_spill] sm:$0xff] %v2907_v29  ;;  %v1410_v24 = vstv %s2044_s22  ;;  %s3077_s22 = sld [smem:[#allocation6 + $0x45]] }
 0x14c   :  { %1319 = vrot.lane.b32.xlu1 %v1314_v7, %s2232_s17  ;;  %1317 = vrot.lane.b32.xlu0 %v1313_v20, %s2232_s17  ;;  %v1386_v20 = vmul.f32 %v1384_v40, %v2921_v51  ;;  %v1412_v40 = vmul.f32 %v1410_v24, %v2921_v51 }
 0x14e   :  { %v2913_v34 = vpop.permute.xlu1 %891  ;;  %v2915_v12 = vpop.permute.xlu0 %889 }
 0x14f   :  { %3810 = vst [vmem:[#allocation27_spill] sm:$0xff] %v2915_v12  ;;  %v987_v12 = vstv %s3015_s12  ;;  %s3475_s12 = sld [smem:[#allocation6 + $0x6a]] }
 0x150   :  { %1332 = vrot.lane.b32.xlu1 %v1327_v31, %s2232_s17  ;;  %1330 = vrot.lane.b32.xlu0 %v1326_v36, %s2232_s17  ;;  %v1397_v31 = vstv %s2017_s21  ;;  %s3068_s21 = sld [smem:[#allocation6 + $0x31]] }
 0x151   :  { %v1399_v29 = vmul.f32 %v1397_v31, %v2921_v51 }
 0x152   :  { %v2923_v6 = vpop.permute.xlu1 %904  ;;  %v2927_v7 = vpop.permute.xlu0 %902 }
 0x153   :  { %3813 = vst [vmem:[#allocation30_spill] sm:$0xff] %v2927_v7 }
 0x154   :  { %1345 = vrot.lane.b32.xlu1 %v1340_v35, %s2232_s17  ;;  %1343 = vrot.lane.b32.xlu0 %v1339_v54, %s2232_s17  ;;  %v1398_v35 = vmul.f32 %v1397_v31, %v2925_v30  ;;  %v1425_v31 = vmul.f32 %v1423_v4, %v2921_v51 }
 0x156   :  { %v2933_v36 = vpop.permute.xlu1 %917  ;;  %v2935_v42 = vpop.permute.xlu0 %915 }
 0x157   :  { %3814 = vst [vmem:[#allocation31_spill] sm:$0xff] %v2933_v36  ;;  %3815 = vst [vmem:[#allocation32_spill] sm:$0xff] %v2935_v42 }
 0x158   :  { %1391 = vrot.lane.b32.xlu1 %v1386_v20, %s2231_s10  ;;  %1389 = vrot.lane.b32.xlu0 %v1385_v17, %s2231_s10  ;;  %v1411_v20 = vmul.f32 %v1410_v24, %v2925_v30 }
 0x15a   :  { %v2941_v62 = vpop.permute.xlu1 %930  ;;  %v2943_v54 = vpop.permute.xlu0 %928 }
 0x15b   :  { %3816 = vst [vmem:[#allocation33_spill] sm:$0xff] %v2941_v62  ;;  %3817 = vst [vmem:[#allocation34_spill] sm:$0xff] %v2943_v54  ;;  %v1436_v54 = vstv %s2098_s24  ;;  %s3109_s24 = sld [smem:[#allocation6 + $0x67]] }
 0x15c   :  { %1404 = vrot.lane.b32.xlu1 %v1399_v29, %s2231_s10  ;;  %1402 = vrot.lane.b32.xlu0 %v1398_v35, %s2231_s10  ;;  %v1424_v29 = vmul.f32 %v1423_v4, %v2925_v30  ;;  %v1438_v24 = vmul.f32 %v1436_v54, %v2921_v51 }
 0x15e   :  { %v2949_v60 = vpop.permute.xlu1 %943  ;;  %v2951_v17 = vpop.permute.xlu0 %941 }
 0x15f   :  { %3818 = vst [vmem:[#allocation35_spill] sm:$0xff] %v2949_v60  ;;  %3819 = vst [vmem:[#allocation36_spill] sm:$0xff] %v2951_v17  ;;  %v1449_v17 = vstv %s2125_s26  ;;  %s3131_s26 = sld [smem:[#allocation6 + $0x82]] }
 0x160   :  { %1417 = vrot.lane.b32.xlu1 %v1412_v40, %s2231_s10  ;;  %1415 = vrot.lane.b32.xlu0 %v1411_v20, %s2231_s10  ;;  %v1437_v40 = vmul.f32 %v1436_v54, %v2925_v30 }
 0x162   :  { %v2957_v62 = vpop.permute.xlu1 %956  ;;  %v2959_v35 = vpop.permute.xlu0 %954 }
 0x163   :  { %3820 = vst [vmem:[#allocation37_spill] sm:$0xff] %v2957_v62  ;;  %3821 = vst [vmem:[#allocation38_spill] sm:$0xff] %v2959_v35  ;;  %v1451_v35 = vmul.f32 %v1449_v17, %v2921_v51  ;;  %v1462_v62 = vstv %s1991_s27  ;;  %s3148_s27 = sld [smem:[#allocation6 + $0x60]] }
 0x164   :  { %1430 = vrot.lane.b32.xlu1 %v1425_v31, %s2231_s10  ;;  %1428 = vrot.lane.b32.xlu0 %v1424_v29, %s2231_s10  ;;  %v1450_v31 = vmul.f32 %v1449_v17, %v2925_v30  ;;  %v1463_v17 = vmul.f32 %v1462_v62, %v2925_v30 }
 0x166   :  { %v2967_v20 = vpop.permute.xlu1 %969  ;;  %v2969_v4 = vpop.permute.xlu0 %967 }
 0x167   :  { %3822 = vst [vmem:[#allocation39_spill] sm:$0xff] %v2967_v20  ;;  %3823 = vst [vmem:[#allocation40_spill] sm:$0xff] %v2969_v4  ;;  %v809_v4 = vstv %s2996_s7  ;;  %s3397_s7 = sld [smem:[#allocation6 + $0x83]] }
 0x168   :  { %1443 = vrot.lane.b32.xlu1 %v1438_v24, %s2231_s10  ;;  %1441 = vrot.lane.b32.xlu0 %v1437_v40, %s2231_s10  ;;  %v1464_v24 = vmul.f32 %v1462_v62, %v2921_v51  ;;  %v1475_v40 = vstv %s2965_s28  ;;  %s3170_s28 = sld [smem:[#allocation6 + $0x9d]] }
 0x169   :  { %v1477_v62 = vmul.f32 %v1475_v40, %v2921_v51 }
 0x16a   :  { %v2977_v54 = vpop.permute.xlu1 %1014  ;;  %v2983_v29 = vpop.permute.xlu0 %1012 }
 0x16b   :  { %3824 = vst [vmem:[#allocation41_spill] sm:$0xff] %v2977_v54  ;;  %3825 = vst [vmem:[#allocation42_spill] sm:$0xff] %v2983_v29  ;;  %v1488_v29 = vstv %s2975_s29  ;;  %s3186_s29 = sld [smem:[#allocation6 + $0x17]] }
 0x16c   :  { %1456 = vrot.lane.b32.xlu1 %v1451_v35, %s2231_s10  ;;  %1454 = vrot.lane.b32.xlu0 %v1450_v31, %s2231_s10  ;;  %v1476_v31 = vmul.f32 %v1475_v40, %v2925_v30  ;;  %v804_v40 = vstv %s2989_s6  ;;  %s3370_s6 = sld [smem:[#allocation6 + $0x68]] }
 0x16e   :  { %v2998_v60 = vpop.permute.xlu1 %1027  ;;  %v3002_v35 = vpop.permute.xlu0 %1025 }
 0x16f   :  { %3826 = vst [vmem:[#allocation43_spill] sm:$0xff] %v2998_v60  ;;  %3827 = vst [vmem:[#allocation44_spill] sm:$0xff] %v3002_v35  ;;  %v789_v60 = vstv %s2979_s30  ;;  %s3312_s30 = sld [smem:[#allocation6 + $0x32]] }
 0x170   :  { %1469 = vrot.lane.b32.xlu1 %v1464_v24, %s2232_s17  ;;  %1467 = vrot.lane.b32.xlu0 %v1463_v17, %s2232_s17  ;;  %v799_v24 = vstv %s2985_s5  ;;  %v1490_v17 = vmul.f32 %v1488_v29, %v2921_v51  ;;  %s3344_s5 = sld [smem:[#allocation6 + $0x4d]] }
 0x172   :  { %v3017_v35 = vpop.permute.xlu1 %1040  ;;  %v3021_v54 = vpop.permute.xlu0 %1038 }
 0x173   :  { %3828 = vst [vmem:[#allocation45_spill] sm:$0xff] %v3017_v35  ;;  %3829 = vst [vmem:[#allocation46_spill] sm:$0xff] %v3021_v54  ;;  %v1489_v35 = vmul.f32 %v1488_v29, %v2925_v30  ;;  %v2146_v54 = vld [vmem:[#allocation2 + $0x18] sm:$0x3f] }
 0x174   :  { %1482 = vrot.lane.b32.xlu1 %v1477_v62, %s2232_s17  ;;  %1480 = vrot.lane.b32.xlu0 %v1476_v31, %s2232_s17  ;;  %v3038_v9 = vmul.f32 %v2146_v54, %v789_v60  ;;  %v2147_v62 = vld [vmem:[#allocation2 + $0x10] sm:$0xff]  ;;  %v3042_v36 = vmul.f32 %v2146_v54, %v794_v19  ;;  %v3053_v31 = vmul.f32 %v2146_v54, %v799_v24 }
 0x175   :  { %v3040_v42 = vmul.f32 %v2147_v62, %v789_v60  ;;  %v3051_v29 = vmul.f32 %v2147_v62, %v794_v19  ;;  %v3055_v1 = vmul.f32 %v2147_v62, %v799_v24  ;;  %v3062_v60 = vmul.f32 %v2146_v54, %v804_v40 }
 0x176   :  { %v3045_v26 = vpop.permute.xlu1 %1053  ;;  %3831 = vst [vmem:[#allocation48_spill] sm:$0xff] %v3053_v31  ;;  %v3058_v20 = vpop.permute.xlu0 %1051  ;;  %v1503_v19 = vmul.f32 %v1501_v3, %v2921_v51  ;;  %v3070_v31 = vmul.f32 %v2147_v62, %v804_v40  ;;  %v3072_v24 = vmul.f32 %v2146_v54, %v809_v4  ;;  %v3083_v7 = vmul.f32 %v2147_v62, %v814_v63 }
 0x177   :  { %3830 = vst [vmem:[#allocation47_spill] sm:$0xff] %v3045_v26  ;;  %3832 = vst [vmem:[#allocation49_spill] sm:$0xff] %v3055_v1  ;;  %v977_v26 = vstv %s3004_s2  ;;  %v1514_v1 = vstv %s3013_s11  ;;  %s3433_s2 = sld [smem:[#allocation6 + $0x19]]  ;;  %s3460_s11 = sld [smem:[#allocation6 + $0x4f]] }
 0x178   :  { %3833 = vst [vmem:[#allocation50_spill] sm:$0xff] %v3058_v20  ;;  %3834 = vst [vmem:[#allocation51_spill] sm:$0xff] %v3062_v60  ;;  %1495 = vrot.lane.b32.xlu1 %v1490_v17, %s2232_s17  ;;  %1493 = vrot.lane.b32.xlu0 %v1489_v35, %s2232_s17  ;;  %v1502_v20 = vmul.f32 %v1501_v3, %v2925_v30  ;;  %v3079_v60 = vmul.f32 %v2147_v62, %v809_v4  ;;  %v992_v4 = vstv %s3023_s13  ;;  %s3488_s13 = sld [smem:[#allocation6 + $0x85]] }
 0x179   :  { %3835 = vst [vmem:[#allocation52_spill] sm:$0xff] %v3070_v31  ;;  %3836 = vst [vmem:[#allocation53_spill] sm:$0xff] %v3072_v24  ;;  %v3081_v17 = vmul.f32 %v2146_v54, %v814_v63  ;;  %v3091_v35 = vmul.f32 %v977_v26, %v2658_v41  ;;  %v3094_v3 = vmul.f32 %v977_v26, %v2661_v43  ;;  %v997_v62 = vstv %s3028_s14  ;;  %v3128_v31 = vld [vmem:[#allocation2 + $0x29] sm:$0x3f]  ;;  %s3490_s14 = sld [smem:[#allocation6 + $0x12]] }
 0x17a   :  { %3837 = vst [vmem:[#allocation54_spill] sm:$0xff] %v3079_v60  ;;  %v3086_v40 = vpop.permute.xlu1 %1066  ;;  %v3097_v24 = vmul.f32 %v982_v59, %v2658_v41  ;;  %v3100_v54 = vpop.permute.xlu0 %1064  ;;  %v3103_v63 = vmul.f32 %v982_v59, %v2661_v43  ;;  %v1516_v60 = vmul.f32 %v1514_v1, %v2921_v51  ;;  %v3112_v26 = vmul.f32 %v987_v12, %v2658_v41 }
 0x17b   :  { %3838 = vst [vmem:[#allocation55_spill] sm:$0xff] %v3086_v40  ;;  %3839 = vst [vmem:[#allocation56_spill] sm:$0xff] %v3094_v3  ;;  %v1002_v40 = vstv %s3030_s15  ;;  %v1515_v59 = vmul.f32 %v1514_v1, %v2925_v30  ;;  %v3138_v1 = vmul.f32 %v997_v62, %v2661_v43  ;;  %s3503_s15 = sld [smem:[#allocation6 + $0xa0]] }
 0x17c   :  { %3840 = vst [vmem:[#allocation57_spill] sm:$0xff] %v3097_v24  ;;  %3841 = vst [vmem:[#allocation58_spill] sm:$0xff] %v3100_v54  ;;  %1508 = vrot.lane.b32.xlu1 %v1503_v19, %s2232_s17  ;;  %v3115_v24 = vmul.f32 %v987_v12, %v2661_v43  ;;  %1506 = vrot.lane.b32.xlu0 %v1502_v20, %s2232_s17  ;;  %v1527_v54 = vstv %s3036_s16  ;;  %v3124_v19 = vmul.f32 %v992_v4, %v2661_v43  ;;  %s3505_s16 = sld [smem:[#allocation6 + $0x2d]] }
 0x17d   :  { %3842 = vst [vmem:[#allocation59_spill] sm:$0xff] %v3103_v63  ;;  %3843 = vst [vmem:[#allocation60_spill] sm:$0xff] %v3112_v26  ;;  %v3121_v63 = vmul.f32 %v992_v4, %v2658_v41  ;;  %v1572_v26 = vstv %s3047_s18  ;;  %v1165_v12 = vstv %s3049_s19  ;;  %v3135_v20 = vmul.f32 %v997_v62, %v2658_v41  ;;  %s3518_s18 = sld [smem:[#allocation6 + $0x1a]]  ;;  %s3521_s19 = sld [smem:[#allocation6 + $0x48]] }
 0x17e   :  { %3844 = vst [vmem:[#allocation61_spill] sm:$0xff] %v3115_v24  ;;  %3846 = vst [vmem:[#allocation63_spill] sm:$0xff] %v3124_v19  ;;  %v3126_v3 = vpop.permute.xlu1 %1079  ;;  %v3143_v4 = vpop.permute.xlu0 %1077  ;;  %v3145_v19 = vld [vmem:[#allocation2 + $0x21] sm:$0xff]  ;;  %v1170_v24 = vstv %s3060_s20  ;;  %v1528_v62 = vmul.f32 %v1527_v54, %v2925_v30  ;;  %v642_v30 = vadd.f32 %v2770_v0, %v2679_v55  ;;  %v707_v0 = vadd.f32 %v2813_v44, %v2768_v47  ;;  %s3535_s20 = sld [smem:[#allocation6 + $0x35]] }
 0x17f   :  { %3845 = vst [vmem:[#allocation62_spill] sm:$0xff] %v3121_v63  ;;  %3847 = vst [vmem:[#allocation64_spill] sm:$0xff] %v3126_v3  ;;  %v3141_v63 = vmul.f32 %v1002_v40, %v2658_v41  ;;  %v3151_v3 = vmul.f32 %v1002_v40, %v2661_v43  ;;  %v1574_v41 = vmul.f32 %v1572_v26, %v3128_v31  ;;  %v1175_v43 = vstv %s3077_s22  ;;  %s3554_s22 = sld [smem:[#allocation6 + $0x50]] }
 0x180   :  { %3848 = vst [vmem:[#allocation65_spill] sm:$0xff] %v3135_v20  ;;  %3849 = vst [vmem:[#allocation66_spill] sm:$0xff] %v3138_v1  ;;  %1521 = vrot.lane.b32.xlu1 %v1516_v60, %s2232_s17  ;;  %v1529_v20 = vmul.f32 %v1527_v54, %v2921_v51  ;;  %v1585_v1 = vstv %s3068_s21  ;;  %1519 = vrot.lane.b32.xlu0 %v1515_v59, %s2232_s17  ;;  %v1573_v60 = vmul.f32 %v1572_v26, %v3145_v19  ;;  %s3539_s21 = sld [smem:[#allocation6 + $0x63]] }
 0x181   :  { %3850 = vst [vmem:[#allocation67_spill] sm:$0xff] %v3141_v63  ;;  %3851 = vst [vmem:[#allocation68_spill] sm:$0xff] %v3143_v4  ;;  %v3160_v4 = vmul.f32 %v1165_v12, %v2821_v33  ;;  %v3163_v63 = vmul.f32 %v1165_v12, %v2825_v50  ;;  %v1598_v51 = vstv %s3088_s23  ;;  %v3173_v54 = vmul.f32 %v1170_v24, %v2821_v33  ;;  %s3559_s23 = sld [smem:[#allocation6 + $0x7e]] }
 0x182   :  { %v3166_v40 = vpop.permute.xlu1 %1092  ;;  %v3176_v59 = vmul.f32 %v1170_v24, %v2825_v50  ;;  %v641_v12 = vadd.f32 %v2774_v16, %v2684_v61  ;;  %v1586_v26 = vmul.f32 %v1585_v1, %v3145_v19  ;;  %v1611_v24 = vstv %s3109_s24  ;;  %s3572_s24 = sld [smem:[#allocation6 + $0x6b]] }
 0x183   :  { %3852 = vst [vmem:[#allocation69_spill] sm:$0xff] %v3160_v4  ;;  %3853 = vst [vmem:[#allocation70_spill] sm:$0xff] %v3163_v63  ;;  %v3182_v63 = vpop.permute.xlu0 %1090  ;;  %v1587_v4 = vmul.f32 %v1585_v1, %v3128_v31  ;;  %v3193_v55 = vmul.f32 %v1175_v43, %v2821_v33  ;;  %v3196_v61 = vmul.f32 %v1175_v43, %v2825_v50 }
 0x184   :  { %3854 = vst [vmem:[#allocation71_spill] sm:$0xff] %v3173_v54  ;;  %v655_v54 = vadd.f32 %v2781_v48, %v2699_v8  ;;  %1534 = vrot.lane.b32.xlu1 %v1529_v20, %s2232_s17  ;;  %v720_v16 = vadd.f32 %v2823_v49, %v642_v30  ;;  %1532 = vrot.lane.b32.xlu0 %v1528_v62, %s2232_s17 }
 0x185   :  { %3855 = vst [vmem:[#allocation72_spill] sm:$0xff] %v3196_v61  ;;  %v1600_v1 = vmul.f32 %v1598_v51, %v3128_v31  ;;  %v1599_v8 = vmul.f32 %v1598_v51, %v3145_v19  ;;  %v654_v48 = vadd.f32 %v2783_v10, %v2704_v18  ;;  %v706_v20 = vadd.f32 %v2815_v45, %v2772_v5 }
 0x186   :  { %v719_v43 = vadd.f32 %v2827_v46, %v641_v12  ;;  %v3209_v50 = vpop.permute.xlu1 %1105  ;;  %v1624_v61 = vstv %s3131_s26  ;;  %v668_v47 = vadd.f32 %v2789_v11, %v2719_v28  ;;  %v785_v44 = vadd.f32 %v2865_v25, %v707_v0  ;;  %s3577_s26 = sld [smem:[#allocation6 + $0x99]] }
 0x187   :  { %v3215_v49 = vpop.permute.xlu0 %1103  ;;  %v3218_v51 = vmul.f32 %v1611_v24, %v3128_v31  ;;  %v1180_v18 = vstv %s3148_s27  ;;  %v733_v10 = vadd.f32 %v2833_v39, %v655_v54  ;;  %v732_v5 = vadd.f32 %v2835_v58, %v654_v48  ;;  %s3602_s27 = sld [smem:[#allocation6 + $0xa1]] }
 0x188   :  { %v784_v45 = vadd.f32 %v2867_v21, %v706_v20  ;;  %1579 = vrot.lane.b32.xlu1 %v1574_v41, %s2231_s10  ;;  %v3226_v28 = vmul.f32 %v1611_v24, %v3145_v19  ;;  %v667_v11 = vadd.f32 %v2791_v52, %v2724_v32  ;;  %v681_v46 = vadd.f32 %v2797_v13, %v2737_v23  ;;  %v3863_v20 = vld [vmem:[#allocation40_spill] sm:$0xff] }
 0x189   :  { %v793_v25 = vadd.f32 %v3038_v9, %v720_v16  ;;  %1577 = vrot.lane.b32.xlu0 %v1573_v60, %s2231_s10  ;;  %v3235_v39 = vmul.f32 %v1624_v61, %v3128_v31  ;;  %v680_v58 = vadd.f32 %v2799_v53, %v2742_v15  ;;  %v792_v21 = vadd.f32 %v3040_v42, %v719_v43  ;;  %v3862_v16 = vld [vmem:[#allocation20_spill] sm:$0xff] }
 0x18a   :  { %v3240_v30 = vpop.permute.xlu1 %1118  ;;  %v3243_v62 = vmul.f32 %v1624_v61, %v3145_v19  ;;  %v1637_v32 = vstv %s3170_s28  ;;  %v694_v23 = vadd.f32 %v2805_v37, %v2755_v27  ;;  %v818_v13 = vadd.f32 %v3081_v17, %v785_v44  ;;  %v3864_v44 = vld [vmem:[#allocation48_spill] sm:$0xff]  ;;  %s1992_s28 = sld [smem:[#allocation6 + $0x15]] }
 0x18b   :  { %v831_v52 = vadd.f32 %v2873_v22, %v793_v25  ;;  %v3250_v9 = vpop.permute.xlu0 %1116  ;;  %v1650_v41 = vstv %s3186_s29  ;;  %v830_v15 = vadd.f32 %v2875_v57, %v792_v21  ;;  %v798_v53 = vadd.f32 %v3042_v36, %v733_v10  ;;  %s2019_s29 = sld [smem:[#allocation6 + $0x30]] }
 0x18c   :  { %v797_v42 = vadd.f32 %v3051_v29, %v732_v5  ;;  %v817_v60 = vadd.f32 %v3083_v7, %v784_v45  ;;  %1592 = vrot.lane.b32.xlu1 %v1587_v4, %s2231_s10  ;;  %v746_v54 = vadd.f32 %v2841_v38, %v668_v47  ;;  %v745_v27 = vadd.f32 %v2843_v56, %v667_v11  ;;  %v3856_v29 = vld [vmem:[#allocation27_spill] sm:$0xff]  ;;  %v3857_v7 = vld [vmem:[#allocation30_spill] sm:$0xff]  ;;  %v3865_v5 = vld [vmem:[#allocation49_spill] sm:$0xff] }
 0x18d   :  { %v896_v37 = vadd.f32 %v2913_v34, %v818_v13  ;;  %v909_v22 = vadd.f32 %v2923_v6, %v831_v52  ;;  %1590 = vrot.lane.b32.xlu0 %v1586_v26, %s2231_s10  ;;  %v759_v57 = vadd.f32 %v2849_v2, %v681_v46  ;;  %v758_v36 = vadd.f32 %v2851_v14, %v680_v58  ;;  %v3858_v38 = vld [vmem:[#allocation19_spill] sm:$0xff]  ;;  %v3860_v2 = vld [vmem:[#allocation14_spill] sm:$0xff]  ;;  %v3869_v13 = vld [vmem:[#allocation32_spill] sm:$0xff] }
 0x18e   :  { %v895_v17 = vadd.f32 %v3856_v29, %v817_v60  ;;  %v908_v12 = vadd.f32 %v3857_v7, %v830_v15  ;;  %v3267_v4 = vpop.permute.xlu1 %1131  ;;  %v844_v24 = vadd.f32 %v3858_v38, %v798_v53  ;;  %v3859_v56 = vld [vmem:[#allocation39_spill] sm:$0xff]  ;;  %v3274_v6 = vmul.f32 %v1637_v32, %v3128_v31  ;;  %v3870_v15 = vld [vmem:[#allocation56_spill] sm:$0xff]  ;;  %v3871_v60 = vld [vmem:[#allocation17_spill] sm:$0xff] }
 0x18f   :  { %v974_v61 = vadd.f32 %v3859_v56, %v896_v37  ;;  %v3271_v34 = vpop.permute.xlu0 %1129  ;;  %v3277_v26 = vmul.f32 %v1637_v32, %v3145_v19  ;;  %v3861_v14 = vld [vmem:[#allocation15_spill] sm:$0xff]  ;;  %v843_v48 = vadd.f32 %v3862_v16, %v797_v42  ;;  %v3287_v47 = vmul.f32 %v1650_v41, %v3128_v31  ;;  %v3868_v32 = vld [vmem:[#allocation52_spill] sm:$0xff]  ;;  %v3872_v37 = vld [vmem:[#allocation21_spill] sm:$0xff] }
 0x190   :  { %v693_v0 = vadd.f32 %v3861_v14, %v3860_v2  ;;  %v973_v43 = vadd.f32 %v3863_v20, %v895_v17  ;;  %1605 = vrot.lane.b32.xlu1 %v1600_v1, %s2231_s10  ;;  %v803_v10 = vadd.f32 %v3864_v44, %v746_v54  ;;  %v802_v45 = vadd.f32 %v3865_v5, %v745_v27  ;;  %v3866_v11 = vld [vmem:[#allocation31_spill] sm:$0xff]  ;;  %v3873_v29 = vld [vmem:[#allocation41_spill] sm:$0xff]  ;;  %v3876_v38 = vld [vmem:[#allocation22_spill] sm:$0xff] }
 0x191   :  { %v922_v46 = vadd.f32 %v3866_v11, %v844_v24  ;;  %v981_v25 = vadd.f32 %v3091_v35, %v909_v22  ;;  %1603 = vrot.lane.b32.xlu0 %v1599_v8, %s2231_s10  ;;  %v3867_v58 = vld [vmem:[#allocation51_spill] sm:$0xff]  ;;  %v807_v52 = vadd.f32 %v3868_v32, %v758_v36  ;;  %v921_v1 = vadd.f32 %v3869_v13, %v843_v48  ;;  %v3875_v8 = vld [vmem:[#allocation18_spill] sm:$0xff]  ;;  %v3879_v14 = vld [vmem:[#allocation57_spill] sm:$0xff] }
 0x192   :  { %v808_v21 = vadd.f32 %v3867_v58, %v759_v57  ;;  %v980_v53 = vadd.f32 %v3870_v15, %v908_v12  ;;  %v3298_v42 = vpop.permute.xlu1 %1144  ;;  %v772_v54 = vadd.f32 %v3871_v60, %v694_v23  ;;  %v857_v27 = vadd.f32 %v3872_v37, %v803_v10  ;;  %v3874_v7 = vld [vmem:[#allocation67_spill] sm:$0xff]  ;;  %v3877_v24 = vld [vmem:[#allocation42_spill] sm:$0xff]  ;;  %v3878_v23 = vld [vmem:[#allocation33_spill] sm:$0xff] }
 0x193   :  { %v1019_v17 = vadd.f32 %v3873_v29, %v981_v25  ;;  %v1006_v35 = vadd.f32 %v3874_v7, %v974_v61  ;;  %v3304_v22 = vpop.permute.xlu0 %1142  ;;  %v771_v57 = vadd.f32 %v3875_v8, %v693_v0  ;;  %v856_v36 = vadd.f32 %v3876_v38, %v802_v45  ;;  %v3880_v61 = vld [vmem:[#allocation64_spill] sm:$0xff]  ;;  %v3881_v0 = vld [vmem:[#allocation34_spill] sm:$0xff]  ;;  %v3882_v10 = vld [vmem:[#allocation59_spill] sm:$0xff] }
 0x194   :  { %v1018_v56 = vadd.f32 %v3877_v24, %v980_v53  ;;  %v1005_v12 = vadd.f32 %v3151_v3, %v973_v43  ;;  %1618 = vrot.lane.b32.xlu1 %v3218_v51, %s2231_s10  ;;  %v935_v2 = vadd.f32 %v3878_v23, %v857_v27  ;;  %v986_v16 = vadd.f32 %v3879_v14, %v922_v46  ;;  %v3883_v43 = vld [vmem:[#allocation68_spill] sm:$0xff]  ;;  %v3884_v11 = vld [vmem:[#allocation23_spill] sm:$0xff]  ;;  %v3885_v58 = vld [vmem:[#allocation53_spill] sm:$0xff] }
 0x195   :  { %v1084_v48 = vadd.f32 %v3880_v61, %v1006_v35  ;;  %v1097_v20 = vadd.f32 %v3166_v40, %v1019_v17  ;;  %1616 = vrot.lane.b32.xlu0 %v3226_v28, %s2231_s10  ;;  %v934_v44 = vadd.f32 %v3881_v0, %v856_v36  ;;  %v985_v3 = vadd.f32 %v3882_v10, %v921_v1  ;;  %v3886_v32 = vld [vmem:[#allocation43_spill] sm:$0xff]  ;;  %v3887_v28 = vld [vmem:[#allocation24_spill] sm:$0xff]  ;;  %v3888_v60 = vld [vmem:[#allocation54_spill] sm:$0xff] }
 0x196   :  { %v1083_v5 = vadd.f32 %v3883_v43, %v1005_v12  ;;  %v1096_v51 = vadd.f32 %v3182_v63, %v1018_v56  ;;  %v1158_v45 = vpop.permute.xlu1 %1157  ;;  %v870_v25 = vadd.f32 %v3884_v11, %v808_v21  ;;  %v813_v46 = vadd.f32 %v3885_v58, %v772_v54  ;;  %v3889_v37 = vld [vmem:[#allocation44_spill] sm:$0xff]  ;;  %v3890_v63 = vld [vmem:[#allocation35_spill] sm:$0xff]  ;;  %v3894_v38 = vld [vmem:[#allocation61_spill] sm:$0xff] }
 0x197   :  { %v1032_v13 = vadd.f32 %v3886_v32, %v986_v16  ;;  %v3327_v15 = vadd.f32 %v1158_v45, %v1084_v48  ;;  %v1156_v40 = vpop.permute.xlu0 %1155  ;;  %v869_v53 = vadd.f32 %v3887_v28, %v807_v52  ;;  %v812_v1 = vadd.f32 %v3888_v60, %v771_v57  ;;  %v3891_v54 = vld [vmem:[#allocation60_spill] sm:$0xff]  ;;  %v3892_v52 = vld [vmem:[#allocation69_spill] sm:$0xff]  ;;  %v3895_v56 = vld [vmem:[#allocation70_spill] sm:$0xff] }
 0x198   :  { %v1031_v27 = vadd.f32 %v3889_v37, %v985_v3  ;;  %v3334_v29 = vadd.f32 %v1156_v40, %v1083_v5  ;;  %1631 = vrot.lane.b32.xlu1 %v3235_v39, %s2231_s10  ;;  %v948_v21 = vadd.f32 %v3890_v63, %v870_v25  ;;  %v991_v17 = vadd.f32 %v3891_v54, %v935_v2  ;;  %v3893_v8 = vld [vmem:[#allocation36_spill] sm:$0xff]  ;;  %v3896_v23 = vld [vmem:[#allocation25_spill] sm:$0xff]  ;;  %v3898_v48 = vld [vmem:[#allocation26_spill] sm:$0xff] }
 0x199   :  { %v1110_v7 = vadd.f32 %v3209_v50, %v1032_v13  ;;  %1629 = vrot.lane.b32.xlu0 %v3243_v62, %s2231_s10  ;;  %v1169_v35 = vadd.f32 %v3892_v52, %v1097_v20  ;;  %v947_v57 = vadd.f32 %v3893_v8, %v869_v53  ;;  %v990_v36 = vadd.f32 %v3894_v38, %v934_v44  ;;  %v3897_v50 = vld [vmem:[#allocation45_spill] sm:$0xff]  ;;  %v3899_v0 = vld [vmem:[#allocation46_spill] sm:$0xff]  ;;  %v3909_v38 = vld [vmem:[#allocation72_spill] sm:$0xff] }
 0x19a   :  { %v1109_v39 = vadd.f32 %v3215_v49, %v1031_v27  ;;  %v1203_v24 = vpop.permute.xlu1 %1202  ;;  %v1168_v12 = vadd.f32 %v3895_v56, %v1096_v51  ;;  %v883_v2 = vadd.f32 %v3896_v23, %v813_v46  ;;  %v1045_v14 = vadd.f32 %v3897_v50, %v991_v17  ;;  %v3900_v3 = vld [vmem:[#allocation37_spill] sm:$0xff]  ;;  %v3901_v5 = vld [vmem:[#allocation62_spill] sm:$0xff]  ;;  %v3904_v46 = vld [vmem:[#allocation63_spill] sm:$0xff] }
 0x19b   :  { %v3352_v16 = vadd.f32 %v1203_v24, %v1169_v35  ;;  %v1201_v62 = vpop.permute.xlu0 %1200  ;;  %v1651_v61 = vmul.f32 %v1650_v41, %v3145_v19  ;;  %v882_v20 = vadd.f32 %v3898_v48, %v812_v1  ;;  %v1044_v10 = vadd.f32 %v3899_v0, %v990_v36  ;;  %v3902_v41 = vld [vmem:[#allocation71_spill] sm:$0xff]  ;;  %v3903_v25 = vld [vmem:[#allocation38_spill] sm:$0xff] }
 0x19c   :  { %v3359_v44 = vadd.f32 %v1201_v62, %v1168_v12  ;;  %1644 = vrot.lane.b32.xlu1 %v3274_v6, %s2231_s10  ;;  %v1663_v49 = vstv %s3312_s30  ;;  %v961_v43 = vadd.f32 %v3900_v3, %v883_v2  ;;  %v996_v51 = vadd.f32 %v3901_v5, %v948_v21  ;;  %v3906_v37 = vld [vmem:[#allocation50_spill] sm:$0xff]  ;;  %v3907_v21 = vld [vmem:[#allocation65_spill] sm:$0xff]  ;;  %v3911_v56 = vld [vmem:[#allocation55_spill] sm:$0xff]  ;;  %s2046_s30 = sld [smem:[#allocation6 + $0x4b]] }
 0x19d   :  { %v1123_v45 = vadd.f32 %v3240_v30, %v1045_v14  ;;  %1642 = vrot.lane.b32.xlu0 %v3277_v26, %s2231_s10  ;;  %v1174_v11 = vadd.f32 %v3902_v41, %v1110_v7  ;;  %v960_v58 = vadd.f32 %v3903_v25, %v882_v20  ;;  %v995_v6 = vadd.f32 %v3904_v46, %v947_v57  ;;  %v3905_v30 = vld [vmem:[#allocation47_spill] sm:$0xff]  ;;  %v3908_v35 = vld [vmem:[#allocation66_spill] sm:$0xff] }
 0x19e   :  { %v1122_v32 = vadd.f32 %v3250_v9, %v1044_v10  ;;  %v1216_v13 = vpop.permute.xlu1 %1215  ;;  %v1173_v40 = vadd.f32 %v3176_v59, %v1109_v39  ;;  %v1058_v28 = vadd.f32 %v3905_v30, %v996_v51  ;;  %v1182_v60 = vmul.f32 %v1180_v18, %v2821_v33  ;;  %v3910_v39 = vld [vmem:[#allocation16_spill] sm:$0xff] }
 0x19f   :  { %v3379_v53 = vadd.f32 %v1216_v13, %v1174_v11  ;;  %v1214_v26 = vpop.permute.xlu0 %1213  ;;  %v1185_v1 = vstv %s3329_s4  ;;  %v1057_v27 = vadd.f32 %v3906_v37, %v995_v6  ;;  %v1665_v59 = vmul.f32 %v1663_v49, %v3128_v31  ;;  %s2100_s4 = sld [smem:[#allocation6 + $0x81]] }
 0x1a0   :  { %v3386_v63 = vadd.f32 %v1214_v26, %v1173_v40  ;;  %1657 = vrot.lane.b32.xlu1 %v3287_v47, %s2232_s17  ;;  %v1664_v9 = vmul.f32 %v1663_v49, %v3145_v19  ;;  %v1001_v54 = vadd.f32 %v3907_v21, %v961_v43  ;;  %v1136_v17 = vadd.f32 %v3267_v4, %v1058_v28 }
 0x1a1   :  { %1655 = vrot.lane.b32.xlu0 %v1651_v61, %s2232_s17  ;;  %v1179_v7 = vadd.f32 %v3193_v55, %v1123_v45  ;;  %v1676_v52 = vstv %s3344_s5  ;;  %v1000_v8 = vadd.f32 %v3908_v35, %v960_v58  ;;  %v1135_v57 = vadd.f32 %v3271_v34, %v1057_v27  ;;  %v3912_v55 = vld [vmem:[#allocation58_spill] sm:$0xff]  ;;  %s2127_s5 = sld [smem:[#allocation6 + $0x9c]] }
 0x1a2   :  { %v1229_v47 = vpop.permute.xlu1 %1228  ;;  %v1178_v36 = vadd.f32 %v3909_v38, %v1122_v32  ;;  %v1181_v24 = vmul.f32 %v1180_v18, %v3910_v39  ;;  %v1071_v4 = vadd.f32 %v3911_v56, %v1001_v54  ;;  %v1678_v34 = vmul.f32 %v1676_v52, %v3128_v31  ;;  %v3462_v54 = vld [vmem:[#allocation2 + $0x22] sm:$0xff] }
 0x1a3   :  { %v3406_v12 = vadd.f32 %v1229_v47, %v1179_v7  ;;  %v1227_v23 = vpop.permute.xlu0 %1226  ;;  %v1070_v2 = vadd.f32 %v3912_v55, %v1000_v8  ;;  %v1187_v14 = vmul.f32 %v1185_v1, %v2821_v33  ;;  %v1184_v18 = vadd.f32 %v1182_v60, %v1136_v17 }
 0x1a4   :  { %v3409_v50 = vadd.f32 %v1227_v23, %v1178_v36  ;;  %1670 = vrot.lane.b32.xlu1 %v1665_v59, %s2232_s17  ;;  %v1149_v62 = vadd.f32 %v3298_v42, %v1071_v4  ;;  %v1677_v61 = vmul.f32 %v1676_v52, %v3145_v19  ;;  %v1689_v48 = vstv %s3370_s6  ;;  %s1995_s6 = sld [smem:[#allocation6 + $0x18]] }
 0x1a5   :  { %1668 = vrot.lane.b32.xlu0 %v1664_v9, %s2232_s17  ;;  %v1148_v20 = vadd.f32 %v3304_v22, %v1070_v2  ;;  %v1183_v10 = vadd.f32 %v1181_v24, %v1135_v57  ;;  %v1186_v49 = vmul.f32 %v1185_v1, %v3910_v39  ;;  %v1190_v3 = vstv %s3376_s0  ;;  %v3457_v9 = vld [vmem:[#allocation2 + $0x2a] sm:$0x3f]  ;;  %s2022_s0 = sld [smem:[#allocation6 + $0x33]] }
 0x1a6   :  { %v1242_v0 = vpop.permute.xlu1 %1241  ;;  %v1691_v51 = vmul.f32 %v1689_v48, %v3128_v31  ;;  %v1189_v45 = vadd.f32 %v1187_v14, %v1149_v62  ;;  %v1690_v22 = vmul.f32 %v1689_v48, %v3145_v19  ;;  %v1192_v41 = vmul.f32 %v1190_v3, %v2821_v33 }
 0x1a7   :  { %v3423_v43 = vadd.f32 %v1242_v0, %v1184_v18  ;;  %v1240_v5 = vpop.permute.xlu0 %1239  ;;  %v1702_v11 = vstv %s3397_s7  ;;  %v1188_v58 = vadd.f32 %v1186_v49, %v1148_v20  ;;  %v1191_v46 = vmul.f32 %v1190_v3, %v3910_v39  ;;  %s2049_s7 = sld [smem:[#allocation6 + $0x4e]] }
 0x1a8   :  { %v3425_v42 = vadd.f32 %v1240_v5, %v1183_v10  ;;  %1683 = vrot.lane.b32.xlu1 %v1678_v34, %s2232_s17  ;;  %v1704_v40 = vmul.f32 %v1702_v11, %v3128_v31  ;;  %v1194_v33 = vadd.f32 %v1192_v41, %v3327_v15  ;;  %v1703_v30 = vmul.f32 %v1702_v11, %v3145_v19  ;;  %v3913_v5 = vld [vmem:[#allocation28_spill] sm:$0xff] }
 0x1a9   :  { %1681 = vrot.lane.b32.xlu0 %v1677_v61, %s2232_s17  ;;  %v1715_v28 = vstv %s3418_s8  ;;  %v1193_v60 = vadd.f32 %v1191_v46, %v3334_v29  ;;  %v1760_v21 = vstv %s3433_s2  ;;  %v1773_v57 = vstv %s3446_s9  ;;  %s3689_s8 = sld [smem:[#allocation7]]  ;;  %s3693_s2 = sld [smem:[#allocation6 + $0x69]] }
 0x1aa   :  { %v1255_v25 = vpop.permute.xlu1 %1254  ;;  %v1717_v59 = vmul.f32 %v1715_v28, %v3128_v31  ;;  %v1716_v15 = vmul.f32 %v1715_v28, %v3145_v19  ;;  %v1762_v35 = vmul.f32 %v1760_v21, %v3457_v9  ;;  %v1761_v8 = vmul.f32 %v1760_v21, %v3462_v54  ;;  %s3701_s9 = sld [smem:[#allocation7 + $0x1]] }
 0x1ab   :  { %v3436_v6 = vadd.f32 %v1255_v25, %v1189_v45  ;;  %v1253_v32 = vpop.permute.xlu0 %1252  ;;  %v1774_v39 = vmul.f32 %v1773_v57, %v3462_v54  ;;  %v1786_v24 = vstv %s3460_s11  ;;  %v1799_v2 = vstv %s3475_s12  ;;  %s3705_s11 = sld [smem:[#allocation6 + $0x84]]  ;;  %s3714_s12 = sld [smem:[#allocation7 + $0x2]] }
 0x1ac   :  { %v3438_v13 = vadd.f32 %v1253_v32, %v1188_v58  ;;  %1696 = vrot.lane.b32.xlu1 %v1691_v51, %s2232_s17  ;;  %v1788_v23 = vmul.f32 %v1786_v24, %v3457_v9  ;;  %v1787_v55 = vmul.f32 %v1786_v24, %v3462_v54  ;;  %v1801_v62 = vmul.f32 %v1799_v2, %v3457_v9 }
 0x1ad   :  { %1694 = vrot.lane.b32.xlu0 %v1690_v22, %s2232_s17  ;;  %v1800_v18 = vmul.f32 %v1799_v2, %v3462_v54  ;;  %v1812_v61 = vstv %s3488_s13  ;;  %v1354_v20 = vstv %s3490_s14  ;;  %v1825_v51 = vstv %s3503_s15  ;;  %v3914_v22 = vld [vmem:[#allocation29_spill] sm:$0xff]  ;;  %s3719_s13 = sld [smem:[#allocation6 + $0x9f]]  ;;  %s3723_s14 = sld [smem:[#allocation7 + $0x3]] }
 0x1ae   :  { %v1268_v26 = vpop.permute.xlu1 %1267  ;;  %v1814_v3 = vmul.f32 %v1812_v61, %v3457_v9  ;;  %v1355_v41 = vmul.f32 %v1354_v20, %v3914_v22  ;;  %v1359_v11 = vstv %s3505_s16  ;;  %v1864_v24 = vstv %s3554_s22  ;;  %s3737_s15 = sld [smem:[#allocation7 + $0x4]]  ;;  %s3750_s16 = sld [smem:[#allocation7 + $0x5]] }
 0x1af   :  { %v3449_v1 = vadd.f32 %v1268_v26, %v1194_v33  ;;  %v1266_v37 = vpop.permute.xlu0 %1265  ;;  %v1838_v33 = vstv %s3518_s18  ;;  %v1360_v26 = vmul.f32 %v1359_v11, %v3914_v22  ;;  %s2233_s18 = smov [#allocation9]  }
 0x1b0   :  { %v3451_v27 = vadd.f32 %v1266_v37, %v1193_v60  ;;  %1709 = vrot.lane.b32.xlu1 %v1704_v40, %s2232_s17  ;;  %v1361_v40 = vmul.f32 %v1359_v11, %v3913_v5  ;;  %v1364_v60 = vstv %s3521_s19  ;;  %v1839_v21 = vmul.f32 %v1838_v33, %v3462_v54  ;;  %s1958_s19 = sshll.u32 %s2233_s18, 4  ;;  %s1959_s19 = int_to_ptr.vmem [resolvable:$true] %s1958_s19 }
 0x1b1   :  { %1707 = vrot.lane.b32.xlu0 %v1703_v30, %s2232_s17  ;;  %p2201_p5 = scmp.lt.s32.totalorder %s1959_s19, %s1959_s19 }
 0x1b2   :  { %v1281_v29 = vpop.permute.xlu1 %1280 }
 0x1b3   :  { %v3465_v17 = vadd.f32 %v1281_v29, %v3352_v16  ;;  %v1279_v7 = vpop.permute.xlu0 %1278  ;;  %v1366_v29 = vmul.f32 %v1364_v60, %v3913_v5 }
 0x1b4   :  { %v3468_v52 = vadd.f32 %v1279_v7, %v3359_v44  ;;  %1722 = vrot.lane.b32.xlu1 %v1717_v59, %s2232_s17  ;;  %v1775_v44 = vmul.f32 %v1773_v57, %v3457_v9  ;;  %v1840_v59 = vmul.f32 %v1838_v33, %v3457_v9 }
 0x1b5   :  { %1720 = vrot.lane.b32.xlu0 %v1716_v15, %s2232_s17 }
 0x1b6   :  { %v1294_v47 = vpop.permute.xlu1 %1293  ;;  %v1357_v28 = vadd.f32 %v1355_v41, %v3468_v52  ;;  %v2148_v41 = vld [vmem:[#allocation2 + $0x28] sm:$0x3f] }
 0x1b7   :  { %v3478_v16 = vadd.f32 %v1294_v47, %v3379_v53  ;;  %v1292_v38 = vpop.permute.xlu0 %1291 }
 0x1b8   :  { %v3481_v36 = vadd.f32 %v1292_v38, %v3386_v63  ;;  %1767 = vrot.lane.b32.xlu1 %v1762_v35, %s2231_s10  ;;  %v1365_v35 = vmul.f32 %v1364_v60, %v3914_v22 }
 0x1b9   :  { %1765 = vrot.lane.b32.xlu0 %v1761_v8, %s2231_s10  ;;  %v1363_v15 = vadd.f32 %v1361_v40, %v3478_v16  ;;  %v1369_v8 = vstv %s3539_s21 }
 0x1ba   :  { %v1307_v56 = vpop.permute.xlu1 %1306  ;;  %v1362_v52 = vadd.f32 %v1360_v26, %v3481_v36  ;;  %v1903_v26 = vstv %s3602_s27 }
 0x1bb   :  { %v3493_v53 = vadd.f32 %v1307_v56, %v3406_v12  ;;  %v1305_v63 = vpop.permute.xlu0 %1304 }
 0x1bc   :  { %v3496_v4 = vadd.f32 %v1305_v63, %v3409_v50  ;;  %1780 = vrot.lane.b32.xlu1 %v1775_v44, %s2231_s10 }
 0x1bd   :  { %1778 = vrot.lane.b32.xlu0 %v1774_v39, %s2231_s10  ;;  %v1368_v44 = vadd.f32 %v1366_v29, %v3493_v53  ;;  %v1371_v39 = vmul.f32 %v1369_v8, %v3913_v5  ;;  %v1866_v53 = vmul.f32 %v1864_v24, %v3457_v9  ;;  %v1904_v29 = vmul.f32 %v1903_v26, %v3462_v54 }
 0x1be   :  { %v1320_v34 = vpop.permute.xlu1 %1319  ;;  %v1367_v63 = vadd.f32 %v1365_v35, %v3496_v4  ;;  %v1877_v4 = vstv %s3572_s24 }
 0x1bf   :  { %v3508_v12 = vadd.f32 %v1320_v34, %v3423_v43  ;;  %v1318_v50 = vpop.permute.xlu0 %1317  ;;  %v1813_v43 = vmul.f32 %v1812_v61, %v3462_v54 }
 0x1c0   :  { %v3511_v14 = vadd.f32 %v1318_v50, %v3425_v42  ;;  %1793 = vrot.lane.b32.xlu1 %v1788_v23, %s2231_s10  ;;  %v1356_v42 = vmul.f32 %v1354_v20, %v3913_v5  ;;  %v1370_v23 = vmul.f32 %v1369_v8, %v3914_v22 }
 0x1c1   :  { %1791 = vrot.lane.b32.xlu0 %v1787_v55, %s2231_s10  ;;  %v1374_v55 = vstv %s3559_s23 }
 0x1c2   :  { %v1333_v48 = vpop.permute.xlu1 %1332  ;;  %v1358_v32 = vadd.f32 %v1356_v42, %v3465_v17  ;;  %v1851_v17 = vstv %s3535_s20  ;;  %v1376_v61 = vmul.f32 %v1374_v55, %v3913_v5  ;;  %v1372_v20 = vadd.f32 %v1370_v23, %v3511_v14  ;;  %s2196_s20 = scalar_lea.vmem %s1959_s19, 1536 }
 0x1c3   :  { %v3524_v0 = vadd.f32 %v1333_v48, %v3436_v6  ;;  %v1331_v10 = vpop.permute.xlu0 %1330  ;;  %v1827_v6 = vmul.f32 %v1825_v51, %v3457_v9  ;;  %v1853_v38 = vmul.f32 %v1851_v17, %v3457_v9  ;;  %v1852_v36 = vmul.f32 %v1851_v17, %v3462_v54  ;;  %p2197_p4 = scmp.ne.s32.totalorder %s1959_s19, %s2196_s20  ;;  %p2202_p6 = scmp.lt.s32.totalorder %s2196_s20, %s2196_s20 }
 0x1c4   :  { %v3527_v49 = vadd.f32 %v1331_v10, %v3438_v13  ;;  %1806 = vrot.lane.b32.xlu1 %v1801_v62, %s2231_s10  ;;  %v1826_v13 = vmul.f32 %v1825_v51, %v3462_v54  ;;  %v1373_v62 = vadd.f32 %v1371_v39, %v3508_v12  ;;  %v1375_v10 = vmul.f32 %v1374_v55, %v3914_v22 }
 0x1c5   :  { %1804 = vrot.lane.b32.xlu0 %v1800_v18, %s2231_s10  ;;  %v1865_v18 = vmul.f32 %v1864_v24, %v3462_v54  ;;  %v1879_v12 = vmul.f32 %v1877_v4, %v3457_v9  ;;  %v1378_v5 = vadd.f32 %v1376_v61, %v3524_v0  ;;  %v1542_v23 = vstv %s1992_s28  ;;  %p2203_p7 = por %p2202_p6, %p2201_p5 }
 0x1c6   :  { %v1346_v45 = vpop.permute.xlu1 %1345  ;;  %v1377_v22 = vadd.f32 %v1375_v10, %v3527_v49 }
 0x1c7   :  { %v3542_v25 = vadd.f32 %v1346_v45, %v3449_v1  ;;  %v1344_v58 = vpop.permute.xlu0 %1343  ;;  %v1878_v45 = vmul.f32 %v1877_v4, %v3462_v54  ;;  %p2204_p8 = pnand %p2203_p7, %p2197_p4 }
 0x1c8   :  { %v3545_v46 = vadd.f32 %v1344_v58, %v3451_v27  ;;  %1819 = vrot.lane.b32.xlu1 %v1814_v3, %s2231_s10  ;;  %v1379_v3 = vstv %s3577_s26 }
 0x1c9   :  { %1817 = vrot.lane.b32.xlu0 %v1813_v43, %s2231_s10  ;;  %v1381_v11 = vmul.f32 %v2148_v41, %v1379_v3 }
 0x1ca   :  { %v1392_v30 = vpop.permute.xlu1 %1391 }
 0x1cb   :  { %v3561_v1 = vadd.f32 %v1392_v30, %v1358_v32  ;;  %v1390_v37 = vpop.permute.xlu0 %1389  ;;  %v1383_v0 = vadd.f32 %v1381_v11, %v3542_v25 }
 0x1cc   :  { %v3563_v27 = vadd.f32 %v1390_v37, %v1357_v28  ;;  %1832 = vrot.lane.b32.xlu1 %v1827_v6, %s2231_s10  ;;  %v2149_v6 = vld [vmem:[#allocation2 + $0x20] sm:$0xff] }
 0x1cd   :  { %1830 = vrot.lane.b32.xlu0 %v1826_v13, %s2231_s10  ;;  %s3590_s10 = sld [smem:[#allocation6 + $0x86]]  ;;  %v1380_v32 = vmul.f32 %v2149_v6, %v1379_v3 }
 0x1ce   :  { %v1405_v7 = vpop.permute.xlu1 %1404 }
 0x1cf   :  { %v3579_v57 = vadd.f32 %v1405_v7, %v1363_v15  ;;  %v1403_v47 = vpop.permute.xlu0 %1402  ;;  %v1382_v37 = vadd.f32 %v1380_v32, %v3545_v46 }
 0x1d0   :  { %v3581_v16 = vadd.f32 %v1403_v47, %v1362_v52  ;;  %1845 = vrot.lane.b32.xlu1 %v1840_v59, %s2232_s17 }
 0x1d1   :  { %1843 = vrot.lane.b32.xlu0 %v1839_v21, %s2232_s17  ;;  %v1905_v21 = vmul.f32 %v1903_v26, %v3457_v9 }
 0x1d2   :  { %v1418_v56 = vpop.permute.xlu1 %1417 }
 0x1d3   :  { %v1422_v2 = vadd.f32 %v1418_v56, %v1368_v44  ;;  %v1416_v34 = vpop.permute.xlu0 %1415  ;;  %v1890_v14 = vstv %s3590_s10 }
 0x1d4   :  { %v1421_v50 = vadd.f32 %v1416_v34, %v1367_v63  ;;  %1858 = vrot.lane.b32.xlu1 %v1853_v38, %s2232_s17  ;;  %v1892_v30 = vmul.f32 %v1890_v14, %v3457_v9  ;;  %v1891_v28 = vmul.f32 %v1890_v14, %v3462_v54 }
 0x1d5   :  { %1856 = vrot.lane.b32.xlu0 %v1852_v36, %s2232_s17 }
 0x1d6   :  { %v1431_v48 = vpop.permute.xlu1 %1430 }
 0x1d7   :  { %v1435_v43 = vadd.f32 %v1431_v48, %v1373_v62  ;;  %v1429_v42 = vpop.permute.xlu0 %1428 }
 0x1d8   :  { %v1434_v51 = vadd.f32 %v1429_v42, %v1372_v20  ;;  %1871 = vrot.lane.b32.xlu1 %v1866_v53, %s2232_s17 }
 0x1d9   :  { %1869 = vrot.lane.b32.xlu0 %v1865_v18, %s2232_s17  ;;  %v1547_v18 = vstv %s2019_s29 }
 0x1da   :  { %v1444_v58 = vpop.permute.xlu1 %1443  ;;  %v1549_v48 = vmul.f32 %v1547_v18, %v3128_v31  ;;  %v1548_v3 = vmul.f32 %v1547_v18, %v3145_v19 }
 0x1db   :  { %v1448_v13 = vadd.f32 %v1444_v58, %v1378_v5  ;;  %v1442_v40 = vpop.permute.xlu0 %1441 }
 0x1dc   :  { %v1447_v33 = vadd.f32 %v1442_v40, %v1377_v22  ;;  %1884 = vrot.lane.b32.xlu1 %v1879_v12, %s2232_s17 }
 0x1dd   :  { %1882 = vrot.lane.b32.xlu0 %v1878_v45, %s2232_s17 }
 0x1de   :  { %v1457_v60 = vpop.permute.xlu1 %1456 }
 0x1df   :  { %v1461_v49 = vadd.f32 %v1457_v60, %v1383_v0  ;;  %v1455_v59 = vpop.permute.xlu0 %1454 }
 0x1e0   :  { %v1460_v15 = vadd.f32 %v1455_v59, %v1382_v37  ;;  %1897 = vrot.lane.b32.xlu1 %v1892_v30, %s2232_s17 }
 0x1e1   :  { %1895 = vrot.lane.b32.xlu0 %v1891_v28, %s2232_s17  ;;  %v1562_v28 = vstv %s2100_s4 }
 0x1e2   :  { %v1470_v17 = vpop.permute.xlu1 %1469  ;;  %v1564_v59 = vmul.f32 %v1562_v28, %v3128_v31 }
 0x1e3   :  { %v1474_v25 = vadd.f32 %v1470_v17, %v3561_v1  ;;  %v1468_v7 = vpop.permute.xlu0 %1467  ;;  %v1567_v17 = vstv %s2127_s5 }
 0x1e4   :  { %v1473_v52 = vadd.f32 %v1468_v7, %v3563_v27  ;;  %1910 = vrot.lane.b32.xlu1 %v1905_v21, %s2232_s17 }
 0x1e5   :  { %1908 = vrot.lane.b32.xlu0 %v1904_v29, %s2232_s17  ;;  %s2073_s17 = sld [smem:[#allocation6 + $0x66]]  ;;  %v1563_v29 = vmul.f32 %v1562_v28, %v3145_v19  ;;  %v1740_v28 = vstv %s2049_s7 }
 0x1e6   :  { %v1483_v46 = vpop.permute.xlu1 %1482 }
 0x1e7   :  { %v1487_v35 = vadd.f32 %v1483_v46, %v3579_v57  ;;  %v1481_v8 = vpop.permute.xlu0 %1480  ;;  %v1544_v57 = vmul.f32 %v1542_v23, %v3128_v31 }
 0x1e8   :  { %v1486_v47 = vadd.f32 %v1481_v8, %v3581_v16  ;;  %v1543_v16 = vmul.f32 %v1542_v23, %v3145_v19 }
 0x1e9   :  { %v1546_v4 = vadd.f32 %v1544_v57, %v1474_v25  ;;  %v1551_v5 = vadd.f32 %v1549_v48, %v1487_v35  ;;  %v1569_v35 = vmul.f32 %v1567_v17, %v3128_v31 }
 0x1ea   :  { %v1496_v38 = vpop.permute.xlu1 %1495  ;;  %v1545_v10 = vadd.f32 %v1543_v16, %v1473_v52  ;;  %v1550_v11 = vadd.f32 %v1548_v3, %v1486_v47 }
 0x1eb   :  { %v1500_v44 = vadd.f32 %v1496_v38, %v1422_v2  ;;  %v1494_v36 = vpop.permute.xlu0 %1493  ;;  %v1557_v58 = vstv %s2073_s17  ;;  %v1568_v38 = vmul.f32 %v1567_v17, %v3145_v19  ;;  %v1916_v17 = vstv %s3689_s8 }
 0x1ec   :  { %v1499_v39 = vadd.f32 %v1494_v36, %v1421_v50  ;;  %v1559_v40 = vmul.f32 %v1557_v58, %v3128_v31  ;;  %v1558_v0 = vmul.f32 %v1557_v58, %v3145_v19 }
 0x1ee   :  { %v1509_v24 = vpop.permute.xlu1 %1508 }
 0x1ef   :  { %v1513_v1 = vadd.f32 %v1509_v24, %v1435_v43  ;;  %v1507_v56 = vpop.permute.xlu0 %1506  ;;  %v1552_v43 = vstv %s2046_s30 }
 0x1f0   :  { %v1512_v27 = vadd.f32 %v1507_v56, %v1434_v51  ;;  %v1554_v45 = vmul.f32 %v1552_v43, %v3128_v31  ;;  %v1553_v14 = vmul.f32 %v1552_v43, %v3145_v19 }
 0x1f2   :  { %v1522_v63 = vpop.permute.xlu1 %1521  ;;  %v1555_v30 = vadd.f32 %v1553_v14, %v1499_v39  ;;  %v1560_v21 = vadd.f32 %v1558_v0, %v1512_v27 }
 0x1f3   :  { %v1526_v55 = vadd.f32 %v1522_v63, %v1448_v13  ;;  %v1520_v34 = vpop.permute.xlu0 %1519  ;;  %v1556_v13 = vadd.f32 %v1554_v45, %v1500_v44  ;;  %v1730_v45 = vstv %s1995_s6 }
 0x1f4   :  { %v1525_v53 = vadd.f32 %v1520_v34, %v1447_v33  ;;  %v1732_v14 = vmul.f32 %v1730_v45, %v3457_v9 }
 0x1f5   :  { %v1566_v46 = vadd.f32 %v1564_v59, %v1526_v55 }
 0x1f6   :  { %v1535_v62 = vpop.permute.xlu1 %1534  ;;  %v1565_v47 = vadd.f32 %v1563_v29, %v1525_v53  ;;  %v1742_v29 = vmul.f32 %v1740_v28, %v3457_v9 }
 0x1f7   :  { %v1539_v2 = vadd.f32 %v1535_v62, %v1461_v49  ;;  %v1533_v50 = vpop.permute.xlu0 %1532  ;;  %v1561_v49 = vadd.f32 %v1559_v40, %v1513_v1  ;;  %v1735_v40 = vstv %s2022_s0 }
 0x1f8   :  { %v1538_v61 = vadd.f32 %v1533_v50, %v1460_v15  ;;  %v1736_v59 = vmul.f32 %v1735_v40, %v3462_v54 }
 0x1f9   :  { %v1571_v24 = vadd.f32 %v1569_v35, %v1539_v2 }
 0x1fa   :  { %v1580_v20 = vpop.permute.xlu1 %1579  ;;  %v1570_v56 = vadd.f32 %v1568_v38, %v1538_v61 }
 0x1fb   :  { %v3635_v42 = vadd.f32 %v1580_v20, %v1546_v4  ;;  %v1578_v51 = vpop.permute.xlu0 %1577 }
 0x1fc   :  { %v3637_v12 = vadd.f32 %v1578_v51, %v1545_v10 }
 0x1fe   :  { %v1593_v41 = vpop.permute.xlu1 %1592 }
 0x1ff   :  { %v3641_v22 = vadd.f32 %v1593_v41, %v1551_v5  ;;  %v1591_v6 = vpop.permute.xlu0 %1590 }
 0x200   :  { %v3643_v32 = vadd.f32 %v1591_v6, %v1550_v11 }
 0x202   :  { %v1606_v33 = vpop.permute.xlu1 %1605 }
 0x203   :  { %v3647_v26 = vadd.f32 %v1606_v33, %v1556_v13  ;;  %v1604_v60 = vpop.permute.xlu0 %1603  ;;  %v1731_v13 = vmul.f32 %v1730_v45, %v3462_v54 }
 0x204   :  { %v3649_v37 = vadd.f32 %v1604_v60, %v1555_v30 }
 0x206   :  { %v1619_v15 = vpop.permute.xlu1 %1618 }
 0x207   :  { %v3653_v25 = vadd.f32 %v1619_v15, %v1561_v49  ;;  %v1617_v7 = vpop.permute.xlu0 %1616 }
 0x208   :  { %v3655_v52 = vadd.f32 %v1617_v7, %v1560_v21 }
 0x20a   :  { %v1632_v8 = vpop.permute.xlu1 %1631 }
 0x20b   :  { %v3659_v44 = vadd.f32 %v1632_v8, %v1566_v46  ;;  %v1630_v36 = vpop.permute.xlu0 %1629  ;;  %v1745_v8 = vstv %s3693_s2 }
 0x20c   :  { %v3661_v39 = vadd.f32 %v1630_v36, %v1565_v47 }
 0x20e   :  { %v1645_v1 = vpop.permute.xlu1 %1644 }
 0x20f   :  { %v3663_v27 = vadd.f32 %v1645_v1, %v1571_v24  ;;  %v1643_v63 = vpop.permute.xlu0 %1642 }
 0x210   :  { %v3665_v23 = vadd.f32 %v1643_v63, %v1570_v56 }
 0x212   :  { %v1658_v55 = vpop.permute.xlu1 %1657 }
 0x213   :  { %v1656_v34 = vpop.permute.xlu0 %1655  ;;  %v1662_v11 = vadd.f32 %v1658_v55, %v3635_v42  ;;  %v1737_v42 = vmul.f32 %v1735_v40, %v3457_v9  ;;  %v1747_v55 = vmul.f32 %v1745_v8, %v3457_v9 }
 0x214   :  { %v1661_v6 = vadd.f32 %v1656_v34, %v3637_v12  ;;  %v1923_v34 = vstv %s3701_s9 }
 0x215   :  { %v1734_v0 = vadd.f32 %v1732_v14, %v1662_v11 }
 0x216   :  { %v1671_v31 = vpop.permute.xlu1 %1670  ;;  %v1733_v49 = vadd.f32 %v1731_v13, %v1661_v6  ;;  %v1929_v13 = vstv %s3714_s12 }
 0x217   :  { %v1669_v57 = vpop.permute.xlu0 %1668  ;;  %v1675_v30 = vadd.f32 %v1671_v31, %v3641_v22  ;;  %v1741_v22 = vmul.f32 %v1740_v28, %v3462_v54  ;;  %v1755_v28 = vstv %s3719_s13 }
 0x218   :  { %v1674_v12 = vadd.f32 %v1669_v57, %v3643_v32 }
 0x219   :  { %v1739_v35 = vadd.f32 %v1737_v42, %v1675_v30 }
 0x21a   :  { %v1684_v53 = vpop.permute.xlu1 %1683  ;;  %v1738_v36 = vadd.f32 %v1736_v59, %v1674_v12 }
 0x21b   :  { %v1682_v62 = vpop.permute.xlu0 %1681  ;;  %v1688_v46 = vadd.f32 %v1684_v53, %v3647_v26  ;;  %v1750_v53 = vstv %s3705_s11 }
 0x21c   :  { %v1687_v38 = vadd.f32 %v1682_v62, %v3649_v37  ;;  %v1752_v14 = vmul.f32 %v1750_v53, %v3457_v9  ;;  %v1751_v30 = vmul.f32 %v1750_v53, %v3462_v54 }
 0x21d   :  { %v1744_v57 = vadd.f32 %v1742_v29, %v1688_v46 }
 0x21e   :  { %v3667_v19 = vpop.permute.xlu1 %1696 }
 0x21f   :  { %v3669_v16 = vpop.permute.xlu0 %1694  ;;  %v1701_v37 = vadd.f32 %v3667_v19, %v3653_v25 }
 0x222   :  { %v3671_v18 = vpop.permute.xlu1 %1709 }
 0x223   :  { %v3673_v2 = vpop.permute.xlu0 %1707 }
 0x226   :  { %v3675_v50 = vpop.permute.xlu1 %1722 }
 0x227   :  { %v3677_v61 = vpop.permute.xlu0 %1720  ;;  %v1727_v29 = vadd.f32 %v3675_v50, %v3663_v27  ;;  %v1941_v50 = vstv %s3737_s15 }
 0x22a   :  { %v1768_v4 = vpop.permute.xlu1 %1767 }
 0x22b   :  { %v1766_v48 = vpop.permute.xlu0 %1765  ;;  %v1772_v15 = vadd.f32 %v1768_v4, %v1734_v0 }
 0x22c   :  { %v1771_v21 = vadd.f32 %v1766_v48, %v1733_v49  ;;  %v1700_v48 = vadd.f32 %v3669_v16, %v3655_v52  ;;  %v1714_v52 = vadd.f32 %v3671_v18, %v3659_v44  ;;  %v1749_v16 = vadd.f32 %v1747_v55, %v1701_v37 }
 0x22e   :  { %v1781_v20 = vpop.permute.xlu1 %1780 }
 0x22f   :  { %v1779_v10 = vpop.permute.xlu0 %1778  ;;  %v1785_v1 = vadd.f32 %v1781_v20, %v1739_v35  ;;  %v1743_v20 = vadd.f32 %v1741_v22, %v1687_v38 }
 0x230   :  { %v1784_v63 = vadd.f32 %v1779_v10, %v1738_v36  ;;  %v1746_v10 = vmul.f32 %v1745_v8, %v3462_v54 }
 0x232   :  { %v3679_v3 = vpop.permute.xlu1 %1793  ;;  %v1748_v42 = vadd.f32 %v1746_v10, %v1700_v48 }
 0x233   :  { %v3681_v43 = vpop.permute.xlu0 %1791  ;;  %v1798_v11 = vadd.f32 %v3679_v3, %v1744_v57 }
 0x234   :  { %v1797_v19 = vadd.f32 %v3681_v43, %v1743_v20  ;;  %v1713_v43 = vadd.f32 %v3673_v2, %v3661_v39  ;;  %v1754_v39 = vadd.f32 %v1752_v14, %v1714_v52  ;;  %v1757_v2 = vmul.f32 %v1755_v28, %v3457_v9 }
 0x236   :  { %v3683_v51 = vpop.permute.xlu1 %1806 }
 0x237   :  { %v3685_v5 = vpop.permute.xlu0 %1804  ;;  %v1811_v49 = vadd.f32 %v3683_v51, %v1749_v16  ;;  %v1726_v51 = vadd.f32 %v3677_v61, %v3665_v23 }
 0x238   :  { %v1810_v44 = vadd.f32 %v3685_v5, %v1748_v42  ;;  %v1753_v5 = vadd.f32 %v1751_v30, %v1713_v43 }
 0x23a   :  { %v3687_v41 = vpop.permute.xlu1 %1819 }
 0x23b   :  { %v3695_v58 = vpop.permute.xlu0 %1817  ;;  %v1824_v35 = vadd.f32 %v3687_v41, %v1754_v39 }
 0x23c   :  { %v1823_v27 = vadd.f32 %v3695_v58, %v1753_v5 }
 0x23e   :  { %v3699_v33 = vpop.permute.xlu1 %1832 }
 0x23f   :  { %v3707_v60 = vpop.permute.xlu0 %1830 }
 0x242   :  { %v1846_v7 = vpop.permute.xlu1 %1845 }
 0x243   :  { %v1850_v47 = vadd.f32 %v1846_v7, %v1772_v15  ;;  %v1844_v32 = vpop.permute.xlu0 %1843  ;;  %v1935_v15 = vstv %s3723_s14  ;;  %v1756_v7 = vmul.f32 %v1755_v28, %v3462_v54 }
 0x244   :  { %v1849_v24 = vadd.f32 %v1844_v32, %v1771_v21  ;;  %v1759_v32 = vadd.f32 %v1757_v2, %v1727_v29 }
 0x245   :  { %v1918_v56 = vadd.f32 %v1916_v17, %v1850_v47  ;;  %v1758_v61 = vadd.f32 %v1756_v7, %v1726_v51 }
 0x246   :  { %v1917_v26 = vadd.f32 %v1916_v17, %v1849_v24  ;;  %v1859_v31 = vpop.permute.xlu1 %1858  ;;  %v1837_v36 = vadd.f32 %v3699_v33, %v1759_v32 }
 0x247   :  { %1922 = vst.msk [vmem:[#allocation9 + $0x8] sm:$0x3f] %vm1921_vm0, %v1918_v56  ;;  %v1863_v62 = vadd.f32 %v1859_v31, %v1785_v1  ;;  %v1857_v4 = vpop.permute.xlu0 %1856  ;;  %v1836_v41 = vadd.f32 %v3707_v60, %v1758_v61  ;;  %v1947_v56 = vstv %s3750_s16 }
 0x248   :  { %1920 = vst.msk [vmem:[#allocation9] sm:$0xff] %vm1919_vm1, %v1917_v26  ;;  %v1862_v45 = vadd.f32 %v1857_v4, %v1784_v63 }
 0x249   :  { %v1925_v25 = vadd.f32 %v1923_v34, %v1863_v62 }
 0x24a   :  { %v1924_v6 = vadd.f32 %v1923_v34, %v1862_v45  ;;  %v1872_v40 = vpop.permute.xlu1 %1871 }
 0x24b   :  { %1928 = vst.msk [vmem:[#allocation9 + $0x18] sm:$0x3f] %vm1921_vm0, %v1925_v25  ;;  %v1876_v3 = vadd.f32 %v1872_v40, %v1798_v11  ;;  %v1870_v0 = vpop.permute.xlu0 %1869 }
 0x24c   :  { %1927 = vst.msk [vmem:[#allocation9 + $0x10] sm:$0xff] %vm1919_vm1, %v1924_v6  ;;  %v1875_v12 = vadd.f32 %v1870_v0, %v1797_v19 }
 0x24d   :  { %v1931_v59 = vadd.f32 %v1929_v13, %v1876_v3 }
 0x24e   :  { %v1930_v18 = vadd.f32 %v1929_v13, %v1875_v12  ;;  %v1885_v21 = vpop.permute.xlu1 %1884 }
 0x24f   :  { %1934 = vst.msk [vmem:[#allocation9 + $0x28] sm:$0x3f] %vm1921_vm0, %v1931_v59  ;;  %v1889_v22 = vadd.f32 %v1885_v21, %v1811_v49  ;;  %v1883_v17 = vpop.permute.xlu0 %1882 }
 0x250   :  { %1933 = vst.msk [vmem:[#allocation9 + $0x20] sm:$0xff] %vm1919_vm1, %v1930_v18  ;;  %v1888_v46 = vadd.f32 %v1883_v17, %v1810_v44 }
 0x251   :  { %v1937_v8 = vadd.f32 %v1935_v15, %v1889_v22 }
 0x252   :  { %v1936_v9 = vadd.f32 %v1935_v15, %v1888_v46  ;;  %v1898_v47 = vpop.permute.xlu1 %1897 }
 0x253   :  { %1940 = vst.msk [vmem:[#allocation9 + $0x38] sm:$0x3f] %vm1921_vm0, %v1937_v8  ;;  %v1902_v38 = vadd.f32 %v1898_v47, %v1824_v35  ;;  %v1896_v23 = vpop.permute.xlu0 %1895 }
 0x254   :  { %1939 = vst.msk [vmem:[#allocation9 + $0x30] sm:$0xff] %vm1919_vm1, %v1936_v9  ;;  %v1901_v54 = vadd.f32 %v1896_v23, %v1823_v27 }
 0x255   :  { %v1943_v24 = vadd.f32 %v1941_v50, %v1902_v38 }
 0x256   :  { %v1942_v1 = vadd.f32 %v1941_v50, %v1901_v54  ;;  %v1911_v58 = vpop.permute.xlu1 %1910 }
 0x257   :  { %1946 = vst.msk [vmem:[#allocation9 + $0x48] sm:$0x3f] %vm1921_vm0, %v1943_v24  ;;  %v1915_v63 = vadd.f32 %v1911_v58, %v1837_v36  ;;  %v1909_v55 = vpop.permute.xlu0 %1908 }
 0x258   :  { %1945 = vst.msk [vmem:[#allocation9 + $0x40] sm:$0xff] %vm1919_vm1, %v1942_v1  ;;  %v1914_v26 = vadd.f32 %v1909_v55, %v1836_v41 }
 0x259   :  { %v1949_v34 = vadd.f32 %v1947_v56, %v1915_v63 }
 0x25a   :  { %v1948_v31 = vadd.f32 %v1947_v56, %v1914_v26 }
 0x25b   :  { %1952 = vst.msk [vmem:[#allocation9 + $0x58] sm:$0x3f] %vm1921_vm0, %v1949_v34 }
 0x25c   :  { %1951 = vst.msk [vmem:[#allocation9 + $0x50] sm:$0xff] %vm1919_vm1, %v1948_v31 }
 0x25d   :  { %2207 = shalt.err (!%p2204_p8)
}
 0x25e   :  { %s2208_s23 = scalar_lea.hbm %s3790_s3, 1536 }
 0x25f   :  { %p2209_p9 = scmp.ne.s32.totalorder %s3790_s3, %s2208_s23  ;;  %p2212_p10 = scmp.lt.u32.totalorder %s2208_s23, %s3790_s3 }
 0x261   :  { %p2214_p11 = pnand %p2212_p10, %p2209_p9 }
 0x263   :  { %2217 = shalt.err (!%p2214_p11)
}
 0x264   :  { %1964 = dma.vmem_to_hbm [thread:$0]  %s1959_s19, 1536, %s3790_s3, [#allocation4], %s2227_s1, %s2227_s1, %s2228_s25  }
 0x265   :  { %2224 = dma.done.wait [#allocation4], 1536  }
 0x266   :  { %2225 = vsyncadd [#allocation4], 4294965760 }
 0x267   :  { %1968 = vsyncpa [#allocation3], 1 }
 0x268   :  { %1969 = vsyncpa [#allocation4], 1 }
 0x269   :  { %1970 = vsyncpa [#allocation5], 1 }
 0x26a   :  { %1971 = vsyncpa [#allocation8], 1 }

</bundles_post_ra>
